<compile_context>
chip_gen: v6e
topology: v6e:2x2x1
jax: 0.10.0
libtpu: 0.0.40
codegen_flags: <defaults>
</compile_context>

<pallas_src>
import functools

import jax
import jax.numpy as jnp
from jax import lax
from jax.experimental import pallas as pl
from jax.experimental.pallas import tpu as pltpu

BN_EPS = 1e-5
LEAKY_SLOPE = 0.01
LANE = 128


def _round_up(x, m):
    return (x + m - 1) // m * m


# ---------------- Phase 1 (only phase): conv as shifted matmuls + per-block BN partials ----------------

def conv_bn_stats_kernel(x_ref, w_ref, y_ref, mean_ref, m2_ref, *, kh, kw, ho, wo, wp):
    """One batch image per grid step (grid axis is 'parallel').

    x_ref:    (1, flat_len, C_in) bf16 — padded NHWC image flattened over (H, W).
    w_ref:    (kh*kw, C_in, Cp)   bf16 — per-tap weight slabs (resident).
    y_ref:    (1, Ho*Wp, Cp)      f32  — width-flattened conv output (cols >= Wo are garbage).
    mean_ref: (1, 8, Cp)          f32  — per-block per-channel mean (broadcast over sublanes).
    m2_ref:   (1, 8, Cp)          f32  — per-block per-channel centered sum of squares.
    """
    rows = ho * wp
    c_pad = y_ref.shape[-1]

    # Conv: kh*kw shifted matmuls, bf16 x bf16 on the MXU with f32 accumulation.
    acc = jnp.zeros((rows, c_pad), jnp.float32)
    for dy in range(kh):
        for dx in range(kw):
            xs = x_ref[0, pl.ds(dy * wp + dx, rows), :]              # (rows, C_in) bf16
            acc = acc + jnp.dot(xs, w_ref[dy * kw + dx],
                                preferred_element_type=jnp.float32)
    y_ref[0] = acc

    # Per-channel BN partials over valid columns only (mask out the wrapped columns
    # introduced by the width-flattening trick).  Centered within the block so the
    # wrapper can combine blocks with Chan's parallel formula (numerically stable).
    ridx = lax.broadcasted_iota(jnp.int32, (rows, 1), 0)
    valid = (ridx % wp) < wo
    m_rows = float(ho * wo)
    s1 = jnp.sum(jnp.where(valid, acc, 0.0), axis=0, keepdims=True)  # (1, Cp)
    mu = s1 * (1.0 / m_rows)
    d = jnp.where(valid, acc - mu, 0.0)
    m2 = jnp.sum(d * d, axis=0, keepdims=True)                       # (1, Cp)

    mean_ref[...] = jnp.broadcast_to(mu[None], (1, 8, c_pad))
    m2_ref[...] = jnp.broadcast_to(m2[None], (1, 8, c_pad))


# ---------------- Wrapper ----------------

@functools.partial(jax.jit, static_argnames=("stride", "padding"))
def conv_module_forward(x, weight, gamma, beta, *, stride=1, padding=0):
    """x: (N, C_in, H, W) NCHW f32.  weight: (C_out, C_in, kh, kw) PyTorch OIHW."""
    assert stride == 1, "TODO(synk): stride > 1 path not implemented"
    n, c_in, h, w = x.shape
    c_out, c_in_w, kh, kw = weight.shape
    assert c_in_w == c_in
    ho = h + 2 * padding - kh + 1
    wo = w + 2 * padding - kw + 1
    hp = h + 2 * padding
    wp = w + 2 * padding
    extra = 1 if kw > 1 else 0          # one extra zero row keeps the last tap's slice in-bounds
    c_pad = _round_up(c_out, LANE)      # lane-dense output channels

    # NCHW -> NHWC bf16 (cast before padding/flattening: single cheap pass), pad once,
    # flatten spatial dims so every conv tap is one contiguous row-slice.
    xn = jnp.transpose(x, (0, 2, 3, 1)).astype(jnp.bfloat16)
    xp = jnp.pad(xn, ((0, 0), (padding, padding + extra), (padding, padding), (0, 0)))
    flat_len = (hp + extra) * wp
    x_flat = xp.reshape(n, flat_len, c_in)

    # OIHW -> (kh*kw, C_in, Cp) bf16 per-tap weight slabs (zero-padded output channels).
    wt = jnp.transpose(weight, (2, 3, 1, 0)).reshape(kh * kw, c_in, c_out)
    w_taps = jnp.pad(wt, ((0, 0), (0, 0), (0, c_pad - c_out))).astype(jnp.bfloat16)

    # VMEM budget: double-buffered x/y blocks + resident weights + acc temp, with headroom.
    x_tile = _round_up(flat_len, 16) * max(_round_up(c_in, LANE), LANE) * 2
    y_tile = _round_up(ho * wp, 8) * c_pad * 4
    w_tile = kh * kw * _round_up(c_in, 16) * c_pad * 2
    est = 2 * (x_tile + y_tile) + 2 * w_tile + 4 * 8 * c_pad * 4 + y_tile
    vmem_limit = min(64 * 1024 * 1024, max(32 * 1024 * 1024, 2 * est))

    y, mean_b, m2_b = pl.pallas_call(
        functools.partial(conv_bn_stats_kernel, kh=kh, kw=kw, ho=ho, wo=wo, wp=wp),
        grid=(n,),
        in_specs=[
            pl.BlockSpec((1, flat_len, c_in), lambda i: (i, 0, 0)),      # one image per step
            pl.BlockSpec((kh * kw, c_in, c_pad), lambda i: (0, 0, 0)),   # resident weights
        ],
        out_specs=[
            pl.BlockSpec((1, ho * wp, c_pad), lambda i: (i, 0, 0)),      # y block -> HBM
            pl.BlockSpec((1, 8, c_pad), lambda i: (i, 0, 0)),            # per-block mean
            pl.BlockSpec((1, 8, c_pad), lambda i: (i, 0, 0)),            # per-block centered M2
        ],
        out_shape=[
            jax.ShapeDtypeStruct((n, ho * wp, c_pad), jnp.float32),
            jax.ShapeDtypeStruct((n, 8, c_pad), jnp.float32),
            jax.ShapeDtypeStruct((n, 8, c_pad), jnp.float32),
        ],
        compiler_params=pltpu.CompilerParams(
            dimension_semantics=("parallel",),        # no carried state -> v7x 2-TC split OK
            vmem_limit_bytes=vmem_limit),
    )(x_flat, w_taps)

    # ---- BN finalize: Chan's parallel combine of per-block partials (tiny XLA) ----
    m_rows = ho * wo
    m_total = n * m_rows
    mean_b = mean_b[:, 0, :c_out]                                       # (n, C_out)
    m2_b = m2_b[:, 0, :c_out]
    mean = jnp.mean(mean_b, axis=0)                                     # equal-sized blocks
    m2 = jnp.sum(m2_b, axis=0) + m_rows * jnp.sum(jnp.square(mean_b - mean), axis=0)
    var = m2 / m_total                                                  # biased, as in BN training
    scale = gamma.astype(jnp.float32) * lax.rsqrt(var + BN_EPS)
    shift = beta.astype(jnp.float32) - mean * scale

    # ---- BN affine + LeakyReLU fused by XLA into the final slice/transpose to NCHW ----
    y4 = y.reshape(n, ho, wp, c_pad)[:, :, :wo, :c_out]                 # drop garbage cols / pad chans
    z = y4 * scale + shift
    z = jnp.where(z >= 0, z, LEAKY_SLOPE * z)
    return jnp.transpose(z, (0, 3, 1, 2))                               # (N, C_out, Ho, Wo)


def conv_module_reference(x, weight, gamma, beta, *, stride=1, padding=0):
    """Pure-JAX reference: conv2d (no bias) + training-mode BatchNorm2d + LeakyReLU(0.01)."""
    y = lax.conv_general_dilated(
        x, weight, window_strides=(stride, stride),
        padding=[(padding, padding), (padding, padding)],
        dimension_numbers=("NCHW", "OIHW", "NCHW"))
    mean = jnp.mean(y, axis=(0, 2, 3), keepdims=True)
    var = jnp.mean((y - mean) ** 2, axis=(0, 2, 3), keepdims=True)
    yn = (y - mean) * lax.rsqrt(var + BN_EPS)
    yn = yn * gamma.reshape(1, -1, 1, 1) + beta.reshape(1, -1, 1, 1)
    return jnp.where(yn >= 0, yn, LEAKY_SLOPE * yn)


if __name__ == "__main__":
    # ConvModule(in_channels=4, out_channels=8, kernel_size=3, padding=1)
    N, C_IN, H, W = 2, 4, 16, 16
    C_OUT, KH, KW = 8, 3, 3
    STRIDE, PADDING = 1, 1

    key = jax.random.PRNGKey(0)
    kx, kw_ = jax.random.split(key)
    x = jax.random.normal(kx, (N, C_IN, H, W), dtype=jnp.float32)

    fan_in = C_IN * KH * KW
    bound = (1.0 / fan_in) ** 0.5
    weight = jax.random.uniform(kw_, (C_OUT, C_IN, KH, KW),
                                minval=-bound, maxval=bound, dtype=jnp.float32)
    gamma = jnp.ones((C_OUT,), dtype=jnp.float32)   # BatchNorm2d weight
    beta = jnp.zeros((C_OUT,), dtype=jnp.float32)   # BatchNorm2d bias

    out = conv_module_forward(x, weight, gamma, beta, stride=STRIDE, padding=PADDING)
    out = jax.block_until_ready(out)
    assert out.shape == (N, C_OUT, H, W), out.shape

    # Tight check vs a reference fed the same bf16-rounded conv inputs
    # (the kernel's matmuls are bf16 x bf16 with f32 accumulation).
    xb = x.astype(jnp.bfloat16).astype(jnp.float32)
    wb = weight.astype(jnp.bfloat16).astype(jnp.float32)
    ref_bf16 = conv_module_reference(xb, wb, gamma, beta, stride=STRIDE, padding=PADDING)
    err = float(jnp.max(jnp.abs(out - ref_bf16)))
    assert err < 5e-3, err

    # Loose sanity check vs the pure-f32 reference (bf16 input rounding only).
    ref_f32 = conv_module_reference(x, weight, gamma, beta, stride=STRIDE, padding=PADDING)
    err32 = float(jnp.max(jnp.abs(out - ref_f32)))
    assert err32 < 6e-2, err32

    print("KERNEL_OK")
</pallas_src>

<mosaic_0001>
module attributes {stable_mosaic.version = 11 : i64} {
  func.func @conv_bn_stats_kernel(%arg0: i32, %arg1: memref<1x342x4xbf16, #tpu.memory_space<vmem>>, %arg2: memref<9x4x128xbf16, #tpu.memory_space<vmem>>, %arg3: memref<1x288x128xf32, #tpu.memory_space<vmem>>, %arg4: memref<1x8x128xf32, #tpu.memory_space<vmem>>, %arg5: memref<1x8x128xf32, #tpu.memory_space<vmem>>) attributes {dimension_semantics = [#tpu.dimension_semantics<parallel>], iteration_bounds = array<i64: 2>, scalar_prefetch = 0 : i64, scratch_operands = 0 : i64, tpu.core_type = #tpu.core_type<tc>, window_params = [{transform_indices = @transform_0, window_bounds = array<i64: 1, 342, 4>}, {pipeline_mode = #tpu.pipeline_mode<synchronous>, transform_indices = @transform_1, window_bounds = array<i64: 9, 4, 128>}, {transform_indices = @transform_2, window_bounds = array<i64: 1, 288, 128>}, {transform_indices = @transform_3, window_bounds = array<i64: 1, 8, 128>}, {transform_indices = @transform_4, window_bounds = array<i64: 1, 8, 128>}]} {
    %cst = arith.constant 0.000000e+00 : f32
    %0 = vector.broadcast %cst : f32 to vector<288x128xf32>
    %c0 = arith.constant 0 : index
    %c0_0 = arith.constant 0 : index
    %c0_1 = arith.constant 0 : index
    %1 = vector.load %arg1[%c0, %c0_0, %c0_1] : memref<1x342x4xbf16, #tpu.memory_space<vmem>>, vector<1x288x4xbf16>
    %2 = vector.shape_cast %1 : vector<1x288x4xbf16> to vector<288x4xbf16>
    %c0_2 = arith.constant 0 : index
    %c0_3 = arith.constant 0 : index
    %c0_4 = arith.constant 0 : index
    %3 = vector.load %arg2[%c0_2, %c0_3, %c0_4] : memref<9x4x128xbf16, #tpu.memory_space<vmem>>, vector<1x4x128xbf16>
    %4 = vector.shape_cast %3 : vector<1x4x128xbf16> to vector<4x128xbf16>
    %cst_5 = arith.constant dense<0.000000e+00> : vector<288x128xf32>
    %5 = tpu.matmul %2, %4, %cst_5 {dimension_numbers = #tpu.dot_dimension_numbers<[1], [0], [0], [1], [0, 0, 1, 1], [], []>} : vector<288x4xbf16>, vector<4x128xbf16>, vector<288x128xf32> -> vector<288x128xf32>
    %6 = arith.addf %0, %5 : vector<288x128xf32>
    %c0_6 = arith.constant 0 : index
    %c1 = arith.constant 1 : index
    %c0_7 = arith.constant 0 : index
    %7 = vector.load %arg1[%c0_6, %c1, %c0_7] : memref<1x342x4xbf16, #tpu.memory_space<vmem>>, vector<1x288x4xbf16>
    %8 = vector.shape_cast %7 : vector<1x288x4xbf16> to vector<288x4xbf16>
    %c1_8 = arith.constant 1 : index
    %c0_9 = arith.constant 0 : index
    %c0_10 = arith.constant 0 : index
    %9 = vector.load %arg2[%c1_8, %c0_9, %c0_10] : memref<9x4x128xbf16, #tpu.memory_space<vmem>>, vector<1x4x128xbf16>
    %10 = vector.shape_cast %9 : vector<1x4x128xbf16> to vector<4x128xbf16>
    %cst_11 = arith.constant dense<0.000000e+00> : vector<288x128xf32>
    %11 = tpu.matmul %8, %10, %cst_11 {dimension_numbers = #tpu.dot_dimension_numbers<[1], [0], [0], [1], [0, 0, 1, 1], [], []>} : vector<288x4xbf16>, vector<4x128xbf16>, vector<288x128xf32> -> vector<288x128xf32>
    %12 = arith.addf %6, %11 : vector<288x128xf32>
    %c0_12 = arith.constant 0 : index
    %c2 = arith.constant 2 : index
    %c0_13 = arith.constant 0 : index
    %13 = vector.load %arg1[%c0_12, %c2, %c0_13] : memref<1x342x4xbf16, #tpu.memory_space<vmem>>, vector<1x288x4xbf16>
    %14 = vector.shape_cast %13 : vector<1x288x4xbf16> to vector<288x4xbf16>
    %c2_14 = arith.constant 2 : index
    %c0_15 = arith.constant 0 : index
    %c0_16 = arith.constant 0 : index
    %15 = vector.load %arg2[%c2_14, %c0_15, %c0_16] : memref<9x4x128xbf16, #tpu.memory_space<vmem>>, vector<1x4x128xbf16>
    %16 = vector.shape_cast %15 : vector<1x4x128xbf16> to vector<4x128xbf16>
    %cst_17 = arith.constant dense<0.000000e+00> : vector<288x128xf32>
    %17 = tpu.matmul %14, %16, %cst_17 {dimension_numbers = #tpu.dot_dimension_numbers<[1], [0], [0], [1], [0, 0, 1, 1], [], []>} : vector<288x4xbf16>, vector<4x128xbf16>, vector<288x128xf32> -> vector<288x128xf32>
    %18 = arith.addf %12, %17 : vector<288x128xf32>
    %c0_18 = arith.constant 0 : index
    %c18 = arith.constant 18 : index
    %c0_19 = arith.constant 0 : index
    %19 = vector.load %arg1[%c0_18, %c18, %c0_19] : memref<1x342x4xbf16, #tpu.memory_space<vmem>>, vector<1x288x4xbf16>
    %20 = vector.shape_cast %19 : vector<1x288x4xbf16> to vector<288x4xbf16>
    %c3 = arith.constant 3 : index
    %c0_20 = arith.constant 0 : index
    %c0_21 = arith.constant 0 : index
    %21 = vector.load %arg2[%c3, %c0_20, %c0_21] : memref<9x4x128xbf16, #tpu.memory_space<vmem>>, vector<1x4x128xbf16>
    %22 = vector.shape_cast %21 : vector<1x4x128xbf16> to vector<4x128xbf16>
    %cst_22 = arith.constant dense<0.000000e+00> : vector<288x128xf32>
    %23 = tpu.matmul %20, %22, %cst_22 {dimension_numbers = #tpu.dot_dimension_numbers<[1], [0], [0], [1], [0, 0, 1, 1], [], []>} : vector<288x4xbf16>, vector<4x128xbf16>, vector<288x128xf32> -> vector<288x128xf32>
    %24 = arith.addf %18, %23 : vector<288x128xf32>
    %c0_23 = arith.constant 0 : index
    %c19 = arith.constant 19 : index
    %c0_24 = arith.constant 0 : index
    %25 = vector.load %arg1[%c0_23, %c19, %c0_24] : memref<1x342x4xbf16, #tpu.memory_space<vmem>>, vector<1x288x4xbf16>
    %26 = vector.shape_cast %25 : vector<1x288x4xbf16> to vector<288x4xbf16>
    %c4 = arith.constant 4 : index
    %c0_25 = arith.constant 0 : index
    %c0_26 = arith.constant 0 : index
    %27 = vector.load %arg2[%c4, %c0_25, %c0_26] : memref<9x4x128xbf16, #tpu.memory_space<vmem>>, vector<1x4x128xbf16>
    %28 = vector.shape_cast %27 : vector<1x4x128xbf16> to vector<4x128xbf16>
    %cst_27 = arith.constant dense<0.000000e+00> : vector<288x128xf32>
    %29 = tpu.matmul %26, %28, %cst_27 {dimension_numbers = #tpu.dot_dimension_numbers<[1], [0], [0], [1], [0, 0, 1, 1], [], []>} : vector<288x4xbf16>, vector<4x128xbf16>, vector<288x128xf32> -> vector<288x128xf32>
    %30 = arith.addf %24, %29 : vector<288x128xf32>
    %c0_28 = arith.constant 0 : index
    %c20 = arith.constant 20 : index
    %c0_29 = arith.constant 0 : index
    %31 = vector.load %arg1[%c0_28, %c20, %c0_29] : memref<1x342x4xbf16, #tpu.memory_space<vmem>>, vector<1x288x4xbf16>
    %32 = vector.shape_cast %31 : vector<1x288x4xbf16> to vector<288x4xbf16>
    %c5 = arith.constant 5 : index
    %c0_30 = arith.constant 0 : index
    %c0_31 = arith.constant 0 : index
    %33 = vector.load %arg2[%c5, %c0_30, %c0_31] : memref<9x4x128xbf16, #tpu.memory_space<vmem>>, vector<1x4x128xbf16>
    %34 = vector.shape_cast %33 : vector<1x4x128xbf16> to vector<4x128xbf16>
    %cst_32 = arith.constant dense<0.000000e+00> : vector<288x128xf32>
    %35 = tpu.matmul %32, %34, %cst_32 {dimension_numbers = #tpu.dot_dimension_numbers<[1], [0], [0], [1], [0, 0, 1, 1], [], []>} : vector<288x4xbf16>, vector<4x128xbf16>, vector<288x128xf32> -> vector<288x128xf32>
    %36 = arith.addf %30, %35 : vector<288x128xf32>
    %c0_33 = arith.constant 0 : index
    %c36 = arith.constant 36 : index
    %c0_34 = arith.constant 0 : index
    %37 = vector.load %arg1[%c0_33, %c36, %c0_34] : memref<1x342x4xbf16, #tpu.memory_space<vmem>>, vector<1x288x4xbf16>
    %38 = vector.shape_cast %37 : vector<1x288x4xbf16> to vector<288x4xbf16>
    %c6 = arith.constant 6 : index
    %c0_35 = arith.constant 0 : index
    %c0_36 = arith.constant 0 : index
    %39 = vector.load %arg2[%c6, %c0_35, %c0_36] : memref<9x4x128xbf16, #tpu.memory_space<vmem>>, vector<1x4x128xbf16>
    %40 = vector.shape_cast %39 : vector<1x4x128xbf16> to vector<4x128xbf16>
    %cst_37 = arith.constant dense<0.000000e+00> : vector<288x128xf32>
    %41 = tpu.matmul %38, %40, %cst_37 {dimension_numbers = #tpu.dot_dimension_numbers<[1], [0], [0], [1], [0, 0, 1, 1], [], []>} : vector<288x4xbf16>, vector<4x128xbf16>, vector<288x128xf32> -> vector<288x128xf32>
    %42 = arith.addf %36, %41 : vector<288x128xf32>
    %c0_38 = arith.constant 0 : index
    %c37 = arith.constant 37 : index
    %c0_39 = arith.constant 0 : index
    %43 = vector.load %arg1[%c0_38, %c37, %c0_39] : memref<1x342x4xbf16, #tpu.memory_space<vmem>>, vector<1x288x4xbf16>
    %44 = vector.shape_cast %43 : vector<1x288x4xbf16> to vector<288x4xbf16>
    %c7 = arith.constant 7 : index
    %c0_40 = arith.constant 0 : index
    %c0_41 = arith.constant 0 : index
    %45 = vector.load %arg2[%c7, %c0_40, %c0_41] : memref<9x4x128xbf16, #tpu.memory_space<vmem>>, vector<1x4x128xbf16>
    %46 = vector.shape_cast %45 : vector<1x4x128xbf16> to vector<4x128xbf16>
    %cst_42 = arith.constant dense<0.000000e+00> : vector<288x128xf32>
    %47 = tpu.matmul %44, %46, %cst_42 {dimension_numbers = #tpu.dot_dimension_numbers<[1], [0], [0], [1], [0, 0, 1, 1], [], []>} : vector<288x4xbf16>, vector<4x128xbf16>, vector<288x128xf32> -> vector<288x128xf32>
    %48 = arith.addf %42, %47 : vector<288x128xf32>
    %c0_43 = arith.constant 0 : index
    %c38 = arith.constant 38 : index
    %c0_44 = arith.constant 0 : index
    %49 = vector.load %arg1[%c0_43, %c38, %c0_44] : memref<1x342x4xbf16, #tpu.memory_space<vmem>>, vector<1x288x4xbf16>
    %50 = vector.shape_cast %49 : vector<1x288x4xbf16> to vector<288x4xbf16>
    %c8 = arith.constant 8 : index
    %c0_45 = arith.constant 0 : index
    %c0_46 = arith.constant 0 : index
    %51 = vector.load %arg2[%c8, %c0_45, %c0_46] : memref<9x4x128xbf16, #tpu.memory_space<vmem>>, vector<1x4x128xbf16>
    %52 = vector.shape_cast %51 : vector<1x4x128xbf16> to vector<4x128xbf16>
    %cst_47 = arith.constant dense<0.000000e+00> : vector<288x128xf32>
    %53 = tpu.matmul %50, %52, %cst_47 {dimension_numbers = #tpu.dot_dimension_numbers<[1], [0], [0], [1], [0, 0, 1, 1], [], []>} : vector<288x4xbf16>, vector<4x128xbf16>, vector<288x128xf32> -> vector<288x128xf32>
    %54 = arith.addf %48, %53 : vector<288x128xf32>
    %c0_48 = arith.constant 0 : index
    %c0_49 = arith.constant 0 : index
    %c0_50 = arith.constant 0 : index
    %55 = vector.load %arg3[%c0_48, %c0_49, %c0_50] : memref<1x288x128xf32, #tpu.memory_space<vmem>>, vector<1x288x128xf32>
    %56 = vector.shape_cast %55 : vector<1x288x128xf32> to vector<288x128xf32>
    %57 = vector.shape_cast %54 : vector<288x128xf32> to vector<1x288x128xf32>
    tpu.vector_store %arg3[%c0_48, %c0_49, %c0_50], %57 {strides = array<i32>} : memref<1x288x128xf32, #tpu.memory_space<vmem>>, vector<1x288x128xf32>,
    %58 = tpu.iota {dimensions = array<i32: 0>} : vector<288x1xi32>
    %c18_i32 = arith.constant 18 : i32
    %c0_i32 = arith.constant 0 : i32
    %59 = arith.cmpi eq, %c18_i32, %c0_i32 : i32
    %c1_i32 = arith.constant 1 : i32
    %60 = arith.select %59, %c1_i32, %c18_i32 : i32
    %61 = vector.broadcast %60 : i32 to vector<288x1xi32>
    %62 = arith.remsi %58, %61 : vector<288x1xi32>
    %c0_i32_51 = arith.constant 0 : i32
    %63 = vector.broadcast %c0_i32_51 : i32 to vector<288x1xi32>
    %64 = arith.cmpi ne, %62, %63 : vector<288x1xi32>
    %c0_i32_52 = arith.constant 0 : i32
    %65 = vector.broadcast %c0_i32_52 : i32 to vector<288x1xi32>
    %66 = arith.cmpi slt, %62, %65 : vector<288x1xi32>
    %c0_i32_53 = arith.constant 0 : i32
    %67 = arith.cmpi slt, %60, %c0_i32_53 : i32
    %68 = vector.broadcast %67 : i1 to vector<288x1xi1>
    %69 = vector.broadcast %68 : vector<288x1xi1> to vector<288x1xi1>
    %70 = arith.xori %66, %69 : vector<288x1xi1>
    %71 = arith.andi %70, %64 : vector<288x1xi1>
    %72 = vector.broadcast %60 : i32 to vector<288x1xi32>
    %73 = arith.addi %62, %72 : vector<288x1xi32>
    %74 = arith.select %71, %73, %62 : vector<288x1xi1>, vector<288x1xi32>
    %c16_i32 = arith.constant 16 : i32
    %75 = vector.broadcast %c16_i32 : i32 to vector<288x1xi32>
    %76 = arith.cmpi slt, %74, %75 : vector<288x1xi32>
    %cst_54 = arith.constant 0.000000e+00 : f32
    %77 = vector.shape_cast %76 : vector<288x1xi1> to vector<288x1xi1>
    %78 = vector.broadcast %77 : vector<288x1xi1> to vector<288x128xi1>
    %79 = vector.broadcast %cst_54 : f32 to vector<288x128xf32>
    %80 = arith.select %78, %54, %79 : vector<288x128xi1>, vector<288x128xf32>
    %cst_55 = arith.constant dense<0.000000e+00> : vector<128xf32>
    %81 = vector.multi_reduction <add>, %80, %cst_55 [0] : vector<288x128xf32> to vector<128xf32>
    %82 = vector.shape_cast %81 : vector<128xf32> to vector<1x128xf32>
    %cst_56 = arith.constant 3.906250e-03 : f32
    %83 = vector.broadcast %cst_56 : f32 to vector<1x128xf32>
    %84 = arith.mulf %82, %83 : vector<1x128xf32>
    %85 = vector.broadcast %84 : vector<1x128xf32> to vector<288x128xf32>
    %86 = arith.subf %54, %85 : vector<288x128xf32>
    %cst_57 = arith.constant 0.000000e+00 : f32
    %87 = vector.shape_cast %76 : vector<288x1xi1> to vector<288x1xi1>
    %88 = vector.broadcast %87 : vector<288x1xi1> to vector<288x128xi1>
    %89 = vector.broadcast %cst_57 : f32 to vector<288x128xf32>
    %90 = arith.select %88, %86, %89 : vector<288x128xi1>, vector<288x128xf32>
    %91 = arith.mulf %90, %90 : vector<288x128xf32>
    %cst_58 = arith.constant dense<0.000000e+00> : vector<128xf32>
    %92 = vector.multi_reduction <add>, %91, %cst_58 [0] : vector<288x128xf32> to vector<128xf32>
    %93 = vector.shape_cast %92 : vector<128xf32> to vector<1x128xf32>
    %94 = vector.shape_cast %84 : vector<1x128xf32> to vector<1x1x128xf32>
    %95 = vector.shape_cast %94 : vector<1x1x128xf32> to vector<1x1x128xf32>
    %96 = vector.broadcast %95 : vector<1x1x128xf32> to vector<1x8x128xf32>
    %c0_59 = arith.constant 0 : index
    %c0_60 = arith.constant 0 : index
    %c0_61 = arith.constant 0 : index
    %97 = vector.load %arg4[%c0_59, %c0_60, %c0_61] : memref<1x8x128xf32, #tpu.memory_space<vmem>>, vector<1x8x128xf32>
    tpu.vector_store %arg4[%c0_59, %c0_60, %c0_61], %96 {strides = array<i32>} : memref<1x8x128xf32, #tpu.memory_space<vmem>>, vector<1x8x128xf32>,
    %98 = vector.shape_cast %93 : vector<1x128xf32> to vector<1x1x128xf32>
    %99 = vector.shape_cast %98 : vector<1x1x128xf32> to vector<1x1x128xf32>
    %100 = vector.broadcast %99 : vector<1x1x128xf32> to vector<1x8x128xf32>
    %c0_62 = arith.constant 0 : index
    %c0_63 = arith.constant 0 : index
    %c0_64 = arith.constant 0 : index
    %101 = vector.load %arg5[%c0_62, %c0_63, %c0_64] : memref<1x8x128xf32, #tpu.memory_space<vmem>>, vector<1x8x128xf32>
    tpu.vector_store %arg5[%c0_62, %c0_63, %c0_64], %100 {strides = array<i32>} : memref<1x8x128xf32, #tpu.memory_space<vmem>>, vector<1x8x128xf32>,
    return
  }
  func.func @transform_0(%arg0: i32) -> (i32, i32, i32) {
    %c0_i32 = arith.constant 0 : i32
    %c0_i32_0 = arith.constant 0 : i32
    %c0_i32_1 = arith.constant 0 : i32
    return %arg0, %c0_i32, %c0_i32_0 : i32, i32, i32
  }
  func.func @transform_1(%arg0: i32) -> (i32, i32, i32) {
    %c0_i32 = arith.constant 0 : i32
    %c0_i32_0 = arith.constant 0 : i32
    %c0_i32_1 = arith.constant 0 : i32
    %c0_i32_2 = arith.constant 0 : i32
    return %c0_i32, %c0_i32_0, %c0_i32_1 : i32, i32, i32
  }
  func.func @transform_2(%arg0: i32) -> (i32, i32, i32) {
    %c0_i32 = arith.constant 0 : i32
    %c0_i32_0 = arith.constant 0 : i32
    %c0_i32_1 = arith.constant 0 : i32
    return %arg0, %c0_i32, %c0_i32_0 : i32, i32, i32
  }
  func.func @transform_3(%arg0: i32) -> (i32, i32, i32) {
    %c0_i32 = arith.constant 0 : i32
    %c0_i32_0 = arith.constant 0 : i32
    %c0_i32_1 = arith.constant 0 : i32
    return %arg0, %c0_i32, %c0_i32_0 : i32, i32, i32
  }
  func.func @transform_4(%arg0: i32) -> (i32, i32, i32) {
    %c0_i32 = arith.constant 0 : i32
    %c0_i32_0 = arith.constant 0 : i32
    %c0_i32_1 = arith.constant 0 : i32
    return %arg0, %c0_i32, %c0_i32_0 : i32, i32, i32
  }
}

</mosaic_0001>

<bundles_post_ra>
// kernel: conv_module_forward.1
= control target key start
LH: loop header
LB: loop body
LE: loop exit
PB: predicated region body
PF: predicated region fallthrough
CT: control target
= control target key end

     0   :  { %s5716_s15 = smov 0   ;;  %s8759_s0 = inlined_call_operand.vmem [shape: bf16[2,342,4], index: 0, kind: input, shape index: {}]   ;;  %s8760_s1 = inlined_call_operand.vmem [shape: bf16[9,4,128], index: 1, kind: input, shape index: {}]   ;;  %s8761_s2 = inlined_call_operand.vmem [shape: f32[2,288,128], index: 2, kind: output, shape index: {0}]   ;;  %s8762_s3 = inlined_call_operand.vmem [shape: f32[2,8,128], index: 3, kind: output, shape index: {1}]   ;;  %s8763_s4 = inlined_call_operand.vmem [shape: f32[2,8,128], index: 4, kind: output, shape index: {2}]  }
   0x1 LB: > { %s4771_s16 = sadd.s32 4294967295, %s5689_s15   ;;  %p4775_p0 = scmp.ge.s32.totalorder %s5689_s15, 1  ;;  %s5689_s15 = sphi %s5716_s15, %s15_s15  }
   0x2   : > { %p167_p1 = scmp.lt.s32.totalorder %s5689_s15, 3 }
   0x4   : > { %p168_p2 = pnand %p4775_p0, %p167_p1 }
   0x6   : > { %171 = sbr.rel (%p168_p2) target bundleno = 693 (0x2b5), region = 28 }
   0xb   : > { %v4780_v0 = vld [vmem:[%s8760_s1 + $0x2] sm:$0x3]  ;;  %vm557_vm0 = vcmask 1041408   ;;  %p201_p3 = scmp.lt.s32.totalorder %s4771_s16, 1  ;;  %v4836_v2 = vld [vmem:[%s8760_s1 + $0x4] sm:$0x3] }
   0xc   : > { %5529 = vmatprep.subr.msk.bf16.mxu0 %vm557_vm0, %v4780_v0  ;;  %5530 = vmatprep.subr.msk.bf16.mxu1 %vm557_vm0, %v4780_v0  ;;  %v559_v1 = vsel %vm557_vm0, %v4780_v0, 0  ;;  %v256_v3 = vld [vmem:[%s8760_s1] sm:$0x3]  ;;  %vm353_vm1 = vsmask.f32 7424  ;;  %vm502_vm2 = vcmask 31744  }
   0xd   : > { %5186 = vmatpush3.bf16.msra.mxu0 %v559_v1  ;;  %5528 = vmatpush3.bf16.msra.mxu1 %v559_v1  ;;  %s9303_s16 = smov (!%p201_p3, %s4771_s16), 1  ;;  %v1053_v8 = vsel %vm557_vm0, %v4836_v2, 0  ;;  %v775_v16 = vsel %vm557_vm0, %v256_v3, 0  ;;  %v5789_v33 = vld [vmem:[%s8760_s1 + $0x8] sm:$0x3]  ;;  %vm960_vm3 = vcmask 1046528  }
   0xe   : > { %5532 = vmatprep.subr.msk.bf16.mxu0 %vm557_vm0, %v4836_v2  ;;  %5531 = vmatprep.subr.msk.bf16.mxu1 %vm557_vm0, %v256_v3  ;;  %s5539_s23 = smul.u32 172, %s9303_s16  ;;  %v5809_v45 = vld [vmem:[%s8760_s1 + $0x6] sm:$0x3]  ;;  %vm2160_vm4 = vcmask 1045504   ;;  %vm1713_vm5 = vsmask.f32 6400 }
   0xf   : > { %vm3360_vm6 = vcmask 1044480   ;;  %vm2913_vm7 = vsmask.f32 5376  ;;  %s5540_s13 = smul.u32 288, %s9303_s16  ;;  %s4778_s19 = sshll.u32 %s9303_s16, 3 }
  0x10   : > { %s5744_s26 = scalar_lea.vmem %s8759_s0, %s5539_s23  ;;  %s214_s22 = scalar_lea.vmem %s8762_s3, %s4778_s19 }
  0x11   : > { %v220_v4 = vld [vmem:[%s5744_s26] sm:$0xf]  ;;  %v5748_v5 = vld [vmem:[%s5744_s26 + $0x4] sm:$0xf]  ;;  %v5754_v7 = vld [vmem:[%s5744_s26 + $0x8] sm:$0xff]   ;;  %s7573_s18 = scalar_lea.vmem %s8761_s2, %s5540_s13  ;;  %s218_s25 = scalar_lea.vmem %s8763_s4, %s4778_s19 }
  0x12   : > { %v5751_v6 = vcombine.low %v220_v4, %v5748_v5  ;;  %v362_v11 = vshll.u32 %v5754_v7, 16  ;;  %v366_v12 = vshrl.u32 %v5754_v7, 16  ;;  %v5762_v13 = vld [vmem:[%s5744_s26 + $0x50] sm:$0xff]   ;;  %v5765_v14 = vld [vmem:[%s5744_s26 + $0x58] sm:$0xff]   ;;  %v5777_v24 = vld [vmem:[%s5744_s26 + $0x60] sm:$0xff]  }
  0x13   : > { %v5768_v15 = vld [vmem:[%s5744_s26 + $0x10] sm:$0xff]   ;;  %v434_v19 = vshll.u32 %v5762_v13, 16  ;;  %v438_v20 = vshrl.u32 %v5762_v13, 16  ;;  %v442_v21 = vshll.u32 %v5765_v14, 16  ;;  %v446_v22 = vshrl.u32 %v5765_v14, 16  ;;  %v5782_v28 = vld [vmem:[%s5744_s26 + $0x18] sm:$0xff]  }
  0x14   : > { %v355_v9 = vshrl.u32 %v5751_v6, 16  ;;  %v357_v10 = vshll.u32 %v5751_v6, 16  ;;  %v364_v18 = vrot.slane %v362_v11, 1  ;;  %v370_v23 = vshll.u32 %v5768_v15, 16  ;;  %v5795_v37 = vld [vmem:[%s5744_s26 + $0x68] sm:$0xff]   ;;  %v5799_v39 = vld [vmem:[%s5744_s26 + $0x20] sm:$0xff]  }
  0x15   : > { %v5779_v27 = vrot.slane %v434_v19, 1  ;;  %v444_v29 = vrot.slane %v442_v21, 1  ;;  %v450_v31 = vshll.u32 %v5777_v24, 16  ;;  %v374_v32 = vshrl.u32 %v5768_v15, 16  ;;  %v5804_v44 = vld [vmem:[%s5744_s26 + $0x70] sm:$0xff]   ;;  %v5816_v50 = vld [vmem:[%s5744_s26 + $0x28] sm:$0xff]  }
  0x16   : > { %v359_v17 = vrot.slane %v357_v10, 1  ;;  %v368_v26 = vor.u32 %v366_v12, %v364_v18  ;;  %v372_v30 = vrot.slane %v370_v23, 1  ;;  %v378_v36 = vshll.u32 %v5782_v28, 16  ;;  %v5831_v62 = vld [vmem:[%s5744_s26 + $0x78] sm:$0xff]   ;;  %v5841_v10 = vld [vmem:[%s5744_s26 + $0x30] sm:$0xff]   ;;  %v5844_v11 = vld [vmem:[%s5744_s26 + $0x80] sm:$0xff]  }
  0x17   : > { %v440_v35 = vor.u32 %v438_v20, %v5779_v27  ;;  %v454_v38 = vshrl.u32 %v5777_v24, 16  ;;  %v448_v40 = vor.u32 %v446_v22, %v444_v29  ;;  %v452_v42 = vrot.slane %v450_v31, 1  ;;  %v5853_v23 = vld [vmem:[%s5744_s26 + $0x38] sm:$0xff]  }
  0x18   : > { %v360_v25 = vor.u32 %v359_v17, %v355_v9  ;;  %v373_v41 = vsel %vm353_vm1, %v368_v26, %v372_v30  ;;  %v376_v43 = vor.u32 %v374_v32, %v372_v30  ;;  %v380_v47 = vrot.slane %v378_v36, 1  ;;  %v5858_v26 = vld [vmem:[%s5744_s26 + $0x88] sm:$0xff]  }
  0x19   : > { %v445_v46 = vsel %vm353_vm1, %v440_v35, %v444_v29  ;;  %v458_v48 = vshll.u32 %v5795_v37, 16  ;;  %v382_v49 = vshrl.u32 %v5782_v28, 16  ;;  %v453_v51 = vsel %vm353_vm1, %v448_v40, %v452_v42  ;;  %v5870_v40 = vld [vmem:[%s5744_s26 + $0x48] sm:$0xff]  }
  0x1a   : > { %v365_v34 = vsel %vm353_vm1, %v360_v25, %v364_v18  ;;  %5207 = vmatprep.mubr.msk.bf16.mxu1 %vm502_vm2, %v445_v46  ;;  %v456_v52 = vor.u32 %v454_v38, %v452_v42  ;;  %v386_v53 = vshll.u32 %v5799_v39, 16  ;;  %v462_v54 = vshrl.u32 %v5795_v37, 16  ;;  %v5867_v38 = vld [vmem:[%s5744_s26 + $0x40] sm:$0xff]  }
  0x1b   : > { %5187 = vmatprep.mubr.msk.bf16.mxu0 %vm502_vm2, %v365_v34  ;;  %5208 = vmatmul.mubr.msk.bf16.vlgmr.msra.gmra.mxu1 %vm502_vm2, %v453_v51  ;;  %v381_v55 = vsel %vm353_vm1, %v376_v43, %v380_v47  ;;  %v460_v56 = vrot.slane %v458_v48, 1  ;;  %v384_v57 = vor.u32 %v382_v49, %v380_v47  ;;  %v466_v58 = vshll.u32 %v5804_v44, 16  ;;  %v5638_v43 = vld [vmem:[%s5744_s26 + $0x90] ss:$0 sps:$4 sm:$0x11]  }
  0x1c   : > { %5188 = vmatmul.mubr.msk.bf16.vlgmr.msra.gmra.mxu0 %vm502_vm2, %v373_v41  ;;  %5224 = vmatpush3.bf16.msra.mxu1 %v775_v16  ;;  %v388_v59 = vrot.slane %v386_v53, 1  ;;  %v390_v60 = vshrl.u32 %v5799_v39, 16  ;;  %v394_v61 = vshll.u32 %v5816_v50, 16  ;;  %v470_v2 = vshrl.u32 %v5804_v44, 16 }
  0x1d   : > { %5262 = vmatpush3.bf16.msra.mxu0 %v1053_v8  ;;  %5191 = vmatprep.mubr.msk.bf16.mxu0 %vm502_vm2, %v381_v55  ;;  %v461_v63 = vsel %vm353_vm1, %v456_v52, %v460_v56  ;;  %v464_v0 = vor.u32 %v462_v54, %v460_v56  ;;  %v468_v1 = vrot.slane %v466_v58, 1  ;;  %v474_v9 = vshll.u32 %v5831_v62, 16 }
  0x1e   : > { %5534 = vmatprep.subr.msk.bf16.mxu0 %vm557_vm0, %v5789_v33  ;;  %5533 = vmatprep.subr.msk.bf16.mxu1 %vm557_vm0, %v5809_v45  ;;  %v389_v3 = vsel %vm353_vm1, %v384_v57, %v388_v59  ;;  %v392_v4 = vor.u32 %v390_v60, %v388_v59  ;;  %v396_v8 = vrot.slane %v394_v61, 1  ;;  %v398_v17 = vshrl.u32 %v5816_v50, 16 }
  0x1f   : > { %5211 = vmatprep.mubr.msk.bf16.mxu1 %vm502_vm2, %v461_v63  ;;  %v469_v12 = vsel %vm353_vm1, %v464_v0, %v468_v1  ;;  %v472_v16 = vor.u32 %v470_v2, %v468_v1  ;;  %v478_v18 = vshrl.u32 %v5831_v62, 16  ;;  %v476_v20 = vrot.slane %v474_v9, 1  ;;  %v954_v63 = vld [vmem:[%s5744_s26] sm:$0xe] }
  0x20   : > { %v397_v19 = vsel %vm353_vm1, %v392_v4, %v396_v8  ;;  %v402_v21 = vshll.u32 %v5841_v10, 16  ;;  %v482_v22 = vshll.u32 %v5844_v11, 16  ;;  %v406_v25 = vshrl.u32 %v5841_v10, 16 }
  0x21   : > { %v477_v29 = vsel %vm353_vm1, %v472_v16, %v476_v20  ;;  %v400_v30 = vor.u32 %v398_v17, %v396_v8  ;;  %v410_v34 = vshll.u32 %v5853_v23, 16  ;;  %v486_v35 = vshrl.u32 %v5844_v11, 16 }
  0x22   : > { %v404_v31 = vrot.slane %v402_v21, 1  ;;  %v484_v32 = vrot.slane %v482_v22, 1  ;;  %v490_v36 = vshll.u32 %v5858_v26, 16  ;;  %v480_v41 = vor.u32 %v478_v18, %v476_v20 }
  0x23   : > { %5212 = vmatmul.mubr.msk.bf16.gmra.mxu1 %vm502_vm2, %v469_v12  ;;  %v412_v46 = vrot.slane %v410_v34, 1  ;;  %v418_v49 = vshll.u32 %v5867_v38, 16  ;;  %v414_v52 = vshrl.u32 %v5853_v23, 16  ;;  %v422_v54 = vshrl.u32 %v5867_v38, 16 }
  0x24   : > { %5192 = vmatmul.mubr.msk.bf16.gmra.mxu0 %vm502_vm2, %v389_v3  ;;  %5215 = vmatprep.mubr.msk.bf16.mxu1 %vm502_vm2, %v477_v29  ;;  %v408_v42 = vor.u32 %v406_v25, %v404_v31  ;;  %v488_v47 = vor.u32 %v486_v35, %v484_v32  ;;  %v492_v48 = vrot.slane %v490_v36, 1  ;;  %v405_v51 = vsel %vm353_vm1, %v400_v30, %v404_v31 }
  0x25   : > { %5195 = vmatprep.mubr.msk.bf16.mxu0 %vm502_vm2, %v397_v19  ;;  %v426_v55 = vshll.u32 %v5870_v40, 16  ;;  %v485_v56 = vsel %vm353_vm1, %v480_v41, %v484_v32  ;;  %v494_v57 = vshrl.u32 %v5858_v26, 16  ;;  %v498_v58 = vshll.u32 %v5638_v43, 16 }
  0x26   : > { %v413_v53 = vsel %vm353_vm1, %v408_v42, %v412_v46  ;;  %v493_v59 = vsel %vm353_vm1, %v488_v47, %v492_v48  ;;  %v420_v60 = vrot.slane %v418_v49, 1  ;;  %v416_v61 = vor.u32 %v414_v52, %v412_v46  ;;  %v5969_v46 = vld [vmem:[%s5744_s26 + $0x10] sm:$0xff]   ;;  %v5974_v49 = vld [vmem:[%s5744_s26 + $0x18] sm:$0xff]  }
  0x27   : > { %v428_v1 = vrot.slane %v426_v55, 1  ;;  %v496_v2 = vor.u32 %v494_v57, %v492_v48  ;;  %v500_v3 = vrot.slane %v498_v58, 1  ;;  %v430_v8 = vshrl.u32 %v5870_v40, 16  ;;  %v5987_v55 = vld [vmem:[%s5744_s26 + $0x30] sm:$0xff]  }
  0x28   : > { %v424_v0 = vor.u32 %v422_v54, %v420_v60  ;;  %v421_v4 = vsel %vm353_vm1, %v416_v61, %v420_v60  ;;  %v4837_v12 = vcombine.low %v954_v63, %v5748_v5  ;;  %v994_v17 = vrot.slane %v5858_v26, 1  ;;  %v6002_v61 = vld [vmem:[%s5744_s26 + $0x38] sm:$0xff]  }
  0x29   : > { %v501_v16 = vsel %vm353_vm1, %v496_v2, %v500_v3  ;;  %v432_v18 = vor.u32 %v430_v8, %v428_v1  ;;  %v996_v19 = vrot.slane %v5638_v43, 1  ;;  %v962_v21 = vrot.slane %v5754_v7, 1  ;;  %v2154_v43 = vld [vmem:[%s5744_s26 + $0x8] sm:$0xc]  ;;  %v6012_v2 = vld [vmem:[%s5744_s26 + $0x40] sm:$0xff]  }
  0x2a   : > { %v429_v9 = vsel %vm353_vm1, %v424_v0, %v428_v1  ;;  %v961_v20 = vrot.slane %v4837_v12, 1  ;;  %v1492_v29 = vsel %vm557_vm0, %v5809_v45, 0  ;;  %v964_v30 = vrot.slane %v5768_v15, 1  ;;  %v6020_v8 = vld [vmem:[%s5744_s26 + $0x48] sm:$0xff]  }
  0x2b   : > { %5216 = vmatmul.mubr.msk.bf16.gmra.mxu1 %vm502_vm2, %v485_v56  ;;  %v5903_v5 = vsel %vm960_vm3, %v994_v17, %v996_v19  ;;  %v437_v22 = vsel %vm353_vm1, %v432_v18, %v5779_v27  ;;  %v966_v27 = vrot.slane %v5782_v28, 1  ;;  %v1939_v31 = vsel %vm557_vm0, %v5789_v33, 0 }
  0x2c   : > { %5196 = vmatmul.mubr.msk.bf16.gmra.mxu0 %vm502_vm2, %v405_v51  ;;  %5219 = vmatprep.mubr.msk.bf16.mxu1 %vm502_vm2, %v493_v59  ;;  %v963_v25 = vsel %vm960_vm3, %v961_v20, %v962_v21  ;;  %v965_v45 = vsel %vm960_vm3, %v962_v21, %v964_v30  ;;  %v970_v34 = vrot.slane %v5816_v50, 1  ;;  %v974_v36 = vrot.slane %v5853_v23, 1  ;;  %v5978_v51 = vld [vmem:[%s5744_s26 + $0x20] sm:$0xff]  }
  0x2d   : > { %5199 = vmatprep.mubr.msk.bf16.mxu0 %vm502_vm2, %v413_v53  ;;  %v967_v32 = vsel %vm960_vm3, %v964_v30, %v966_v27  ;;  %v976_v42 = vrot.slane %v5867_v38, 1  ;;  %v2162_v53 = vrot.slane %v5969_v46, 2  ;;  %v2164_v54 = vrot.slane %v5974_v49, 2  ;;  %v6050_v30 = vld [vmem:[%s5744_s26 + $0x58] sm:$0xff]  }
  0x2e   : > { %v2166_v57 = vrot.slane %v5978_v51, 2  ;;  %v980_v58 = vrot.slane %v5762_v13, 1  ;;  %v982_v59 = vrot.slane %v5765_v14, 1  ;;  %v2170_v1 = vrot.slane %v5987_v55, 2 }
  0x2f   : > { %v977_v48 = vsel %vm960_vm3, %v974_v36, %v976_v42  ;;  %v5997_v60 = vsel %vm2160_vm4, %v2162_v53, %v2164_v54  ;;  %v2176_v18 = vrot.slane %v6020_v8, 2  ;;  %v984_v20 = vrot.slane %v5777_v24, 1 }
  0x30   : > { %v6005_v63 = vsel %vm2160_vm4, %v2164_v54, %v2166_v57 }
  0x33   : > { %5220 = vmatmul.mubr.msk.bf16.gmra.mxu1 %vm502_vm2, %v501_v16  ;;  %v2174_v16 = vrot.slane %v6012_v2, 2 }
  0x34   : > { %5200 = vmatmul.mubr.msk.bf16.gmra.mxu0 %vm502_vm2, %v421_v4  ;;  %5225 = vmatprep.mubr.msk.bf16.mxu1 %vm502_vm2, %v5751_v6  ;;  %v5916_v6 = vld [vmem:[%s8760_s1 + $0xa] sm:$0x3]  ;;  %v2172_v4 = vrot.slane %v6002_v61, 2 }
  0x35   : > { %5203 = vmatprep.mubr.msk.bf16.mxu0 %vm502_vm2, %v429_v9  ;;  %v6038_v21 = vsel %vm2160_vm4, %v2174_v16, %v2176_v18 }
  0x36   : > { %v6027_v12 = vsel %vm2160_vm4, %v2170_v1, %v2172_v4  ;;  %v6033_v19 = vsel %vm2160_vm4, %v2172_v4, %v2174_v16 }
  0x3b   : > { %5226 = vmatmul.mubr.msk.bf16.vlgmr.msra.gmra.mxu1 %vm502_vm2, %v5754_v7  ;;  %v5932_v7 = vld [vmem:[%s8760_s1 + $0xc] sm:$0x3] }
  0x3c   : > { %5204 = vmatmul.mubr.msk.bf16.gmra.mxu0 %vm502_vm2, %v437_v22  ;;  %5300 = vmatpush3.bf16.msra.mxu1 %v1492_v29  ;;  %v986_v22 = vrot.slane %v5795_v37, 1  ;;  %v985_v29 = vsel %vm960_vm3, %v982_v59, %v984_v20 }
  0x3d   : > { %5263 = vmatprep.mubr.msk.bf16.mxu0 %vm502_vm2, %v963_v25  ;;  %5229 = vmatprep.mubr.msk.bf16.mxu1 %vm502_vm2, %v5768_v15  ;;  %v968_v15 = vrot.slane %v5799_v39, 1  ;;  %v6046_v25 = vld [vmem:[%s5744_s26 + $0x50] sm:$0xff]  }
  0x3e   : > { %5535 = vmatprep.subr.msk.bf16.mxu1 %vm557_vm0, %v5916_v6 }
  0x3f   : > { %v969_v33 = vsel %vm960_vm3, %v966_v27, %v968_v15  ;;  %v971_v35 = vsel %vm960_vm3, %v968_v15, %v970_v34  ;;  %v987_v27 = vsel %vm960_vm3, %v984_v20, %v986_v22  ;;  %v990_v15 = vrot.slane %v5831_v62, 1 }
  0x43   : > { %5230 = vmatmul.mubr.msk.bf16.gmra.mxu1 %vm502_vm2, %v5782_v28  ;;  %v972_v28 = vrot.slane %v5841_v10, 1 }
  0x44   : > { %5264 = vmatmul.mubr.msk.bf16.vlgmr.msra.gmra.mxu0 %vm502_vm2, %v965_v45  ;;  %5233 = vmatprep.mubr.msk.bf16.mxu1 %vm502_vm2, %v5799_v39  ;;  %v2178_v45 = vrot.slane %v6046_v25, 2 }
  0x45   : > { %5338 = vmatpush3.bf16.msra.mxu0 %v1939_v31  ;;  %5267 = vmatprep.mubr.msk.bf16.mxu0 %vm502_vm2, %v967_v32  ;;  %v973_v39 = vsel %vm960_vm3, %v970_v34, %v972_v28  ;;  %v975_v41 = vsel %vm960_vm3, %v972_v28, %v974_v36  ;;  %v1268_v34 = vld [vmem:[%s5744_s26 + $0x8] sm:$0xe] }
  0x46   : > { %5536 = vmatprep.subr.msk.bf16.mxu0 %vm557_vm0, %v5932_v7  ;;  %v6057_v31 = vsel %vm2160_vm4, %v2176_v18, %v2178_v45  ;;  %v6075_v28 = vld [vmem:[%s5744_s26 + $0x68] sm:$0xff]  }
  0x4b   : > { %5234 = vmatmul.mubr.msk.bf16.gmra.mxu1 %vm502_vm2, %v5816_v50  ;;  %v978_v50 = vrot.slane %v5870_v40, 1 }
  0x4c   : > { %5268 = vmatmul.mubr.msk.bf16.gmra.mxu0 %vm502_vm2, %v969_v33  ;;  %5237 = vmatprep.mubr.msk.bf16.mxu1 %vm502_vm2, %v5841_v10  ;;  %v5966_v10 = vld [vmem:[%s5744_s26 + $0xc] sm:$0xf]  ;;  %v6071_v33 = vld [vmem:[%s5744_s26 + $0x60] sm:$0xff]  }
  0x4d   : > { %5271 = vmatprep.mubr.msk.bf16.mxu0 %vm502_vm2, %v971_v35  ;;  %v4915_v47 = vcombine.low %v2154_v43, %v5966_v10 }
  0x4f   : > { %v2161_v52 = vrot.slane %v4915_v47, 2  ;;  %v1723_v47 = vshrl.u32 %v5969_v46, 16 }
  0x51   : > { %v5990_v56 = vsel %vm2160_vm4, %v2161_v52, %v2162_v53  ;;  %v1401_v52 = vrot.slane %v5969_v46, 1  ;;  %v6098_v53 = vld [vmem:[%s5744_s26 + $0x70] sm:$0xff]  }
  0x52   : > { %v2186_v4 = vrot.slane %v6098_v53, 2 }
  0x53   : > { %5238 = vmatmul.mubr.msk.bf16.gmra.mxu1 %vm502_vm2, %v5853_v23  ;;  %v979_v23 = vsel %vm960_vm3, %v976_v42, %v978_v50  ;;  %v992_v42 = vrot.slane %v5844_v11, 1 }
  0x54   : > { %5272 = vmatmul.mubr.msk.bf16.gmra.mxu0 %vm502_vm2, %v973_v39  ;;  %5241 = vmatprep.mubr.msk.bf16.mxu1 %vm502_vm2, %v5867_v38  ;;  %v5982_v38 = vld [vmem:[%s5744_s26 + $0x28] sm:$0xff]   ;;  %v2182_v39 = vrot.slane %v6071_v33, 2 }
  0x55   : > { %5275 = vmatprep.mubr.msk.bf16.mxu0 %vm502_vm2, %v975_v41  ;;  %v2168_v0 = vrot.slane %v5982_v38, 2  ;;  %v4857_v41 = vcombine.low %v1268_v34, %v5966_v10  ;;  %v993_v54 = vsel %vm960_vm3, %v990_v15, %v992_v42  ;;  %v6131_v34 = vld [vmem:[%s5744_s26 + $0x88] sm:$0xff]  }
  0x57   : > { %v6015_v3 = vsel %vm2160_vm4, %v2166_v57, %v2168_v0  ;;  %v6023_v9 = vsel %vm2160_vm4, %v2168_v0, %v2170_v1  ;;  %v1715_v43 = vshrl.u32 %v4857_v41, 16  ;;  %v1718_v10 = vshll.u32 %v4857_v41, 16 }
  0x58   : > { %v995_v57 = vsel %vm960_vm3, %v992_v42, %v994_v17  ;;  %v1725_v0 = vrot.slane %v1723_v47, 1  ;;  %v1732_v17 = vshrl.u32 %v5974_v49, 16  ;;  %v1753_v47 = vshll.u32 %v5982_v38, 16 }
  0x5b   : > { %5242 = vmatmul.mubr.msk.bf16.gmra.mxu1 %vm502_vm2, %v5870_v40  ;;  %v981_v40 = vsel %vm960_vm3, %v978_v50, %v980_v58 }
  0x5c   : > { %5276 = vmatmul.mubr.msk.bf16.gmra.mxu0 %vm502_vm2, %v977_v48  ;;  %5245 = vmatprep.mubr.msk.bf16.mxu1 %vm502_vm2, %v5762_v13  ;;  %v983_v13 = vsel %vm960_vm3, %v980_v58, %v982_v59  ;;  %v1726_v48 = vshll.u32 %v5969_v46, 16  ;;  %v6105_v58 = vld [vmem:[%s5744_s26 + $0x78] sm:$0xff]   ;;  %v1720_v59 = vrot.slane %v1718_v10, 2  ;;  %v1750_v10 = vshrl.u32 %v5982_v38, 16 }
  0x5d   : > { %5279 = vmatprep.mubr.msk.bf16.mxu0 %vm502_vm2, %v979_v23  ;;  %v1400_v23 = vrot.slane %v4857_v41, 1 }
  0x5e   : > { %v1728_v1 = vrot.slane %v1726_v48, 2 }
  0x5f   : > { %v1402_v46 = vsel %vm960_vm3, %v1400_v23, %v1401_v52  ;;  %v1759_v23 = vshrl.u32 %v5987_v55, 16 }
  0x60   : > { %v1729_v20 = vor.u32 %v1728_v1, %v1725_v0  ;;  %v2692_v0 = vsel %vm557_vm0, %v5932_v7, 0  ;;  %v1752_v1 = vrot.slane %v1750_v10, 1 }
  0x63   : > { %5246 = vmatmul.mubr.msk.bf16.gmra.mxu1 %vm502_vm2, %v5765_v14  ;;  %v2180_v14 = vrot.slane %v6050_v30, 2 }
  0x64   : > { %5280 = vmatmul.mubr.msk.bf16.gmra.mxu0 %vm502_vm2, %v981_v40  ;;  %5249 = vmatprep.mubr.msk.bf16.mxu1 %vm502_vm2, %v5777_v24  ;;  %v988_v24 = vrot.slane %v5804_v44, 1 }
  0x65   : > { %5283 = vmatprep.mubr.msk.bf16.mxu0 %vm502_vm2, %v983_v13  ;;  %v6062_v32 = vsel %vm2160_vm4, %v2178_v45, %v2180_v14  ;;  %v1735_v13 = vshll.u32 %v5974_v49, 16  ;;  %v1405_v45 = vrot.slane %v5978_v51, 1 }
  0x66   : > { %v989_v35 = vsel %vm960_vm3, %v986_v22, %v988_v24  ;;  %v991_v36 = vsel %vm960_vm3, %v988_v24, %v990_v15  ;;  %v1741_v22 = vshrl.u32 %v5978_v51, 16  ;;  %v1734_v24 = vrot.slane %v1732_v17, 1 }
  0x67   : > { %v1737_v15 = vrot.slane %v1735_v13, 2  ;;  %v1761_v17 = vrot.slane %v1759_v23, 1 }
  0x6b   : > { %5250 = vmatmul.mubr.msk.bf16.gmra.mxu1 %vm502_vm2, %v5795_v37  ;;  %v2184_v37 = vrot.slane %v6075_v28, 2 }
  0x6c   : > { %5284 = vmatmul.mubr.msk.bf16.gmra.mxu0 %vm502_vm2, %v985_v29  ;;  %5253 = vmatprep.mubr.msk.bf16.mxu1 %vm502_vm2, %v5804_v44  ;;  %v6083_v44 = vsel %vm2160_vm4, %v2180_v14, %v2182_v39  ;;  %v1744_v29 = vshll.u32 %v5978_v51, 16  ;;  %v6128_v14 = vld [vmem:[%s5744_s26 + $0x80] sm:$0xff]  }
  0x6d   : > { %5287 = vmatprep.mubr.msk.bf16.mxu0 %vm502_vm2, %v987_v27  ;;  %v6088_v50 = vsel %vm2160_vm4, %v2182_v39, %v2184_v37  ;;  %v6112_v40 = vsel %vm2160_vm4, %v2184_v37, %v2186_v4  ;;  %v1403_v27 = vrot.slane %v5974_v49, 1  ;;  %v2190_v39 = vrot.slane %v6128_v14, 2 }
  0x6e   : > { %v2192_v37 = vrot.slane %v6131_v34, 2  ;;  %v2253_v49 = vsel %vm557_vm0, %v5916_v6, 0 }
  0x6f   : > { %v1404_v41 = vsel %vm960_vm3, %v1401_v52, %v1403_v27  ;;  %v1406_v51 = vsel %vm960_vm3, %v1403_v27, %v1405_v45  ;;  %v1762_v52 = vshll.u32 %v5987_v55, 16  ;;  %v1768_v27 = vshrl.u32 %v6002_v61, 16 }
  0x70   : > { %v6154_v6 = vsel %vm2160_vm4, %v2190_v39, %v2192_v37 }
  0x73   : > { %5254 = vmatmul.mubr.msk.bf16.gmra.mxu1 %vm502_vm2, %v5831_v62  ;;  %v1717_v62 = vrot.slane %v1715_v43, 1  ;;  %v1738_v43 = vor.u32 %v1737_v15, %v1734_v24 }
  0x74   : > { %5288 = vmatmul.mubr.msk.bf16.gmra.mxu0 %vm502_vm2, %v989_v35  ;;  %5257 = vmatprep.mubr.msk.bf16.mxu1 %vm502_vm2, %v5844_v11  ;;  %v2188_v11 = vrot.slane %v6105_v58, 2  ;;  %v1743_v35 = vrot.slane %v1741_v22, 1 }
  0x75   : > { %5291 = vmatprep.mubr.msk.bf16.mxu0 %vm502_vm2, %v991_v36  ;;  %v1721_v18 = vor.u32 %v1720_v59, %v1717_v62  ;;  %v1746_v36 = vrot.slane %v1744_v29, 2  ;;  %v6163_v62 = vld [vmem:[%s5744_s26 + $0x90] sm:$0xff]   ;;  %v1739_v59 = vsel %vm1713_vm5, %v1729_v20, %v1738_v43 }
  0x76   : > { %v6118_v16 = vsel %vm2160_vm4, %v2186_v4, %v2188_v11  ;;  %v6143_v42 = vsel %vm2160_vm4, %v2188_v11, %v2190_v39  ;;  %v1755_v4 = vrot.slane %v1753_v47, 2  ;;  %v6171_v11 = vld [vmem:[%s5744_s26 + $0x98] ss:$0 sps:$4 sm:$0x33]   ;;  %v1413_v39 = vrot.slane %v6012_v2, 1 }
  0x77   : > { %v1747_v48 = vor.u32 %v1746_v36, %v1743_v35  ;;  %v1780_v35 = vshll.u32 %v6012_v2, 16  ;;  %v1411_v36 = vrot.slane %v6002_v61, 1 }
  0x78   : > { %v1756_v29 = vor.u32 %v1755_v4, %v1752_v1  ;;  %v6216_v1 = vld [vmem:[%s5744_s26 + $0x14] sm:$0xf]  ;;  %v3354_v4 = vld [vmem:[%s5744_s26 + $0x10] sm:$0x8] }
  0x79   : > { %v1782_v10 = vrot.slane %v1780_v35, 2  ;;  %v1414_v23 = vsel %vm960_vm3, %v1411_v36, %v1413_v39 }
  0x7b   : > { %5258 = vmatmul.mubr.msk.bf16.gmra.mxu1 %vm502_vm2, %v5858_v26  ;;  %v1730_v26 = vsel %vm1713_vm5, %v1721_v18, %v1729_v20  ;;  %v6179_v18 = vld [vmem:[%s8760_s1 + $0x10] sm:$0x3]  ;;  %v2196_v20 = vrot.slane %v6171_v11, 2 }
  0x7c   : > { %5292 = vmatmul.mubr.msk.bf16.gmra.mxu0 %vm502_vm2, %v993_v54  ;;  %5301 = vmatprep.mubr.msk.bf16.mxu1 %vm502_vm2, %v1402_v46  ;;  %v1407_v54 = vrot.slane %v5982_v38, 1  ;;  %v1748_v46 = vsel %vm1713_vm5, %v1738_v43, %v1747_v48  ;;  %v1764_v38 = vrot.slane %v1762_v52, 2 }
  0x7d   : > { %5295 = vmatprep.mubr.msk.bf16.mxu0 %vm502_vm2, %v995_v57  ;;  %v1409_v57 = vrot.slane %v5987_v55, 1  ;;  %v2194_v55 = vrot.slane %v6163_v62, 2 }
  0x7e   : > { %v1408_v13 = vsel %vm960_vm3, %v1405_v45, %v1407_v54  ;;  %v1771_v45 = vshll.u32 %v6002_v61, 16  ;;  %v1765_v15 = vor.u32 %v1764_v38, %v1761_v17 }
  0x7f   : > { %v1410_v7 = vsel %vm960_vm3, %v1407_v54, %v1409_v57  ;;  %v6185_v22 = vsel %vm2160_vm4, %v2192_v37, %v2194_v55  ;;  %v6191_v24 = vsel %vm2160_vm4, %v2194_v55, %v2196_v20  ;;  %v1770_v37 = vrot.slane %v1768_v27, 1  ;;  %v6221_v55 = vld [vmem:[%s5744_s26 + $0x18] sm:$0xff]   ;;  %v6226_v27 = vld [vmem:[%s5744_s26 + $0x20] sm:$0xff]  }
  0x80   : > { %v1412_v47 = vsel %vm960_vm3, %v1409_v57, %v1411_v36  ;;  %v1795_v54 = vshrl.u32 %v6046_v25, 16  ;;  %v1798_v57 = vshll.u32 %v6046_v25, 16  ;;  %v1804_v36 = vshrl.u32 %v6050_v30, 16 }
  0x83   : > { %5302 = vmatmul.mubr.msk.bf16.vlgmr.msra.gmra.mxu1 %vm502_vm2, %v1404_v41  ;;  %v1757_v41 = vsel %vm1713_vm5, %v1747_v48, %v1756_v29  ;;  %v1789_v48 = vshll.u32 %v6020_v8, 16 }
  0x84   : > { %5296 = vmatmul.mubr.msk.bf16.gmra.mxu0 %vm502_vm2, %v5903_v5  ;;  %v6151_v5 = vld [vmem:[%s8760_s1 + $0xe] sm:$0x3]  ;;  %5376 = vmatpush3.bf16.msra.mxu1 %v2253_v49  ;;  %v1773_v49 = vrot.slane %v1771_v45, 2  ;;  %v3362_v45 = vrot.slane %v6221_v55, 3 }
  0x85   : > { %5339 = vmatprep.mubr.msk.bf16.mxu0 %vm502_vm2, %v1730_v26  ;;  %5305 = vmatprep.mubr.msk.bf16.mxu1 %vm502_vm2, %v1406_v51  ;;  %v1777_v26 = vshrl.u32 %v6012_v2, 16  ;;  %v1766_v51 = vsel %vm1713_vm5, %v1756_v29, %v1765_v15  ;;  %v1786_v2 = vshrl.u32 %v6020_v8, 16  ;;  %v1791_v38 = vrot.slane %v1789_v48, 2 }
  0x86   : > { %5537 = vmatprep.subr.msk.bf16.mxu1 %vm557_vm0, %v6151_v5  ;;  %v1774_v61 = vor.u32 %v1773_v49, %v1770_v37  ;;  %v1800_v29 = vrot.slane %v1798_v57, 2  ;;  %v1813_v49 = vshrl.u32 %v6071_v33, 16 }
  0x87   : > { %v1779_v43 = vrot.slane %v1777_v26, 1  ;;  %v1788_v17 = vrot.slane %v1786_v2, 1  ;;  %v8764_v26 = vrot.slane %v6226_v27, 3 }
  0x89   : > { %v1783_v52 = vor.u32 %v1782_v10, %v1779_v43  ;;  %v1792_v35 = vor.u32 %v1791_v38, %v1788_v17  ;;  %v6245_v43 = vsel %vm3360_vm6, %v3362_v45, %v8764_v26  ;;  %v1419_v10 = vrot.slane %v6050_v30, 1 }
  0x8a   : > { %v1831_v17 = vshrl.u32 %v6098_v53, 16  ;;  %v1834_v38 = vshll.u32 %v6098_v53, 16 }
  0x8b   : > { %5306 = vmatmul.mubr.msk.bf16.gmra.mxu1 %vm502_vm2, %v1408_v13  ;;  %v4993_v13 = vcombine.low %v3354_v4, %v6216_v1  ;;  %v1784_v20 = vsel %vm1713_vm5, %v1774_v61, %v1783_v52 }
  0x8c   : > { %5340 = vmatmul.mubr.msk.bf16.vlgmr.msra.gmra.mxu0 %vm502_vm2, %v1739_v59  ;;  %5309 = vmatprep.mubr.msk.bf16.mxu1 %vm502_vm2, %v1410_v7  ;;  %v1415_v59 = vrot.slane %v6020_v8, 1  ;;  %v1797_v7 = vrot.slane %v1795_v54, 1  ;;  %v1815_v54 = vrot.slane %v1813_v49, 1  ;;  %v1852_v49 = vshll.u32 %v6128_v14, 16 }
  0x8d   : > { %5414 = vmatpush3.bf16.msra.mxu0 %v2692_v0  ;;  %5343 = vmatprep.mubr.msk.bf16.mxu0 %vm502_vm2, %v1748_v46  ;;  %v1417_v0 = vrot.slane %v6046_v25, 1  ;;  %v1775_v46 = vsel %vm1713_vm5, %v1765_v15, %v1774_v61  ;;  %v3361_v25 = vrot.slane %v4993_v13, 3  ;;  %v1806_v61 = vrot.slane %v1804_v36, 1 }
  0x8e   : > { %5538 = vmatprep.subr.msk.bf16.mxu0 %vm557_vm0, %v6179_v18  ;;  %v1416_v8 = vsel %vm960_vm3, %v1413_v39, %v1415_v59  ;;  %v1801_v39 = vor.u32 %v1800_v29, %v1797_v7  ;;  %v1425_v13 = vrot.slane %v6098_v53, 1  ;;  %v1843_v53 = vshll.u32 %v6105_v58, 16 }
  0x8f   : > { %v1418_v15 = vsel %vm960_vm3, %v1415_v59, %v1417_v0  ;;  %v6237_v37 = vsel %vm3360_vm6, %v3361_v25, %v3362_v45  ;;  %v1420_v59 = vsel %vm960_vm3, %v1417_v0, %v1419_v10  ;;  %v1423_v0 = vrot.slane %v6075_v28, 1 }
  0x90   : > { %v1802_v48 = vsel %vm1713_vm5, %v1792_v35, %v1801_v39  ;;  %v1833_v25 = vrot.slane %v1831_v17, 1  ;;  %v1836_v45 = vrot.slane %v1834_v38, 2  ;;  %v1433_v17 = vrot.slane %v6163_v62, 1 }
  0x93   : > { %5310 = vmatmul.mubr.msk.bf16.gmra.mxu1 %vm502_vm2, %v1412_v47  ;;  %v1421_v47 = vrot.slane %v6071_v33, 1 }
  0x94   : > { %5344 = vmatmul.mubr.msk.bf16.gmra.mxu0 %vm502_vm2, %v1757_v41  ;;  %5313 = vmatprep.mubr.msk.bf16.mxu1 %vm502_vm2, %v1414_v23  ;;  %v1807_v41 = vshll.u32 %v6050_v30, 16  ;;  %v1793_v23 = vsel %vm1713_vm5, %v1783_v52, %v1792_v35  ;;  %v1822_v30 = vshrl.u32 %v6075_v28, 16  ;;  %v1426_v35 = vsel %vm960_vm3, %v1423_v0, %v1425_v13 }
  0x95   : > { %5347 = vmatprep.mubr.msk.bf16.mxu0 %vm502_vm2, %v1766_v51  ;;  %v1816_v51 = vshll.u32 %v6071_v33, 16  ;;  %v1422_v4 = vsel %vm960_vm3, %v1419_v10, %v1421_v47  ;;  %v1825_v33 = vshll.u32 %v6075_v28, 16  ;;  %v1840_v28 = vshrl.u32 %v6105_v58, 16 }
  0x96   : > { %v1809_v2 = vrot.slane %v1807_v41, 2  ;;  %v1824_v7 = vrot.slane %v1822_v30, 1  ;;  %v1837_v41 = vor.u32 %v1836_v45, %v1833_v25  ;;  %v1429_v10 = vrot.slane %v6128_v14, 1  ;;  %v5659_v25 = vld [vmem:[%s5744_s26 + $0x98] ss:$0 sps:$4 sm:$0x11]  }
  0x97   : > { %v1818_v57 = vrot.slane %v1816_v51, 2  ;;  %v1827_v29 = vrot.slane %v1825_v33, 2  ;;  %v1427_v51 = vrot.slane %v6105_v58, 1  ;;  %v1858_v58 = vshrl.u32 %v6131_v34, 16 }
  0x98   : > { %v1867_v30 = vshrl.u32 %v6163_v62, 16  ;;  %v1870_v33 = vshll.u32 %v6163_v62, 16  ;;  %v1876_v62 = vshrl.u32 %v6171_v11, 16 }
  0x99   : > { %v1819_v52 = vor.u32 %v1818_v57, %v1815_v54  ;;  %v1828_v36 = vor.u32 %v1827_v29, %v1824_v7  ;;  %v1854_v54 = vrot.slane %v1852_v49, 2  ;;  %v1428_v57 = vsel %vm960_vm3, %v1425_v13, %v1427_v51 }
  0x9a   : > { %v1869_v7 = vrot.slane %v1867_v30, 1  ;;  %v1872_v29 = vrot.slane %v1870_v33, 2  ;;  %v6356_v30 = vld [vmem:[%s5744_s26 + $0x48] sm:$0xff]  }
  0x9b   : > { %5314 = vmatmul.mubr.msk.bf16.gmra.mxu1 %vm502_vm2, %v1416_v8 }
  0x9c   : > { %5348 = vmatmul.mubr.msk.bf16.gmra.mxu0 %vm502_vm2, %v1775_v46  ;;  %5317 = vmatprep.mubr.msk.bf16.mxu1 %vm502_vm2, %v1418_v15  ;;  %v1810_v46 = vor.u32 %v1809_v2, %v1806_v61  ;;  %v1424_v15 = vsel %vm960_vm3, %v1421_v47, %v1423_v0  ;;  %v1829_v47 = vsel %vm1713_vm5, %v1819_v52, %v1828_v36  ;;  %v1845_v61 = vrot.slane %v1843_v53, 2 }
  0x9d   : > { %5351 = vmatprep.mubr.msk.bf16.mxu0 %vm502_vm2, %v1784_v20  ;;  %v1838_v2 = vsel %vm1713_vm5, %v1828_v36, %v1837_v41  ;;  %v1860_v0 = vrot.slane %v1858_v58, 1  ;;  %v1435_v36 = vrot.slane %v5659_v25, 1  ;;  %v6340_v58 = vld [vmem:[%s5744_s26 + $0x38] sm:$0xff]  }
  0x9e   : > { %v1811_v20 = vsel %vm1713_vm5, %v1801_v39, %v1810_v46  ;;  %v1820_v8 = vsel %vm1713_vm5, %v1810_v46, %v1819_v52  ;;  %v1849_v39 = vshrl.u32 %v6128_v14, 16  ;;  %v1861_v14 = vshll.u32 %v6131_v34, 16 }
  0x9f   : > { %v1431_v52 = vrot.slane %v6131_v34, 1 }
  0xa0   : > { %v1863_v13 = vrot.slane %v1861_v14, 2  ;;  %v6352_v14 = vld [vmem:[%s5744_s26 + $0x40] sm:$0xff]  }
  0xa1   : > { %v1434_v45 = vsel %vm960_vm3, %v1431_v52, %v1433_v17 }
  0xa2   : > { %v1864_v34 = vor.u32 %v1863_v13, %v1860_v0 }
  0xa3   : > { %5318 = vmatmul.mubr.msk.bf16.gmra.mxu1 %vm502_vm2, %v1420_v59  ;;  %v1430_v59 = vsel %vm960_vm3, %v1427_v51, %v1429_v10 }
  0xa4   : > { %5352 = vmatmul.mubr.msk.bf16.gmra.mxu0 %vm502_vm2, %v1793_v23  ;;  %5321 = vmatprep.mubr.msk.bf16.mxu1 %vm502_vm2, %v1422_v4  ;;  %v1842_v23 = vrot.slane %v1840_v28, 1  ;;  %v2468_v28 = vld [vmem:[%s5744_s26 + $0x10] sm:$0xc] }
  0xa5   : > { %5355 = vmatprep.mubr.msk.bf16.mxu0 %vm502_vm2, %v1802_v48  ;;  %v1851_v48 = vrot.slane %v1849_v39, 1  ;;  %v6307_v51 = vcombine.low %v2468_v28, %v6216_v1 }
  0xa6   : > { %v1846_v4 = vor.u32 %v1845_v61, %v1842_v23  ;;  %v2601_v23 = vrot.slane %v6221_v55, 2 }
  0xa7   : > { %v1855_v46 = vor.u32 %v1854_v54, %v1851_v48  ;;  %v3139_v48 = vsel %vm557_vm0, %v6151_v5, 0  ;;  %v2603_v54 = vrot.slane %v6226_v27, 2  ;;  %v3453_v5 = vsel %vm557_vm0, %v6179_v18, 0 }
  0xa8   : > { %v1847_v38 = vsel %vm1713_vm5, %v1837_v41, %v1846_v4  ;;  %v1878_v41 = vrot.slane %v1876_v62, 1 }
  0xa9   : > { %v1865_v53 = vsel %vm1713_vm5, %v1855_v46, %v1864_v34 }
  0xab   : > { %5322 = vmatmul.mubr.msk.bf16.gmra.mxu1 %vm502_vm2, %v1424_v15  ;;  %v1879_v15 = vshll.u32 %v6171_v11, 16 }
  0xac   : > { %5356 = vmatmul.mubr.msk.bf16.gmra.mxu0 %vm502_vm2, %v1811_v20  ;;  %5325 = vmatprep.mubr.msk.bf16.mxu1 %vm502_vm2, %v1426_v35  ;;  %v1856_v20 = vsel %vm1713_vm5, %v1846_v4, %v1855_v46  ;;  %v1873_v35 = vor.u32 %v1872_v29, %v1869_v7 }
  0xad   : > { %5359 = vmatprep.mubr.msk.bf16.mxu0 %vm502_vm2, %v1820_v8  ;;  %v1432_v8 = vsel %vm960_vm3, %v1429_v10, %v1431_v52  ;;  %v1881_v39 = vrot.slane %v1879_v15, 2  ;;  %v1436_v10 = vsel %vm960_vm3, %v1433_v17, %v1435_v36  ;;  %v2613_v17 = vrot.slane %v6356_v30, 2 }
  0xae   : > { %v1874_v49 = vsel %vm1713_vm5, %v1864_v34, %v1873_v35 }
  0xaf   : > { %v1882_v11 = vor.u32 %v1881_v39, %v1878_v41 }
  0xb1   : > { %v1883_v1 = vsel %vm1713_vm5, %v1873_v35, %v1882_v11 }
  0xb3   : > { %5326 = vmatmul.mubr.msk.bf16.gmra.mxu1 %vm502_vm2, %v1428_v57  ;;  %v2604_v57 = vsel %vm2160_vm4, %v2601_v23, %v2603_v54 }
  0xb4   : > { %5360 = vmatmul.mubr.msk.bf16.gmra.mxu0 %vm502_vm2, %v1829_v47  ;;  %5329 = vmatprep.mubr.msk.bf16.mxu1 %vm502_vm2, %v1430_v59  ;;  %v2600_v47 = vrot.slane %v6307_v51, 2  ;;  %v6334_v59 = vld [vmem:[%s5744_s26 + $0x30] sm:$0xff]  }
  0xb5   : > { %5363 = vmatprep.mubr.msk.bf16.mxu0 %vm502_vm2, %v1838_v2  ;;  %v6320_v2 = vld [vmem:[%s5744_s26 + $0x28] sm:$0xff]  }
  0xb6   : > { %v2602_v61 = vsel %vm2160_vm4, %v2600_v47, %v2601_v23 }
  0xbb   : > { %5330 = vmatmul.mubr.msk.bf16.gmra.mxu1 %vm502_vm2, %v1432_v8  ;;  %v6386_v8 = vld [vmem:[%s5744_s26 + $0x58] sm:$0xff]  }
  0xbc   : > { %5364 = vmatmul.mubr.msk.bf16.gmra.mxu0 %vm502_vm2, %v1847_v38  ;;  %5333 = vmatprep.mubr.msk.bf16.mxu1 %vm502_vm2, %v1434_v45  ;;  %v2617_v15 = vrot.slane %v6386_v8, 2 }
  0xbd   : > { %5367 = vmatprep.mubr.msk.bf16.mxu0 %vm502_vm2, %v1856_v20  ;;  %v6378_v20 = vld [vmem:[%s5744_s26 + $0x50] sm:$0xff]  }
  0xbe   : > { %v2615_v45 = vrot.slane %v6378_v20, 2 }
  0xc0   : > { %v2616_v28 = vsel %vm2160_vm4, %v2613_v17, %v2615_v45 }
  0xc3   : > { %5334 = vmatmul.mubr.msk.bf16.gmra.mxu1 %vm502_vm2, %v1436_v10 }
  0xc4   : > { %5368 = vmatmul.mubr.msk.bf16.gmra.mxu0 %vm502_vm2, %v1865_v53  ;;  %5377 = vmatprep.mubr.msk.bf16.mxu1 %vm502_vm2, %v5990_v56  ;;  %v2605_v56 = vrot.slane %v6320_v2, 2  ;;  %v6410_v53 = vld [vmem:[%s5744_s26 + $0x60] sm:$0xff]  }
  0xc5   : > { %5371 = vmatprep.mubr.msk.bf16.mxu0 %vm502_vm2, %v1874_v49  ;;  %v6418_v49 = vld [vmem:[%s5744_s26 + $0x68] sm:$0xff]   ;;  %v2619_v11 = vrot.slane %v6410_v53, 2 }
  0xc6   : > { %v2606_v4 = vsel %vm2160_vm4, %v2603_v54, %v2605_v56 }
  0xc7   : > { %v2620_v54 = vsel %vm2160_vm4, %v2617_v15, %v2619_v11 }
  0xcb   : > { %5378 = vmatmul.mubr.msk.bf16.vlgmr.msra.gmra.mxu1 %vm502_vm2, %v5997_v60  ;;  %v2607_v60 = vrot.slane %v6334_v59, 2 }
  0xcc   : > { %5372 = vmatmul.mubr.msk.bf16.gmra.mxu0 %vm502_vm2, %v1883_v1  ;;  %5452 = vmatpush3.bf16.msra.mxu1 %v3139_v48  ;;  %v2621_v1 = vrot.slane %v6418_v49, 2 }
  0xcd   : > { %5415 = vmatprep.mubr.msk.bf16.mxu0 %vm502_vm2, %v2602_v61  ;;  %5381 = vmatprep.mubr.msk.bf16.mxu1 %vm502_vm2, %v6005_v63  ;;  %v2609_v63 = vrot.slane %v6340_v58, 2  ;;  %v2608_v18 = vsel %vm2160_vm4, %v2605_v56, %v2607_v60  ;;  %v6442_v56 = vld [vmem:[%s5744_s26 + $0x70] sm:$0xff]  }
  0xcf   : > { %v2610_v46 = vsel %vm2160_vm4, %v2607_v60, %v2609_v63 }
  0xd3   : > { %5382 = vmatmul.mubr.msk.bf16.gmra.mxu1 %vm502_vm2, %v6015_v3  ;;  %v2611_v3 = vrot.slane %v6352_v14, 2 }
  0xd4   : > { %5416 = vmatmul.mubr.msk.bf16.vlgmr.msra.gmra.mxu0 %vm502_vm2, %v2604_v57  ;;  %5385 = vmatprep.mubr.msk.bf16.mxu1 %vm502_vm2, %v6023_v9 }
  0xd5   : > { %5490 = vmatpush3.bf16.msra.mxu0 %v3453_v5  ;;  %5419 = vmatprep.mubr.msk.bf16.mxu0 %vm502_vm2, %v2606_v4  ;;  %v2612_v13 = vsel %vm2160_vm4, %v2609_v63, %v2611_v3  ;;  %v6450_v4 = vld [vmem:[%s5744_s26 + $0x78] sm:$0xff]   ;;  %v2623_v63 = vrot.slane %v6442_v56, 2 }
  0xdb   : > { %v6363_v52 = vpop.f32.mrf.mxu1  ;;  %5386 = vmatmul.mubr.msk.bf16.gmra.mxu1 %vm502_vm2, %v6027_v12  ;;  %v2614_v12 = vsel %vm2160_vm4, %v2611_v3, %v2613_v17  ;;  %v2625_v3 = vrot.slane %v6450_v4, 2 }
  0xdc   : > { %v6358_v33 = vpop.f32.mrf.mxu0  ;;  %5420 = vmatmul.mubr.msk.bf16.gmra.mxu0 %vm502_vm2, %v2608_v18  ;;  %5389 = vmatprep.mubr.msk.bf16.mxu1 %vm502_vm2, %v6033_v19 }
  0xdd   : > { %5423 = vmatprep.mubr.msk.bf16.mxu0 %vm502_vm2, %v2610_v46  ;;  %v6372_v38 = vpop.f32.mrf.mxu1 }
  0xde   : > { %v6367_v9 = vpop.f32.mrf.mxu0 }
  0xdf   : > { %v6380_v7 = vpop.f32.mrf.mxu1 }
  0xe0   : > { %v6374_v0 = vpop.f32.mrf.mxu0 }
  0xe1   : > { %v6388_v25 = vpop.f32.mrf.mxu1 }
  0xe2   : > { %v6382_v29 = vpop.f32.mrf.mxu0 }
  0xe3   : > { %v6395_v34 = vpop.f32.mrf.mxu1  ;;  %5390 = vmatmul.mubr.msk.bf16.gmra.mxu1 %vm502_vm2, %v6038_v21  ;;  %v2618_v21 = vsel %vm2160_vm4, %v2615_v45, %v2617_v15  ;;  %v6474_v45 = vld [vmem:[%s5744_s26 + $0x80] sm:$0xff]  }
  0xe4   : > { %v6390_v19 = vpop.f32.mrf.mxu0  ;;  %5424 = vmatmul.mubr.msk.bf16.gmra.mxu0 %vm502_vm2, %v2612_v13  ;;  %5393 = vmatprep.mubr.msk.bf16.mxu1 %vm502_vm2, %v6057_v31  ;;  %8865 = vst [vmem:[#allocation10_spill] sm:$0xff] %v6474_v45 }
  0xe5   : > { %5427 = vmatprep.mubr.msk.bf16.mxu0 %vm502_vm2, %v2614_v12  ;;  %v6404_v35 = vpop.f32.mrf.mxu1  ;;  %v2624_v12 = vsel %vm2160_vm4, %v2621_v1, %v2623_v63 }
  0xe6   : > { %v6399_v62 = vpop.f32.mrf.mxu0 }
  0xe7   : > { %v6412_v41 = vpop.f32.mrf.mxu1 }
  0xe8   : > { %v6406_v36 = vpop.f32.mrf.mxu0  ;;  %8857 = vst [vmem:[#allocation2_spill] sm:$0xff] %v6412_v41 }
  0xe9   : > { %v6420_v10 = vpop.f32.mrf.mxu1 }
  0xea   : > { %v6414_v39 = vpop.f32.mrf.mxu0  ;;  %8858 = vst [vmem:[#allocation3_spill] sm:$0xff] %v6420_v10 }
  0xeb   : > { %v6427_v47 = vpop.f32.mrf.mxu1  ;;  %5394 = vmatmul.mubr.msk.bf16.gmra.mxu1 %vm502_vm2, %v6062_v32  ;;  %v2622_v32 = vsel %vm2160_vm4, %v2619_v11, %v2621_v1 }
  0xec   : > { %v6422_v31 = vpop.f32.mrf.mxu0  ;;  %5428 = vmatmul.mubr.msk.bf16.gmra.mxu0 %vm502_vm2, %v2616_v28  ;;  %8859 = vst [vmem:[#allocation4_spill] sm:$0xff] %v6427_v47  ;;  %5397 = vmatprep.mubr.msk.bf16.mxu1 %vm502_vm2, %v6083_v44 }
  0xed   : > { %5431 = vmatprep.mubr.msk.bf16.mxu0 %vm502_vm2, %v2618_v21  ;;  %v6436_v61 = vpop.f32.mrf.mxu1  ;;  %v6482_v21 = vld [vmem:[%s5744_s26 + $0x88] sm:$0xff]  }
  0xee   : > { %v6431_v23 = vpop.f32.mrf.mxu0  ;;  %8860 = vst [vmem:[#allocation5_spill] sm:$0xff] %v6436_v61  ;;  %8867 = vst [vmem:[#allocation12_spill] sm:$0xff] %v6482_v21  ;;  %v6514_v61 = vld [vmem:[%s5744_s26 + $0x98] sm:$0xff]  }
  0xef   : > { %v6444_v57 = vpop.f32.mrf.mxu1  ;;  %8869 = vst [vmem:[#allocation14_spill] sm:$0xff] %v6514_v61 }
  0xf0   : > { %v6438_v48 = vpop.f32.mrf.mxu0  ;;  %8861 = vst [vmem:[#allocation6_spill] sm:$0xff] %v6444_v57  ;;  %v6508_v57 = vld [vmem:[%s5744_s26 + $0x90] sm:$0xff]  }
  0xf1   : > { %v6452_v60 = vpop.f32.mrf.mxu1 }
  0xf2   : > { %v6446_v5 = vpop.f32.mrf.mxu0  ;;  %8862 = vst [vmem:[#allocation7_spill] sm:$0xff] %v6452_v60 }
  0xf3   : > { %v6459_v18 = vpop.f32.mrf.mxu1  ;;  %5398 = vmatmul.mubr.msk.bf16.gmra.mxu1 %vm502_vm2, %v6088_v50  ;;  %v2626_v50 = vsel %vm2160_vm4, %v2623_v63, %v2625_v3  ;;  %v2629_v63 = vrot.slane %v6482_v21, 2 }
  0xf4   : > { %v6454_v44 = vpop.f32.mrf.mxu0  ;;  %5432 = vmatmul.mubr.msk.bf16.gmra.mxu0 %vm502_vm2, %v2620_v54  ;;  %8863 = vst [vmem:[#allocation8_spill] sm:$0xff] %v6459_v18  ;;  %5401 = vmatprep.mubr.msk.bf16.mxu1 %vm502_vm2, %v6112_v40  ;;  %v2627_v40 = vrot.slane %v6474_v45, 2 }
  0xf5   : > { %5435 = vmatprep.mubr.msk.bf16.mxu0 %vm502_vm2, %v2622_v32  ;;  %v6468_v17 = vpop.f32.mrf.mxu1 }
  0xf6   : > { %v6463_v46 = vpop.f32.mrf.mxu0  ;;  %8864 = vst [vmem:[#allocation9_spill] sm:$0xff] %v6468_v17  ;;  %v2923_v17 = vshrl.u32 %v6221_v55, 16  ;;  %v2628_v60 = vsel %vm2160_vm4, %v2625_v3, %v2627_v40 }
  0xf7   : > { %v6476_v15 = vpop.f32.mrf.mxu1 }
  0xf8   : > { %v6470_v13 = vpop.f32.mrf.mxu0  ;;  %8866 = vst [vmem:[#allocation11_spill] sm:$0xff] %v6476_v15  ;;  %v2918_v15 = vshll.u32 %v6307_v51, 16 }
  0xf9   : > { %v6484_v11 = vpop.f32.mrf.mxu1 }
  0xfa   : > { %v6478_v28 = vpop.f32.mrf.mxu0  ;;  %8868 = vst [vmem:[#allocation13_spill] sm:$0xff] %v6484_v11  ;;  %v2920_v21 = vrot.slane %v2918_v15, 3 }
  0xfb   : > { %v5227_v1 = vpop.f32.mrf.mxu1  ;;  %5402 = vmatmul.mubr.msk.bf16.gmra.mxu1 %vm502_vm2, %v6118_v16  ;;  %v2926_v16 = vshll.u32 %v6221_v55, 16 }
  0xfc   : > { %v6486_v54 = vpop.f32.mrf.mxu0  ;;  %5436 = vmatmul.mubr.msk.bf16.gmra.mxu0 %vm502_vm2, %v2624_v12  ;;  %v820_v26 = vadd.f32 %v5227_v1, %v6358_v33  ;;  %5405 = vmatprep.mubr.msk.bf16.mxu1 %vm502_vm2, %v6143_v42  ;;  %v2630_v42 = vsel %vm2160_vm4, %v2627_v40, %v2629_v63  ;;  %v2631_v40 = vrot.slane %v6508_v57, 2 }
  0xfd   : > { %5439 = vmatprep.mubr.msk.bf16.mxu0 %vm502_vm2, %v2626_v50  ;;  %v811_v12 = vpop.f32.mrf.mxu1  ;;  %v2915_v50 = vshrl.u32 %v6307_v51, 16 }
  0xfe   : > { %v6493_v32 = vpop.f32.mrf.mxu0  ;;  %v812_v18 = vadd.f32 %v811_v12, %v6367_v9  ;;  %v2925_v9 = vrot.slane %v2923_v17, 2  ;;  %v2928_v12 = vrot.slane %v2926_v16, 3 }
  0xff   : > { %v5228_v33 = vpop.f32.mrf.mxu1  ;;  %v2917_v55 = vrot.slane %v2915_v50, 2 }
 0x100   : > { %v6499_v11 = vpop.f32.mrf.mxu0  ;;  %v823_v47 = vadd.f32 %v5228_v33, %v6374_v0  ;;  %v2633_v33 = vrot.slane %v6514_v61, 2  ;;  %v2929_v16 = vor.u32 %v2928_v12, %v2925_v9 }
 0x101   : > { %v814_v51 = vpop.f32.mrf.mxu1  ;;  %v2921_v50 = vor.u32 %v2920_v21, %v2917_v55 }
 0x102   : > { %v6510_v1 = vpop.f32.mrf.mxu0  ;;  %v815_v3 = vadd.f32 %v814_v51, %v6382_v29  ;;  %v2935_v29 = vshll.u32 %v6226_v27, 16 }
 0x103   : > { %v5231_v41 = vpop.f32.mrf.mxu1  ;;  %5406 = vmatmul.mubr.msk.bf16.gmra.mxu1 %vm502_vm2, %v6154_v6  ;;  %v2941_v6 = vshrl.u32 %v6320_v2, 16 }
 0x104   : > { %v5265_v10 = vpop.f32.mrf.mxu0  ;;  %5440 = vmatmul.mubr.msk.bf16.gmra.mxu0 %vm502_vm2, %v2628_v60  ;;  %v836_v60 = vadd.f32 %v5231_v41, %v6390_v19  ;;  %5409 = vmatprep.mubr.msk.bf16.mxu1 %vm502_vm2, %v6185_v22  ;;  %v2632_v41 = vsel %vm2160_vm4, %v2629_v63, %v2631_v40  ;;  %v5680_v22 = vld [vmem:[%s5744_s26 + $0xa0] ss:$0 sps:$4 sm:$0x33]   ;;  %v2937_v9 = vrot.slane %v2935_v29, 3  ;;  %v2953_v29 = vshll.u32 %v6334_v59, 16 }
 0x105   : > { %v6519_v45 = vadd.f32 %v5265_v10, %v820_v26  ;;  %5443 = vmatprep.mubr.msk.bf16.mxu0 %vm502_vm2, %v2630_v42  ;;  %v2932_v26 = vshrl.u32 %v6226_v27, 16  ;;  %v827_v10 = vpop.f32.mrf.mxu1  ;;  %v2944_v42 = vshll.u32 %v6320_v2, 16 }
 0x106   : > { %v1089_v0 = vpop.f32.mrf.mxu0  ;;  %v828_v51 = vadd.f32 %v827_v10, %v6399_v62  ;;  %v2930_v62 = vsel %vm2913_vm7, %v2921_v50, %v2929_v16 }
 0x107   : > { %8870 = vst [vmem:[#allocation15_spill] sm:$0xff] %v6519_v45  ;;  %v6527_v17 = vadd.f32 %v1089_v0, %v812_v18  ;;  %v5232_v18 = vpop.f32.mrf.mxu1  ;;  %v2934_v55 = vrot.slane %v2932_v26, 2  ;;  %v2946_v63 = vrot.slane %v2944_v42, 3  ;;  %v2950_v26 = vshrl.u32 %v6334_v59, 16 }
 0x108   : > { %v5266_v15 = vpop.f32.mrf.mxu0  ;;  %v839_v45 = vadd.f32 %v5232_v18, %v6406_v36  ;;  %v2959_v42 = vshrl.u32 %v6340_v58, 16 }
 0x109   : > { %8871 = vst [vmem:[#allocation16_spill] sm:$0xff] %v6527_v17  ;;  %v6536_v19 = vadd.f32 %v5266_v15, %v823_v47  ;;  %v2634_v17 = vsel %vm2160_vm4, %v2631_v40, %v2633_v33  ;;  %v830_v12 = vpop.f32.mrf.mxu1  ;;  %v2943_v47 = vrot.slane %v2941_v6, 2  ;;  %v2635_v40 = vrot.slane %v5680_v22, 2 }
 0x10a   : > { %v1092_v0 = vpop.f32.mrf.mxu0  ;;  %v831_v10 = vadd.f32 %v830_v12, %v6414_v39  ;;  %v2938_v39 = vor.u32 %v2937_v9, %v2934_v55  ;;  %v2955_v12 = vrot.slane %v2953_v29, 3 }
 0x10b   : > { %v6542_v21 = vadd.f32 %v1092_v0, %v815_v3  ;;  %v5235_v36 = vpop.f32.mrf.mxu1  ;;  %5410 = vmatmul.mubr.msk.bf16.gmra.mxu1 %vm502_vm2, %v6191_v24  ;;  %v2636_v18 = vsel %vm2160_vm4, %v2633_v33, %v2635_v40 }
 0x10c   : > { %v5269_v61 = vpop.f32.mrf.mxu0  ;;  %5444 = vmatmul.mubr.msk.bf16.gmra.mxu0 %vm502_vm2, %v2632_v41  ;;  %v852_v50 = vadd.f32 %v5235_v36, %v6422_v31  ;;  %5453 = vmatprep.mubr.msk.bf16.mxu1 %vm502_vm2, %v2930_v62  ;;  %v2962_v41 = vshll.u32 %v6340_v58, 16  ;;  %v2939_v9 = vsel %vm2913_vm7, %v2929_v16, %v2938_v39 }
 0x10d   : > { %v6547_v15 = vadd.f32 %v5269_v61, %v836_v60  ;;  %5447 = vmatprep.mubr.msk.bf16.mxu0 %vm502_vm2, %v2634_v17  ;;  %v843_v61 = vpop.f32.mrf.mxu1  ;;  %v2947_v17 = vor.u32 %v2946_v63, %v2943_v47 }
 0x10e   : > { %v1105_v3 = vpop.f32.mrf.mxu0  ;;  %v844_v24 = vadd.f32 %v843_v61, %v6431_v23  ;;  %v2964_v36 = vrot.slane %v2962_v41, 3 }
 0x10f   : > { %v6555_v6 = vadd.f32 %v1105_v3, %v828_v51  ;;  %v5236_v0 = vpop.f32.mrf.mxu1  ;;  %v2952_v51 = vrot.slane %v2950_v26, 2  ;;  %v2948_v23 = vsel %vm2913_vm7, %v2938_v39, %v2947_v17  ;;  %v3366_v3 = vrot.slane %v6320_v2, 3 }
 0x110   : > { %v5270_v60 = vpop.f32.mrf.mxu0  ;;  %v855_v62 = vadd.f32 %v5236_v0, %v6438_v48  ;;  %v8872_v0 = vrot.slane %v6226_v27, 3 }
 0x111   : > { %v6561_v22 = vadd.f32 %v5270_v60, %v839_v45  ;;  %v846_v47 = vpop.f32.mrf.mxu1  ;;  %v2961_v45 = vrot.slane %v2959_v42, 2  ;;  %v2956_v16 = vor.u32 %v2955_v12, %v2952_v51  ;;  %v2977_v60 = vshrl.u32 %v6356_v30, 16 }
 0x112   : > { %v1108_v31 = vpop.f32.mrf.mxu0  ;;  %v847_v33 = vadd.f32 %v846_v47, %v6446_v5  ;;  %v2968_v5 = vshrl.u32 %v6352_v14, 16  ;;  %v2980_v42 = vshll.u32 %v6356_v30, 16 }
 0x113   : > { %v6565_v55 = vadd.f32 %v1108_v31, %v831_v10  ;;  %v5239_v48 = vpop.f32.mrf.mxu1  ;;  %5454 = vmatmul.mubr.msk.bf16.vlgmr.msra.gmra.mxu1 %vm502_vm2, %v2939_v9  ;;  %v3367_v31 = vsel %vm3360_vm6, %v8872_v0, %v3366_v3 }
 0x114   : > { %v5273_v63 = vpop.f32.mrf.mxu0  ;;  %5448 = vmatmul.mubr.msk.bf16.gmra.mxu0 %vm502_vm2, %v2636_v18  ;;  %v868_v26 = vadd.f32 %v5239_v48, %v6454_v44  ;;  %5457 = vmatprep.mubr.msk.bf16.mxu1 %vm502_vm2, %v2948_v23  ;;  %v2957_v18 = vsel %vm2913_vm7, %v2947_v17, %v2956_v16  ;;  %v2970_v9 = vrot.slane %v2968_v5, 2  ;;  %v3370_v48 = vrot.slane %v6340_v58, 3 }
 0x115   : > { %v6571_v40 = vadd.f32 %v5273_v63, %v852_v50  ;;  %5491 = vmatprep.mubr.msk.bf16.mxu0 %vm502_vm2, %v6237_v37  ;;  %v2971_v50 = vshll.u32 %v6352_v14, 16  ;;  %v859_v39 = vpop.f32.mrf.mxu1  ;;  %v2965_v37 = vor.u32 %v2964_v36, %v2961_v45  ;;  %v2982_v45 = vrot.slane %v2980_v42, 3 }
 0x116   : > { %v1121_v10 = vpop.f32.mrf.mxu0  ;;  %v860_v41 = vadd.f32 %v859_v39, %v6463_v46  ;;  %v2995_v39 = vshrl.u32 %v6386_v8, 16 }
 0x117   : > { %v6578_v29 = vadd.f32 %v1121_v10, %v844_v24  ;;  %v5240_v44 = vpop.f32.mrf.mxu1  ;;  %v2973_v47 = vrot.slane %v2971_v50, 3  ;;  %v2966_v46 = vsel %vm2913_vm7, %v2956_v16, %v2965_v37  ;;  %v2989_v10 = vshll.u32 %v6378_v20, 16 }
 0x118   : > { %v5274_v61 = vpop.f32.mrf.mxu0  ;;  %v871_v51 = vadd.f32 %v5240_v44, %v6470_v13  ;;  %v3368_v13 = vrot.slane %v6334_v59, 3 }
 0x119   : > { %v6586_v2 = vadd.f32 %v5274_v61, %v855_v62  ;;  %v862_v63 = vpop.f32.mrf.mxu1  ;;  %v2979_v62 = vrot.slane %v2977_v60, 2  ;;  %v2998_v61 = vshll.u32 %v6386_v8, 16 }
 0x11a   : > { %v1124_v24 = vpop.f32.mrf.mxu0  ;;  %v863_v17 = vadd.f32 %v862_v63, %v6478_v28  ;;  %v2974_v28 = vor.u32 %v2973_v47, %v2970_v9  ;;  %v3369_v42 = vsel %vm3360_vm6, %v3366_v3, %v3368_v13 }
 0x11b   : > { %v6593_v12 = vadd.f32 %v1124_v24, %v847_v33  ;;  %v5243_v36 = vpop.f32.mrf.mxu1  ;;  %5458 = vmatmul.mubr.msk.bf16.gmra.mxu1 %vm502_vm2, %v2957_v18  ;;  %v2983_v59 = vor.u32 %v2982_v45, %v2979_v62  ;;  %v2991_v18 = vrot.slane %v2989_v10, 3  ;;  %v3000_v3 = vrot.slane %v2998_v61, 3 }
 0x11c   : > { %v5277_v23 = vpop.f32.mrf.mxu0  ;;  %5492 = vmatmul.mubr.msk.bf16.vlgmr.msra.gmra.mxu0 %vm502_vm2, %v6245_v43  ;;  %v2986_v43 = vshrl.u32 %v6378_v20, 16  ;;  %v884_v16 = vadd.f32 %v5243_v36, %v6486_v54  ;;  %5461 = vmatprep.mubr.msk.bf16.mxu1 %vm502_vm2, %v2966_v46  ;;  %v2975_v9 = vsel %vm2913_vm7, %v2965_v37, %v2974_v28  ;;  %v3004_v36 = vshrl.u32 %v6410_v53, 16 }
 0x11d   : > { %v6599_v27 = vadd.f32 %v5277_v23, %v868_v26  ;;  %5495 = vmatprep.mubr.msk.bf16.mxu0 %vm502_vm2, %v3367_v31  ;;  %v875_v26 = vpop.f32.mrf.mxu1 }
 0x11e   : > { %v1137_v33 = vpop.f32.mrf.mxu0  ;;  %v876_v58 = vadd.f32 %v875_v26, %v6493_v32  ;;  %v2988_v24 = vrot.slane %v2986_v43, 2  ;;  %v2984_v32 = vsel %vm2913_vm7, %v2974_v28, %v2983_v59 }
 0x11f   : > { %v6608_v5 = vadd.f32 %v1137_v33, %v860_v41  ;;  %v5244_v44 = vpop.f32.mrf.mxu1  ;;  %v3371_v41 = vsel %vm3360_vm6, %v3368_v13, %v3370_v48 }
 0x120   : > { %v5278_v50 = vpop.f32.mrf.mxu0  ;;  %v887_v0 = vadd.f32 %v5244_v44, %v6499_v11  ;;  %v3372_v11 = vrot.slane %v6352_v14, 3  ;;  %v2992_v45 = vor.u32 %v2991_v18, %v2988_v24  ;;  %v3013_v14 = vshrl.u32 %v6418_v49, 16 }
 0x121   : > { %v6614_v60 = vadd.f32 %v5278_v50, %v871_v51  ;;  %v878_v47 = vpop.f32.mrf.mxu1  ;;  %v2997_v51 = vrot.slane %v2995_v39, 2  ;;  %v3006_v44 = vrot.slane %v3004_v36, 2  ;;  %v3034_v36 = vshll.u32 %v6450_v4, 16 }
 0x122   : > { %v1140_v54 = vpop.f32.mrf.mxu0  ;;  %v879_v23 = vadd.f32 %v878_v47, %v6510_v1  ;;  %v3007_v1 = vshll.u32 %v6410_v53, 16  ;;  %v3373_v26 = vsel %vm3360_vm6, %v3370_v48, %v3372_v11  ;;  %v2993_v39 = vsel %vm2913_vm7, %v2983_v59, %v2992_v45 }
 0x123   : > { %v6619_v31 = vadd.f32 %v1140_v54, %v863_v17  ;;  %v5247_v62 = vpop.f32.mrf.mxu1  ;;  %5462 = vmatmul.mubr.msk.bf16.gmra.mxu1 %vm502_vm2, %v2975_v9  ;;  %v3374_v17 = vrot.slane %v6356_v30, 3  ;;  %v3001_v10 = vor.u32 %v3000_v3, %v2997_v51  ;;  %v3022_v51 = vshrl.u32 %v6442_v56, 16 }
 0x124   : > { %v5281_v63 = vpop.f32.mrf.mxu0  ;;  %5496 = vmatmul.mubr.msk.bf16.gmra.mxu0 %vm502_vm2, %v3369_v42  ;;  %5465 = vmatprep.mubr.msk.bf16.mxu1 %vm502_vm2, %v2984_v32  ;;  %v3009_v54 = vrot.slane %v3007_v1, 3  ;;  %v3378_v32 = vrot.slane %v6386_v8, 3  ;;  %v3025_v3 = vshll.u32 %v6442_v56, 16 }
 0x125   : > { %v6625_v46 = vadd.f32 %v5281_v63, %v884_v16  ;;  %5499 = vmatprep.mubr.msk.bf16.mxu0 %vm502_vm2, %v3371_v41  ;;  %v891_v33 = vpop.f32.mrf.mxu1  ;;  %v3016_v16 = vshll.u32 %v6418_v49, 16  ;;  %v3375_v61 = vsel %vm3360_vm6, %v3372_v11, %v3374_v17  ;;  %v3002_v18 = vsel %vm2913_vm7, %v2992_v45, %v3001_v10 }
 0x126   : > { %v1153_v37 = vpop.f32.mrf.mxu0  ;;  %v892_v9 = vadd.f32 %v891_v33, %v6372_v38  ;;  %v3010_v38 = vor.u32 %v3009_v54, %v3006_v44  ;;  %v3031_v45 = vshrl.u32 %v6450_v4, 16 }
 0x127   : > { %v6631_v13 = vadd.f32 %v1153_v37, %v876_v58  ;;  %v5248_v30 = vpop.f32.mrf.mxu1  ;;  %v900_v58 = vadd.f32 %v5247_v62, %v6363_v52  ;;  %v3018_v48 = vrot.slane %v3016_v16, 3  ;;  %v3376_v52 = vrot.slane %v6378_v20, 3 }
 0x128   : > { %v5282_v43 = vpop.f32.mrf.mxu0  ;;  %v3024_v16 = vrot.slane %v3022_v51, 2  ;;  %v3033_v44 = vrot.slane %v3031_v45, 2 }
 0x129   : > { %v6638_v28 = vadd.f32 %v5282_v43, %v887_v0  ;;  %v894_v41 = vpop.f32.mrf.mxu1  ;;  %v3015_v0 = vrot.slane %v3013_v14, 2  ;;  %v3377_v33 = vsel %vm3360_vm6, %v3374_v17, %v3376_v52  ;;  %v3379_v14 = vsel %vm3360_vm6, %v3376_v52, %v3378_v32 }
 0x12a   : > { %v1156_v50 = vpop.f32.mrf.mxu0  ;;  %v895_v8 = vadd.f32 %v894_v41, %v6388_v25  ;;  %v3036_v17 = vrot.slane %v3034_v36, 3 }
 0x12b   : > { %v6644_v42 = vadd.f32 %v1156_v50, %v879_v23  ;;  %v5251_v59 = vpop.f32.mrf.mxu1  ;;  %5466 = vmatmul.mubr.msk.bf16.gmra.mxu1 %vm502_vm2, %v2993_v39  ;;  %v903_v23 = vadd.f32 %v5248_v30, %v6380_v7  ;;  %v3019_v20 = vor.u32 %v3018_v48, %v3015_v0  ;;  %v3011_v39 = vsel %vm2913_vm7, %v3001_v10, %v3010_v38  ;;  %v8873_v48 = vld [vmem:[#allocation2_spill] sm:$0xff] }
 0x12c   : > { %v5285_v24 = vpop.f32.mrf.mxu0  ;;  %5500 = vmatmul.mubr.msk.bf16.gmra.mxu0 %vm502_vm2, %v3373_v26  ;;  %5469 = vmatprep.mubr.msk.bf16.mxu1 %vm502_vm2, %v3002_v18  ;;  %v3027_v26 = vrot.slane %v3025_v3, 3  ;;  %v916_v30 = vadd.f32 %v5251_v59, %v6395_v34  ;;  %v3380_v34 = vrot.slane %v6410_v53, 3  ;;  %v3382_v0 = vrot.slane %v6418_v49, 3 }
 0x12d   : > { %v6649_v47 = vadd.f32 %v5285_v24, %v900_v58  ;;  %5503 = vmatprep.mubr.msk.bf16.mxu0 %vm502_vm2, %v3375_v61  ;;  %v907_v62 = vpop.f32.mrf.mxu1  ;;  %v3020_v25 = vsel %vm2913_vm7, %v3010_v38, %v3019_v20  ;;  %v3037_v53 = vor.u32 %v3036_v17, %v3033_v44  ;;  %v8878_v17 = vld [vmem:[#allocation5_spill] sm:$0xff] }
 0x12e   : > { %v1169_v63 = vpop.f32.mrf.mxu0  ;;  %v908_v54 = vadd.f32 %v907_v62, %v6404_v35  ;;  %v3028_v18 = vor.u32 %v3027_v26, %v3024_v16  ;;  %v8874_v35 = vld [vmem:[#allocation10_spill] sm:$0xff]  ;;  %v3381_v36 = vsel %vm3360_vm6, %v3378_v32, %v3380_v34 }
 0x12f   : > { %v6658_v11 = vadd.f32 %v1169_v63, %v892_v9  ;;  %v5252_v43 = vpop.f32.mrf.mxu1  ;;  %v3040_v59 = vshrl.u32 %v8874_v35, 16  ;;  %v3043_v63 = vshll.u32 %v8874_v35, 16 }
 0x130   : > { %v5286_v37 = vpop.f32.mrf.mxu0  ;;  %v919_v9 = vadd.f32 %v5252_v43, %v8873_v48  ;;  %v3029_v43 = vsel %vm2913_vm7, %v3019_v20, %v3028_v18  ;;  %v3384_v20 = vrot.slane %v6442_v56, 3  ;;  %v3386_v48 = vrot.slane %v6450_v4, 3  ;;  %v8881_v4 = vld [vmem:[#allocation7_spill] sm:$0xff] }
 0x131   : > { %v6664_v1 = vadd.f32 %v5286_v37, %v903_v23  ;;  %v910_v61 = vpop.f32.mrf.mxu1  ;;  %v8875_v23 = vld [vmem:[#allocation12_spill] sm:$0xff]  ;;  %v8876_v37 = vld [vmem:[#allocation3_spill] sm:$0xff] }
 0x132   : > { %v1172_v7 = vpop.f32.mrf.mxu0  ;;  %v3049_v38 = vshrl.u32 %v8875_v23, 16  ;;  %v3052_v62 = vshll.u32 %v8875_v23, 16  ;;  %v911_v45 = vadd.f32 %v910_v61, %v8876_v37  ;;  %v3038_v61 = vsel %vm2913_vm7, %v3028_v18, %v3037_v53  ;;  %v8880_v37 = vld [vmem:[#allocation14_spill] sm:$0xff] }
 0x133   : > { %v6669_v50 = vadd.f32 %v1172_v7, %v895_v8  ;;  %v5255_v24 = vpop.f32.mrf.mxu1  ;;  %5470 = vmatmul.mubr.msk.bf16.gmra.mxu1 %vm502_vm2, %v3011_v39  ;;  %v3383_v7 = vsel %vm3360_vm6, %v3380_v34, %v3382_v0  ;;  %v3045_v39 = vrot.slane %v3043_v63, 3  ;;  %v3061_v18 = vshll.u32 %v6508_v57, 16 }
 0x134   : > { %v5289_v58 = vpop.f32.mrf.mxu0  ;;  %5504 = vmatmul.mubr.msk.bf16.gmra.mxu0 %vm502_vm2, %v3377_v33  ;;  %5473 = vmatprep.mubr.msk.bf16.mxu1 %vm502_vm2, %v3020_v25  ;;  %v3051_v44 = vrot.slane %v3049_v38, 2  ;;  %v3054_v32 = vrot.slane %v3052_v62, 3 }
 0x135   : > { %v6675_v41 = vadd.f32 %v5289_v58, %v916_v30  ;;  %5507 = vmatprep.mubr.msk.bf16.mxu0 %vm502_vm2, %v3379_v14  ;;  %v923_v51 = vpop.f32.mrf.mxu1  ;;  %v8877_v14 = vld [vmem:[#allocation4_spill] sm:$0xff]  ;;  %v3042_v30 = vrot.slane %v3040_v59, 2  ;;  %v8879_v59 = vld [vmem:[#allocation6_spill] sm:$0xff] }
 0x136   : > { %v1185_v10 = vpop.f32.mrf.mxu0  ;;  %v932_v16 = vadd.f32 %v5255_v24, %v8877_v14  ;;  %v3055_v62 = vor.u32 %v3054_v32, %v3051_v44 }
 0x137   : > { %v6682_v52 = vadd.f32 %v1185_v10, %v908_v54  ;;  %v5256_v8 = vpop.f32.mrf.mxu1  ;;  %v924_v54 = vadd.f32 %v923_v51, %v8878_v17  ;;  %v3046_v51 = vor.u32 %v3045_v39, %v3042_v30  ;;  %v6721_v30 = vld [vmem:[%s5744_s26 + $0xa0] ss:$0 sps:$4 sm:$0x77]   ;;  %v8882_v39 = vld [vmem:[#allocation8_spill] sm:$0xff] }
 0x138   : > { %v5290_v3 = vpop.f32.mrf.mxu0  ;;  %v935_v63 = vadd.f32 %v5256_v8, %v8879_v59 }
 0x139   : > { %v6690_v49 = vadd.f32 %v5290_v3, %v919_v9  ;;  %v926_v58 = vpop.f32.mrf.mxu1  ;;  %v3058_v9 = vshrl.u32 %v6508_v57, 16  ;;  %v3047_v17 = vsel %vm2913_vm7, %v3037_v53, %v3046_v51 }
 0x13a   : > { %v1188_v33 = vpop.f32.mrf.mxu0 }
 0x13b   : > { %v6696_v26 = vadd.f32 %v1188_v33, %v911_v45  ;;  %v5259_v34 = vpop.f32.mrf.mxu1  ;;  %5474 = vmatmul.mubr.msk.bf16.gmra.mxu1 %vm502_vm2, %v3029_v43  ;;  %v3067_v45 = vshrl.u32 %v8880_v37, 16  ;;  %v927_v33 = vadd.f32 %v926_v58, %v8881_v4  ;;  %v3390_v4 = vrot.slane %v8875_v23, 3 }
 0x13c   : > { %v5293_v25 = vpop.f32.mrf.mxu0  ;;  %5508 = vmatmul.mubr.msk.bf16.gmra.mxu0 %vm502_vm2, %v3381_v36  ;;  %5477 = vmatprep.mubr.msk.bf16.mxu1 %vm502_vm2, %v3038_v61  ;;  %v3070_v36 = vshll.u32 %v8880_v37, 16  ;;  %v3063_v61 = vrot.slane %v3061_v18, 3  ;;  %v948_v44 = vadd.f32 %v5259_v34, %v8882_v39  ;;  %v3388_v34 = vrot.slane %v8874_v35, 3 }
 0x13d   : > { %v6701_v10 = vadd.f32 %v5293_v25, %v932_v16  ;;  %5511 = vmatprep.mubr.msk.bf16.mxu0 %vm502_vm2, %v3383_v7  ;;  %v939_v38 = vpop.f32.mrf.mxu1  ;;  %v3385_v7 = vsel %vm3360_vm6, %v3382_v0, %v3384_v20  ;;  %v3387_v16 = vsel %vm3360_vm6, %v3384_v20, %v3386_v48  ;;  %v3060_v25 = vrot.slane %v3058_v9, 2 }
 0x13e   : > { %v1201_v24 = vpop.f32.mrf.mxu0  ;;  %v3056_v0 = vsel %vm2913_vm7, %v3046_v51, %v3055_v62  ;;  %v3072_v59 = vrot.slane %v3070_v36, 3  ;;  %v8884_v51 = vld [vmem:[#allocation11_spill] sm:$0xff] }
 0x13f   : > { %v6710_v3 = vadd.f32 %v1201_v24, %v924_v54  ;;  %v5260_v8 = vpop.f32.mrf.mxu1  ;;  %v3069_v24 = vrot.slane %v3067_v45, 2  ;;  %v8885_v36 = vld [vmem:[#allocation15_spill] sm:$0xff] }
 0x140   : > { %v5294_v56 = vpop.f32.mrf.mxu0  ;;  %v951_v45 = vadd.f32 %v5260_v8, %v8884_v51 }
 0x141   : > { %v6716_v43 = vadd.f32 %v5294_v56, %v935_v63  ;;  %v942_v54 = vpop.f32.mrf.mxu1  ;;  %v8883_v63 = vld [vmem:[#allocation9_spill] sm:$0xff]  ;;  %v3064_v56 = vor.u32 %v3063_v61, %v3060_v25  ;;  %v3073_v39 = vor.u32 %v3072_v59, %v3069_v24  ;;  %v8887_v25 = vld [vmem:[#allocation16_spill] sm:$0xff] }
 0x142   : > { %v1204_v14 = vpop.f32.mrf.mxu0  ;;  %v940_v20 = vadd.f32 %v939_v38, %v8883_v63 }
 0x143   : > { %v6724_v32 = vadd.f32 %v1204_v14, %v927_v33  ;;  %v5303_v18 = vpop.f32.mrf.mxu1  ;;  %5478 = vmatmul.mubr.msk.bf16.gmra.mxu1 %vm502_vm2, %v3047_v17  ;;  %v3076_v33 = vshrl.u32 %v6721_v30, 16  ;;  %v3079_v14 = vshll.u32 %v6721_v30, 16 }
 0x144   : > { %v5297_v58 = vpop.f32.mrf.mxu0  ;;  %5512 = vmatmul.mubr.msk.bf16.gmra.mxu0 %vm502_vm2, %v3385_v7  ;;  %v1673_v7 = vadd.f32 %v5303_v18, %v8885_v36  ;;  %5481 = vmatprep.mubr.msk.bf16.mxu1 %vm502_vm2, %v3056_v0  ;;  %v3391_v18 = vsel %vm3360_vm6, %v3388_v34, %v3390_v4 }
 0x145   : > { %v6730_v9 = vadd.f32 %v5297_v58, %v948_v44  ;;  %5515 = vmatprep.mubr.msk.bf16.mxu0 %vm502_vm2, %v3387_v16  ;;  %v1528_v35 = vpop.f32.mrf.mxu1  ;;  %v8886_v44 = vld [vmem:[#allocation13_spill] sm:$0xff]  ;;  %v3389_v58 = vsel %vm3360_vm6, %v3386_v48, %v3388_v34  ;;  %v3078_v51 = vrot.slane %v3076_v33, 2  ;;  %v3081_v24 = vrot.slane %v3079_v14, 3 }
 0x146   : > { %v1217_v53 = vpop.f32.mrf.mxu0  ;;  %v943_v17 = vadd.f32 %v942_v54, %v8886_v44  ;;  %v1671_v61 = vadd.f32 %v1528_v35, %v8887_v25  ;;  %v3394_v33 = vrot.slane %v8880_v37, 3 }
 0x147   : > { %v6739_v38 = vadd.f32 %v1217_v53, %v940_v20  ;;  %v5304_v8 = vpop.f32.mrf.mxu1  ;;  %v3065_v20 = vsel %vm2913_vm7, %v3055_v62, %v3064_v56  ;;  %v3392_v62 = vrot.slane %v6508_v57, 3 }
 0x148   : > { %v5298_v16 = vpop.f32.mrf.mxu0  ;;  %v1674_v0 = vadd.f32 %v5304_v8, %v6536_v19 }
 0x149   : > { %v6745_v23 = vadd.f32 %v5298_v16, %v951_v45  ;;  %v1531_v59 = vpop.f32.mrf.mxu1  ;;  %v3074_v45 = vsel %vm2913_vm7, %v3064_v56, %v3073_v39  ;;  %v3082_v56 = vor.u32 %v3081_v24, %v3078_v51  ;;  %v3393_v57 = vsel %vm3360_vm6, %v3390_v4, %v3392_v62 }
 0x14a   : > { %v1220_v63 = vpop.f32.mrf.mxu0  ;;  %v1672_v48 = vadd.f32 %v1531_v59, %v6542_v21  ;;  %v3396_v4 = vrot.slane %v6721_v30, 3 }
 0x14b   : > { %v6751_v53 = vadd.f32 %v1220_v63, %v943_v17  ;;  %v5307_v34 = vpop.f32.mrf.mxu1  ;;  %5482 = vmatmul.mubr.msk.bf16.gmra.mxu1 %vm502_vm2, %v3065_v20 }
 0x14c   : > { %v5341_v54 = vpop.f32.mrf.mxu0  ;;  %5516 = vmatmul.mubr.msk.bf16.gmra.mxu0 %vm502_vm2, %v3389_v58  ;;  %v1677_v14 = vadd.f32 %v5307_v34, %v6547_v15  ;;  %5485 = vmatprep.mubr.msk.bf16.mxu1 %vm502_vm2, %v3074_v45  ;;  %v3395_v58 = vsel %vm3360_vm6, %v3392_v62, %v3394_v33 }
 0x14d   : > { %v6756_v36 = vadd.f32 %v5341_v54, %v1673_v7  ;;  %5519 = vmatprep.mubr.msk.bf16.mxu0 %vm502_vm2, %v3391_v18  ;;  %v1544_v21 = vpop.f32.mrf.mxu1 }
 0x14e   : > { %v1975_v19 = vpop.f32.mrf.mxu0  ;;  %v1675_v16 = vadd.f32 %v1544_v21, %v6555_v6 }
 0x14f   : > { %v6763_v35 = vadd.f32 %v1975_v19, %v1671_v61  ;;  %v5308_v17 = vpop.f32.mrf.mxu1  ;;  %v3083_v61 = vsel %vm2913_vm7, %v3073_v39, %v3082_v56 }
 0x150   : > { %v5342_v7 = vpop.f32.mrf.mxu0  ;;  %v1678_v37 = vadd.f32 %v5308_v17, %v6561_v22 }
 0x151   : > { %v6767_v44 = vadd.f32 %v5342_v7, %v1674_v0  ;;  %v1547_v8 = vpop.f32.mrf.mxu1 }
 0x152   : > { %v1978_v25 = vpop.f32.mrf.mxu0  ;;  %v1676_v6 = vadd.f32 %v1547_v8, %v6565_v55  ;;  %v3397_v55 = vsel %vm3360_vm6, %v3394_v33, %v3396_v4 }
 0x153   : > { %v6772_v15 = vadd.f32 %v1978_v25, %v1672_v48  ;;  %v5311_v18 = vpop.f32.mrf.mxu1  ;;  %5486 = vmatmul.mubr.msk.bf16.gmra.mxu1 %vm502_vm2, %v3083_v61 }
 0x154   : > { %v5345_v63 = vpop.f32.mrf.mxu0  ;;  %5520 = vmatmul.mubr.msk.bf16.gmra.mxu0 %vm502_vm2, %v3393_v57  ;;  %v1681_v0 = vadd.f32 %v5311_v18, %v6571_v40 }
 0x155   : > { %v6777_v20 = vadd.f32 %v5345_v63, %v1677_v14  ;;  %5523 = vmatprep.mubr.msk.bf16.mxu0 %vm502_vm2, %v3395_v58  ;;  %v1560_v39 = vpop.f32.mrf.mxu1 }
 0x156   : > { %v1991_v22 = vpop.f32.mrf.mxu0  ;;  %v1679_v59 = vadd.f32 %v1560_v39, %v6578_v29 }
 0x157   : > { %v6783_v51 = vadd.f32 %v1991_v22, %v1675_v16  ;;  %v5312_v45 = vpop.f32.mrf.mxu1 }
 0x158   : > { %v5346_v24 = vpop.f32.mrf.mxu0  ;;  %v1682_v30 = vadd.f32 %v5312_v45, %v6586_v2 }
 0x159   : > { %v6786_v54 = vadd.f32 %v5346_v24, %v1678_v37  ;;  %v1563_v34 = vpop.f32.mrf.mxu1 }
 0x15a   : > { %v1994_v48 = vpop.f32.mrf.mxu0  ;;  %v1680_v40 = vadd.f32 %v1563_v34, %v6593_v12 }
 0x15b   : > { %v6790_v62 = vadd.f32 %v1994_v48, %v1676_v6  ;;  %v5315_v56 = vpop.f32.mrf.mxu1 }
 0x15c   : > { %v5349_v19 = vpop.f32.mrf.mxu0  ;;  %5524 = vmatmul.mubr.msk.bf16.gmra.mxu0 %vm502_vm2, %v3397_v55  ;;  %v1685_v21 = vadd.f32 %v5315_v56, %v6599_v27 }
 0x15d   : > { %v6794_v14 = vadd.f32 %v5349_v19, %v1681_v0  ;;  %v1576_v33 = vpop.f32.mrf.mxu1 }
 0x15e   : > { %v2007_v29 = vpop.f32.mrf.mxu0  ;;  %v1683_v2 = vadd.f32 %v1576_v33, %v6608_v5 }
 0x15f   : > { %v6797_v7 = vadd.f32 %v2007_v29, %v1679_v59  ;;  %v5316_v17 = vpop.f32.mrf.mxu1 }
 0x160   : > { %v5350_v16 = vpop.f32.mrf.mxu0  ;;  %v1686_v58 = vadd.f32 %v5316_v17, %v6614_v60 }
 0x161   : > { %v6800_v57 = vadd.f32 %v5350_v16, %v1682_v30  ;;  %v1579_v12 = vpop.f32.mrf.mxu1 }
 0x162   : > { %v2010_v25 = vpop.f32.mrf.mxu0  ;;  %v1684_v8 = vadd.f32 %v1579_v12, %v6619_v31 }
 0x163   : > { %v6803_v37 = vadd.f32 %v2010_v25, %v1680_v40  ;;  %v5319_v27 = vpop.f32.mrf.mxu1 }
 0x164   : > { %v5353_v61 = vpop.f32.mrf.mxu0  ;;  %v1689_v4 = vadd.f32 %v5319_v27, %v6625_v46 }
 0x165   : > { %v6806_v63 = vadd.f32 %v5353_v61, %v1685_v21  ;;  %v1592_v5 = vpop.f32.mrf.mxu1 }
 0x166   : > { %v2023_v6 = vpop.f32.mrf.mxu0  ;;  %v1687_v0 = vadd.f32 %v1592_v5, %v6631_v13 }
 0x167   : > { %v6809_v18 = vadd.f32 %v2023_v6, %v1683_v2  ;;  %v5320_v60 = vpop.f32.mrf.mxu1 }
 0x168   : > { %v5354_v22 = vpop.f32.mrf.mxu0  ;;  %v1690_v59 = vadd.f32 %v5320_v60, %v6638_v28 }
 0x169   : > { %v6812_v39 = vadd.f32 %v5354_v22, %v1686_v58  ;;  %v1595_v31 = vpop.f32.mrf.mxu1 }
 0x16a   : > { %v2026_v24 = vpop.f32.mrf.mxu0  ;;  %v1688_v48 = vadd.f32 %v1595_v31, %v6644_v42 }
 0x16b   : > { %v6815_v55 = vadd.f32 %v2026_v24, %v1684_v8  ;;  %v5323_v46 = vpop.f32.mrf.mxu1 }
 0x16c   : > { %v5357_v45 = vpop.f32.mrf.mxu0  ;;  %v1693_v19 = vadd.f32 %v5323_v46, %v6649_v47 }
 0x16d   : > { %v6818_v30 = vadd.f32 %v5357_v45, %v1689_v4  ;;  %v1608_v13 = vpop.f32.mrf.mxu1 }
 0x16e   : > { %v2039_v34 = vpop.f32.mrf.mxu0  ;;  %v1691_v29 = vadd.f32 %v1608_v13, %v6658_v11 }
 0x16f   : > { %v6821_v40 = vadd.f32 %v2039_v34, %v1687_v0  ;;  %v5324_v28 = vpop.f32.mrf.mxu1 }
 0x170   : > { %v5358_v56 = vpop.f32.mrf.mxu0  ;;  %v1694_v16 = vadd.f32 %v5324_v28, %v6664_v1 }
 0x171   : > { %v6824_v21 = vadd.f32 %v5358_v56, %v1690_v59  ;;  %v1611_v42 = vpop.f32.mrf.mxu1 }
 0x172   : > { %v2042_v33 = vpop.f32.mrf.mxu0  ;;  %v1692_v25 = vadd.f32 %v1611_v42, %v6669_v50 }
 0x173   : > { %v6827_v2 = vadd.f32 %v2042_v33, %v1688_v48  ;;  %v5327_v47 = vpop.f32.mrf.mxu1 }
 0x174   : > { %v5361_v17 = vpop.f32.mrf.mxu0  ;;  %v1697_v61 = vadd.f32 %v5327_v47, %v6675_v41  ;;  %v3704_v41 = vlaneseq }
 0x175   : > { %v6830_v58 = vadd.f32 %v5361_v17, %v1693_v19  ;;  %v1624_v11 = vpop.f32.mrf.mxu1 }
 0x176   : > { %v2055_v12 = vpop.f32.mrf.mxu0  ;;  %v1695_v6 = vadd.f32 %v1624_v11, %v6682_v52  ;;  %v6850_v13 = vshrl.u32 %v3704_v41, 7 }
 0x177   : > { %v6833_v8 = vadd.f32 %v2055_v12, %v1691_v29  ;;  %v5328_v1 = vpop.f32.mrf.mxu1 }
 0x178   : > { %v5362_v27 = vpop.f32.mrf.mxu0  ;;  %v1698_v22 = vadd.f32 %v5328_v1, %v6690_v49  ;;  %v3707_v17 = vadd.s32 16, %v6850_v13 }
 0x179   : > { %v6836_v4 = vadd.f32 %v5362_v27, %v1694_v16  ;;  %v1627_v50 = vpop.f32.mrf.mxu1 }
 0x17a   : > { %v2058_v5 = vpop.f32.mrf.mxu0  ;;  %v1696_v24 = vadd.f32 %v1627_v50, %v6696_v26 }
 0x17b   : > { %v6839_v0 = vadd.f32 %v2058_v5, %v1692_v25  ;;  %v5331_v31 = vpop.f32.mrf.mxu1 }
 0x17c   : > { %v5365_v60 = vpop.f32.mrf.mxu0  ;;  %v1701_v48 = vadd.f32 %v5331_v31, %v6701_v10 }
 0x17d   : > { %v6842_v59 = vadd.f32 %v5365_v60, %v1697_v61  ;;  %v1640_v46 = vpop.f32.mrf.mxu1 }
 0x17e   : > { %v2071_v45 = vpop.f32.mrf.mxu0  ;;  %v1699_v19 = vadd.f32 %v1640_v46, %v6710_v3  ;;  %v6879_v46 = vadd.s32 24, %v6850_v13 }
 0x17f   : > { %v6845_v52 = vadd.f32 %v2071_v45, %v1695_v6  ;;  %v5332_v56 = vpop.f32.mrf.mxu1  ;;  %v6865_v6 = vmul.u32.u64.low 3817748708, %v3707_v17  ;;  %v6866_v1 = vmul.u32.u64.high 3817748708, %v3707_v17, %v6865_v6 }
 0x180   : > { %v5366_v34 = vpop.f32.mrf.mxu0  ;;  %v1702_v26 = vadd.f32 %v5332_v56, %v6716_v43 }
 0x181   : > { %v6848_v49 = vadd.f32 %v5366_v34, %v1698_v22  ;;  %v1643_v33 = vpop.f32.mrf.mxu1  ;;  %v6882_v34 = vadd.s32 8, %v6850_v13 }
 0x182   : > { %v2074_v29 = vpop.f32.mrf.mxu0  ;;  %v1700_v10 = vadd.f32 %v1643_v33, %v6724_v32 }
 0x183   : > { %v6853_v28 = vadd.f32 %v2074_v29, %v1696_v24  ;;  %v5335_v25 = vpop.f32.mrf.mxu1  ;;  %v6888_v29 = vadd.s32 48, %v6850_v13 }
 0x184   : > { %v5369_v16 = vpop.f32.mrf.mxu0  ;;  %v1705_v47 = vadd.f32 %v5335_v25, %v6730_v9 }
 0x185   : > { %v6856_v42 = vadd.f32 %v5369_v16, %v1701_v48  ;;  %v1656_v61 = vpop.f32.mrf.mxu1  ;;  %v3769_v16 = vshrl.u32 %v6866_v1, 4 }
 0x186   : > { %v2087_v3 = vpop.f32.mrf.mxu0  ;;  %v1703_v43 = vadd.f32 %v1656_v61, %v6739_v38  ;;  %v6875_v31 = vmul.u32.u64.low 3817748708, %v6850_v13  ;;  %v6876_v38 = vmul.u32.u64.high 3817748708, %v6850_v13, %v6875_v31 }
 0x187   : > { %v6860_v12 = vadd.f32 %v2087_v3, %v1699_v19  ;;  %v5336_v32 = vpop.f32.mrf.mxu1 }
 0x188   : > { %v5370_v11 = vpop.f32.mrf.mxu0  ;;  %v1706_v22 = vadd.f32 %v5336_v32, %v6745_v23 }
 0x189   : > { %v6863_v27 = vadd.f32 %v5370_v11, %v1702_v26  ;;  %v1659_v60 = vpop.f32.mrf.mxu1 }
 0x18a   : > { %v2090_v5 = vpop.f32.mrf.mxu0  ;;  %v1704_v9 = vadd.f32 %v1659_v60, %v6751_v53  ;;  %v3747_v60 = vshrl.u32 %v6876_v38, 4 }
 0x18b   : > { %v6869_v50 = vadd.f32 %v2090_v5, %v1700_v10  ;;  %v5379_v45 = vpop.f32.mrf.mxu1  ;;  %v6906_v32 = vmul.u32.u64.low 3817748708, %v6888_v29  ;;  %v6907_v5 = vmul.u32.u64.high 3817748708, %v6888_v29, %v6906_v32 }
 0x18c   : > { %v5373_v24 = vpop.f32.mrf.mxu0  ;;  %v2434_v23 = vadd.f32 %v5379_v45, %v6756_v36  ;;  %v6899_v36 = vmul.u32.u64.low 3817748708, %v6882_v34  ;;  %v6900_v61 = vmul.u32.u64.high 3817748708, %v6882_v34, %v6899_v36  ;;  %v3770_v45 = vmul.u32 18, %v3769_v16 }
 0x18d   : > { %v6872_v41 = vadd.f32 %v5373_v24, %v1705_v47  ;;  %v2289_v56 = vpop.f32.mrf.mxu1  ;;  %v6895_v3 = vmul.u32.u64.low 3817748708, %v6879_v46  ;;  %v6896_v47 = vmul.u32.u64.high 3817748708, %v6879_v46, %v6895_v3  ;;  %v3748_v38 = vmul.u32 18, %v3747_v60 }
 0x18e   : > { %v2103_v48 = vpop.f32.mrf.mxu0  ;;  %v2432_v26 = vadd.f32 %v2289_v56, %v6763_v35  ;;  %v6925_v16 = vsub.s32 %v3707_v17, %v3770_v45  ;;  %v3813_v60 = vshrl.u32 %v6907_v5, 4 }
 0x18f   : > { %v6885_v19 = vadd.f32 %v2103_v48, %v1703_v43  ;;  %v5380_v10 = vpop.f32.mrf.mxu1 }
 0x190   : > { %v5374_v53 = vpop.f32.mrf.mxu0  ;;  %v2435_v11 = vadd.f32 %v5380_v10, %v6767_v44  ;;  %v6920_v10 = vadd.s32 56, %v6850_v13  ;;  %8890 = vst [vmem:[#allocation12_spill] sm:$0xff] %v6925_v16  ;;  %vm4139_vm8 = vcmp.ne.s32.totalorder %v6925_v16, 0  ;;  %vm4175_vm9 = vcmp.lt.s32.totalorder %v6925_v16, 0 }
 0x191   : > { %v6891_v33 = vadd.f32 %v5374_v53, %v1706_v22  ;;  %v2292_v6 = vpop.f32.mrf.mxu1  ;;  %vm7020_vm14 = vmand %vm4175_vm9, %vm4139_vm8 }
 0x192   : > { %v2106_v25 = vpop.f32.mrf.mxu0  ;;  %v2433_v1 = vadd.f32 %v2292_v6, %v6772_v15 }
 0x193   : > { %v6903_v43 = vadd.f32 %v2106_v25, %v1704_v9  ;;  %v5383_v24 = vpop.f32.mrf.mxu1  ;;  %v6917_v9 = vadd.s32 32, %v6850_v13 }
 0x194   : > { %v5417_v35 = vpop.f32.mrf.mxu0  ;;  %v2438_v48 = vadd.f32 %v5383_v24, %v6777_v20  ;;  %v3780_v20 = vshrl.u32 %v6896_v47, 4  ;;  %v6938_v24 = vmul.u32.u64.low 3817748708, %v6920_v10  ;;  %v6939_v17 = vmul.u32.u64.high 3817748708, %v6920_v10, %v6938_v24 }
 0x195   : > { %v6910_v22 = vadd.f32 %v5417_v35, %v2434_v23  ;;  %v2305_v56 = vpop.f32.mrf.mxu1  ;;  %v6933_v35 = vmul.u32.u64.low 3817748708, %v6917_v9  ;;  %v6934_v32 = vmul.u32.u64.high 3817748708, %v6917_v9, %v6933_v35  ;;  %v6942_v47 = vadd.s32 40, %v6850_v13 }
 0x196   : > { %v2728_v31 = vpop.f32.mrf.mxu0  ;;  %v2436_v15 = vadd.f32 %v2305_v56, %v6783_v51  ;;  %v3781_v5 = vmul.u32 18, %v3780_v20  ;;  %v3814_v35 = vmul.u32 18, %v3813_v60 }
 0x197   : > { %v6914_v44 = vadd.f32 %v2728_v31, %v2432_v26  ;;  %v5384_v25 = vpop.f32.mrf.mxu1  ;;  %v3758_v26 = vshrl.u32 %v6900_v61, 4 }
 0x198   : > { %v5418_v53 = vpop.f32.mrf.mxu0  ;;  %v2439_v36 = vadd.f32 %v5384_v25, %v6786_v54  ;;  %v6956_v25 = vadd.s32 18, %v6925_v16 }
 0x199   : > { %8888 = vst [vmem:[#allocation2_spill] sm:$0xff] %v6914_v44  ;;  %v6923_v23 = vadd.f32 %v5418_v53, %v2435_v11  ;;  %v2308_v51 = vpop.f32.mrf.mxu1 }
 0x19a   : > { %v2731_v3 = vpop.f32.mrf.mxu0  ;;  %v2437_v61 = vadd.f32 %v2308_v51, %v6790_v62  ;;  %v3759_v62 = vmul.u32 18, %v3758_v26 }
 0x19b   : > { %8889 = vst [vmem:[#allocation10_spill] sm:$0xff] %v6923_v23  ;;  %v6930_v6 = vadd.f32 %v2731_v3, %v2433_v1  ;;  %v6948_v1 = vsub.s32 %v6850_v13, %v3748_v38  ;;  %v5387_v31 = vpop.f32.mrf.mxu1  ;;  %v6959_v38 = vmul.u32.u64.low 3817748708, %v6942_v47  ;;  %v6960_v51 = vmul.u32.u64.high 3817748708, %v6942_v47, %v6959_v38 }
 0x19c   : > { %v5421_v11 = vpop.f32.mrf.mxu0  ;;  %v2442_v56 = vadd.f32 %v5387_v31, %v6794_v14  ;;  %v6970_v14 = vadd.s32 64, %v6850_v13  ;;  %v6977_v31 = vsub.s32 %v6879_v46, %v3781_v5  ;;  %v3824_v46 = vshrl.u32 %v6939_v17, 4 }
 0x19d   : > { %8891 = vst [vmem:[#allocation3_spill] sm:$0xff] %v6930_v6  ;;  %v6945_v54 = vadd.f32 %v5421_v11, %v2438_v48  ;;  %v2321_v48 = vpop.f32.mrf.mxu1  ;;  %v6963_v11 = vadd.s32 80, %v6850_v13  ;;  %vm4137_vm10 = vcmp.ne.s32.totalorder %v6948_v1, 0  ;;  %vm4173_vm11 = vcmp.lt.s32.totalorder %v6948_v1, 0 }
 0x19e   : > { %v2744_v45 = vpop.f32.mrf.mxu0  ;;  %v2440_v20 = vadd.f32 %v2321_v48, %v6797_v7  ;;  %v6974_v60 = vadd.s32 18, %v6948_v1  ;;  %v6986_v48 = vsub.s32 %v6882_v34, %v3759_v62  ;;  %vm4140_vm12 = vcmp.ne.s32.totalorder %v6977_v31, 0  ;;  %vm7035_vm2 = vmand %vm4173_vm11, %vm4137_vm10 }
 0x19f   : > { %8892 = vst [vmem:[#allocation4_spill] sm:$0xff] %v6945_v54  ;;  %v6953_v53 = vadd.f32 %v2744_v45, %v2436_v15  ;;  %v5388_v15 = vpop.f32.mrf.mxu1  ;;  %v6980_v45 = vadd.s32 88, %v6850_v13  ;;  %v6994_v5 = vmul.u32.u64.low 3817748708, %v6963_v11  ;;  %v6995_v54 = vmul.u32.u64.high 3817748708, %v6963_v11, %v6994_v5 }
 0x1a0   : > { %v5422_v3 = vpop.f32.mrf.mxu0  ;;  %v2443_v7 = vadd.f32 %v5388_v15, %v6800_v57  ;;  %v7001_v34 = vmul.u32.u64.low 3817748708, %v6970_v14  ;;  %v7002_v62 = vmul.u32.u64.high 3817748708, %v6970_v14, %v7001_v34  ;;  %v7010_v17 = vadd.s32 72, %v6850_v13 }
 0x1a1   : > { %8893 = vst [vmem:[#allocation5_spill] sm:$0xff] %v6953_v53  ;;  %v6966_v24 = vadd.f32 %v5422_v3, %v2439_v36  ;;  %v3791_v3 = vshrl.u32 %v6934_v32, 4  ;;  %v2324_v38 = vpop.f32.mrf.mxu1  ;;  %v6990_v53 = vsub.s32 %v6888_v29, %v3814_v35  ;;  %vm4176_vm13 = vcmp.lt.s32.totalorder %v6977_v31, 0 }
 0x1a2   : > { %v2747_v26 = vpop.f32.mrf.mxu0  ;;  %v2441_v57 = vadd.f32 %v2324_v38, %v6803_v37  ;;  %v7006_v29 = vmul.u32.u64.low 3817748708, %v6980_v45  ;;  %v7007_v35 = vmul.u32.u64.high 3817748708, %v6980_v45, %v7006_v29  ;;  %vm4138_vm15 = vcmp.ne.s32.totalorder %v6986_v48, 0  ;;  %vm7044_vm4 = vmand %vm4176_vm13, %vm4140_vm12 }
 0x1a3   : > { %8894 = vst [vmem:[#allocation6_spill] sm:$0xff] %v6966_v24  ;;  %v6983_v36 = vadd.f32 %v2747_v26, %v2437_v61  ;;  %8896 = vst [vmem:[#allocation7_spill] sm:$0xff] %v6990_v53  ;;  %v5391_v32 = vpop.f32.mrf.mxu1  ;;  %vm4174_vm0 = vcmp.lt.s32.totalorder %v6986_v48, 0  ;;  %vm4143_vm1 = vcmp.ne.s32.totalorder %v6990_v53, 0  ;;  %vm4179_vm3 = vcmp.lt.s32.totalorder %v6990_v53, 0 }
 0x1a4   : > { %v5425_v24 = vpop.f32.mrf.mxu0  ;;  %v2446_v26 = vadd.f32 %v5391_v32, %v6806_v63  ;;  %v3802_v63 = vshrl.u32 %v6960_v51, 4  ;;  %v3825_v32 = vmul.u32 18, %v3824_v46  ;;  %v7049_v51 = vadd.s32 18, %v6977_v31  ;;  %vm7065_vm5 = vmand %vm4174_vm0, %vm4138_vm15 }
 0x1a5   : > { %8895 = vst [vmem:[#allocation14_spill] sm:$0xff] %v6983_v36  ;;  %v6998_v61 = vadd.f32 %v5425_v24, %v2442_v56  ;;  %v3792_v56 = vmul.u32 18, %v3791_v3  ;;  %v2337_v24 = vpop.f32.mrf.mxu1  ;;  %vm7087_vm6 = vmand %vm4179_vm3, %vm4143_vm1 }
 0x1a6   : > { %v2760_v15 = vpop.f32.mrf.mxu0 }
 0x1a7   : > { %8897 = vst [vmem:[#allocation8_spill] sm:$0xff] %v6998_v61  ;;  %v7013_v37 = vadd.f32 %v2760_v15, %v2440_v20  ;;  %v2444_v20 = vadd.f32 %v2337_v24, %v6809_v18  ;;  %v5392_v15 = vpop.f32.mrf.mxu1  ;;  %v7070_v61 = vadd.s32 18, %v6990_v53  ;;  %v7073_v36 = vsub.s32 %v6917_v9, %v3792_v56 }
 0x1a8   : > { %v5426_v38 = vpop.f32.mrf.mxu0  ;;  %v2447_v46 = vadd.f32 %v5392_v15, %v6812_v39  ;;  %v8910_v15 = vmov 0  ;;  %v3803_v9 = vmul.u32 18, %v3802_v63  ;;  %v3857_v56 = vshrl.u32 %v6995_v54, 4 }
 0x1a9   : > { %8898 = vst [vmem:[#allocation9_spill] sm:$0xff] %v7013_v37  ;;  %v7029_v3 = vadd.f32 %v5426_v38, %v2443_v7  ;;  %v7052_v7 = vadd.s32 18, %v6986_v48  ;;  %v7055_v24 = vmul.u32.u64.low 3817748708, %v7010_v17  ;;  %v7056_v38 = vmul.u32.u64.high 3817748708, %v7010_v17, %v7055_v24  ;;  %8909 = vst [vmem:[#allocation13_spill] sm:$0xff] %v7070_v61  ;;  %v2340_v6 = vpop.f32.mrf.mxu1 }
 0x1aa   : > { %v2763_v29 = vpop.f32.mrf.mxu0  ;;  %v8911_v15 = vsel %vm7087_vm6, 4294967295, %v8910_v15  ;;  %v7096_v39 = vsub.s32 %v6920_v10, %v3825_v32  ;;  %vm4141_vm7 = vcmp.ne.s32.totalorder %v7073_v36, 0  ;;  %vm4177_vm8 = vcmp.lt.s32.totalorder %v7073_v36, 0 }
 0x1ab   : > { %8901 = vst [vmem:[#allocation11_spill] sm:$0xff] %v7029_v3  ;;  %v7059_v3 = vadd.f32 %v2763_v29, %v2441_v57  ;;  %8912 = vst [vmem:[#allocation16_spill] sm:$0xff] %v8911_v15  ;;  %v2445_v29 = vadd.f32 %v2340_v6, %v6815_v55  ;;  %v3835_v57 = vshrl.u32 %v7002_v62, 4  ;;  %v5395_v23 = vpop.f32.mrf.mxu1  ;;  %v3868_v55 = vshrl.u32 %v7007_v35, 4 }
 0x1ac   : > { %v5429_v24 = vpop.f32.mrf.mxu0  ;;  %8914 = vst [vmem:[#allocation18_spill] sm:$0xff] %v7096_v39  ;;  %v7109_v6 = vadd.s32 112, %v6850_v13  ;;  %v2450_v10 = vadd.f32 %v5395_v23, %v6818_v30  ;;  %v7121_v35 = vadd.s32 18, %v7073_v36  ;;  %v3858_v30 = vmul.u32 18, %v3857_v56  ;;  %vm7190_vm0 = vmand %vm4177_vm8, %vm4141_vm7 }
 0x1ad   : > { %8906 = vst [vmem:[#allocation15_spill] sm:$0xff] %v7059_v3  ;;  %v7093_v3 = vadd.f32 %v5429_v24, %v2446_v26  ;;  %v2353_v63 = vpop.f32.mrf.mxu1  ;;  %v7124_v24 = vsub.s32 %v6942_v47, %v3803_v9  ;;  %vm4144_vm9 = vcmp.ne.s32.totalorder %v7096_v39, 0  ;;  %v3869_v54 = vmul.u32 18, %v3868_v55 }
 0x1ae   : > { %v2776_v44 = vpop.f32.mrf.mxu0  ;;  %vm4180_vm10 = vcmp.lt.s32.totalorder %v7096_v39, 0  ;;  %v7143_v56 = vadd.s32 18, %v7096_v39 }
 0x1af   : > { %8913 = vst [vmem:[#allocation17_spill] sm:$0xff] %v7093_v3  ;;  %v7112_v62 = vadd.f32 %v2776_v44, %v2444_v20  ;;  %v2448_v44 = vadd.f32 %v2353_v63, %v6821_v40  ;;  %v3836_v20 = vmul.u32 18, %v3835_v57  ;;  %v5396_v26 = vpop.f32.mrf.mxu1  ;;  %v7140_v40 = vadd.s32 96, %v6850_v13  ;;  %vm7200_vm15 = vmand %vm4180_vm10, %vm4144_vm9 }
 0x1b0   : > { %v5430_v32 = vpop.f32.mrf.mxu0  ;;  %v7132_v3 = vmul.u32.u64.low 3817748708, %v7109_v6  ;;  %v7133_v53 = vmul.u32.u64.high 3817748708, %v7109_v6, %v7132_v3  ;;  %v2451_v47 = vadd.f32 %v5396_v26, %v6824_v21  ;;  %vm4142_vm11 = vcmp.ne.s32.totalorder %v7124_v24, 0 }
 0x1b1   : > { %8915 = vst [vmem:[#allocation19_spill] sm:$0xff] %v7112_v62  ;;  %v7127_v23 = vadd.f32 %v5430_v32, %v2447_v46  ;;  %v3846_v62 = vshrl.u32 %v7056_v38, 4  ;;  %v2356_v46 = vpop.f32.mrf.mxu1  ;;  %vm4178_vm12 = vcmp.lt.s32.totalorder %v7124_v24, 0  ;;  %v7148_v3 = vsub.s32 %v6963_v11, %v3858_v30 }
 0x1b2   : > { %v2779_v16 = vpop.f32.mrf.mxu0  ;;  %v2449_v21 = vadd.f32 %v2356_v46, %v6827_v2  ;;  %v7154_v38 = vadd.s32 18, %v7124_v24  ;;  %v7160_v63 = vsub.s32 %v6980_v45, %v3869_v54  ;;  %v7166_v11 = vadd.s32 104, %v6850_v13  ;;  %vm7217_vm8 = vmand %vm4178_vm12, %vm4142_vm11 }
 0x1b3   : > { %8916 = vst [vmem:[#allocation20_spill] sm:$0xff] %v7127_v23  ;;  %v7136_v9 = vadd.f32 %v2779_v16, %v2445_v29  ;;  %8918 = vst [vmem:[#allocation22_spill] sm:$0xff] %v7148_v3  ;;  %v7157_v29 = vsub.s32 %v6970_v14, %v3836_v20  ;;  %v5399_v55 = vpop.f32.mrf.mxu1  ;;  %v3847_v32 = vmul.u32 18, %v3846_v62  ;;  %v7178_v45 = vadd.s32 18, %v7148_v3 }
 0x1b4   : > { %v5433_v57 = vpop.f32.mrf.mxu0  ;;  %8921 = vst [vmem:[#allocation25_spill] sm:$0xff] %v7160_v63  ;;  %v2454_v2 = vadd.f32 %v5399_v55, %v6830_v58  ;;  %v7172_v30 = vmul.u32.u64.low 3817748708, %v7140_v40  ;;  %v7173_v14 = vmul.u32.u64.high 3817748708, %v7140_v40, %v7172_v30  ;;  %v7181_v54 = vadd.s32 144, %v6850_v13 }
 0x1b5   : > { %8917 = vst [vmem:[#allocation21_spill] sm:$0xff] %v7136_v9  ;;  %v7151_v16 = vadd.f32 %v5433_v57, %v2450_v10  ;;  %8920 = vst [vmem:[#allocation24_spill] sm:$0xff] %v7157_v29  ;;  %v7163_v9 = vadd.s32 120, %v6850_v13  ;;  %v2369_v20 = vpop.f32.mrf.mxu1  ;;  %vm4145_vm1 = vcmp.ne.s32.totalorder %v7157_v29, 0  ;;  %vm4181_vm3 = vcmp.lt.s32.totalorder %v7157_v29, 0 }
 0x1b6   : > { %v2792_v26 = vpop.f32.mrf.mxu0  ;;  %8923 = vst [vmem:[#allocation27_spill] sm:$0xff] %v7178_v45  ;;  %v2452_v58 = vadd.f32 %v2369_v20, %v6833_v8  ;;  %vm4148_vm13 = vcmp.ne.s32.totalorder %v7160_v63, 0  ;;  %vm8933_vm9 = vcmp.ne.s32.totalorder %v7148_v3, 0  ;;  %vm8934_vm10 = vcmp.lt.s32.totalorder %v7148_v3, 0  ;;  %vm7263_vm11 = vmand %vm4181_vm3, %vm4145_vm1 }
 0x1b7   : > { %8919 = vst [vmem:[#allocation23_spill] sm:$0xff] %v7151_v16  ;;  %v7169_v10 = vadd.f32 %v2792_v26, %v2448_v44  ;;  %v5400_v57 = vpop.f32.mrf.mxu1  ;;  %v3901_v26 = vshrl.u32 %v7133_v53, 4  ;;  %vm7229_vm7 = vmand %vm8934_vm10, %vm8933_vm9  ;;  %v7249_v23 = vadd.s32 18, %v7157_v29  ;;  %vm8943_vm12 = vcmp.lt.s32.totalorder %v7160_v63, 0 }
 0x1b8   : > { %v5434_v46 = vpop.f32.mrf.mxu0  ;;  %v2455_v30 = vadd.f32 %v5400_v57, %v6836_v4  ;;  %v8935_v4 = vmov 0  ;;  %vm7281_vm1 = vmand %vm8943_vm12, %vm4148_vm13  ;;  %v8944_v16 = vmov 0 }
 0x1b9   : > { %8922 = vst [vmem:[#allocation26_spill] sm:$0xff] %v7169_v10  ;;  %v7184_v62 = vadd.f32 %v5434_v46, %v2451_v47  ;;  %v7207_v47 = vsub.s32 %v7010_v17, %v3847_v32  ;;  %v2372_v17 = vpop.f32.mrf.mxu1  ;;  %v8936_v4 = vsel %vm7229_vm7, 4294967295, %v8935_v4  ;;  %v8945_v16 = vsel %vm7281_vm1, 4294967295, %v8944_v16 }
 0x1ba   : > { %v2795_v55 = vpop.f32.mrf.mxu0  ;;  %8937 = vst [vmem:[#allocation31_spill] sm:$0xff] %v8936_v4  ;;  %8946 = vst [vmem:[#allocation35_spill] sm:$0xff] %v8945_v16  ;;  %v7700_v46 = vadd.s32 264, %v6850_v13 }
 0x1bb   : > { %8924 = vst [vmem:[#allocation28_spill] sm:$0xff] %v7184_v62  ;;  %8929 = vst [vmem:[#allocation29_spill] sm:$0xff] %v7207_v47  ;;  %v7211_v20 = vadd.f32 %v2795_v55, %v2449_v21  ;;  %v7222_v62 = vmul.u32.u64.low 3817748708, %v7163_v9  ;;  %v7223_v10 = vmul.u32.u64.high 3817748708, %v7163_v9, %v7222_v62  ;;  %v5403_v61 = vpop.f32.mrf.mxu1  ;;  %vm4146_vm3 = vcmp.ne.s32.totalorder %v7207_v47, 0 }
 0x1bc   : > { %v5437_v32 = vpop.f32.mrf.mxu0  ;;  %v7234_v53 = vmul.u32.u64.low 3817748708, %v7166_v11  ;;  %v7235_v21 = vmul.u32.u64.high 3817748708, %v7166_v11, %v7234_v53  ;;  %v7238_v57 = vmul.u32.u64.low 3817748708, %v7181_v54  ;;  %v7239_v55 = vmul.u32.u64.high 3817748708, %v7181_v54, %v7238_v57  ;;  %9036 = vst [vmem:[#allocation69_spill] sm:$0xff] %v7700_v46 }
 0x1bd   : > { %8930 = vst [vmem:[#allocation30_spill] sm:$0xff] %v7211_v20  ;;  %v2453_v62 = vadd.f32 %v2372_v17, %v6839_v0  ;;  %v7242_v20 = vadd.f32 %v5437_v32, %v2454_v2  ;;  %v8939_v2 = vmov 0  ;;  %v7268_v17 = vadd.s32 18, %v7160_v63 }
 0x1be   : > { %v2808_v15 = vpop.f32.mrf.mxu0  ;;  %v8940_v2 = vsel %vm7263_vm11, 4294967295, %v8939_v2  ;;  %v3902_v32 = vmul.u32 18, %v3901_v26  ;;  %v2458_v57 = vadd.f32 %v5403_v61, %v6842_v59  ;;  %v2385_v26 = vpop.f32.mrf.mxu1  ;;  %vm4182_vm9 = vcmp.lt.s32.totalorder %v7207_v47, 0 }
 0x1bf   : > { %8938 = vst [vmem:[#allocation32_spill] sm:$0xff] %v7242_v20  ;;  %8941 = vst [vmem:[#allocation33_spill] sm:$0xff] %v7268_v17  ;;  %v7271_v53 = vadd.f32 %v2808_v15, %v2452_v58  ;;  %v3879_v20 = vshrl.u32 %v7173_v14, 4  ;;  %v7289_v59 = vadd.s32 128, %v6850_v13  ;;  %v7292_v61 = vadd.s32 152, %v6850_v13 }
 0x1c0   : > { %v5438_v39 = vpop.f32.mrf.mxu0  ;;  %v2456_v15 = vadd.f32 %v2385_v26, %v6845_v52  ;;  %v7302_v0 = vadd.s32 136, %v6850_v13  ;;  %v7309_v4 = vadd.s32 18, %v7207_v47  ;;  %v7312_v52 = vsub.s32 %v7109_v6, %v3902_v32  ;;  %vm7324_vm13 = vmand %vm4182_vm9, %vm4146_vm3 }
 0x1c1   : > { %8942 = vst [vmem:[#allocation34_spill] sm:$0xff] %v7271_v53  ;;  %v7295_v58 = vadd.f32 %v5438_v39, %v2455_v30  ;;  %v5404_v53 = vpop.f32.mrf.mxu1  ;;  %v7315_v39 = vadd.s32 176, %v6850_v13  ;;  %v8951_v14 = vmov 0  ;;  %v3880_v45 = vmul.u32 18, %v3879_v20 }
 0x1c2   : > { %v2811_v3 = vpop.f32.mrf.mxu0  ;;  %8948 = vst [vmem:[#allocation37_spill] sm:$0xff] %v7309_v4  ;;  %8949 = vst [vmem:[#allocation38_spill] sm:$0xff] %v7312_v52  ;;  %v2459_v30 = vadd.f32 %v5404_v53, %v6848_v49  ;;  %v8952_v14 = vsel %vm7324_vm13, 4294967295, %v8951_v14  ;;  %v3890_v63 = vshrl.u32 %v7235_v21, 4  ;;  %v3945_v17 = vshrl.u32 %v7239_v55, 4 }
 0x1c3   : > { %8947 = vst [vmem:[#allocation36_spill] sm:$0xff] %v7295_v58  ;;  %v7318_v26 = vadd.f32 %v2811_v3, %v2453_v62  ;;  %8953 = vst [vmem:[#allocation40_spill] sm:$0xff] %v8952_v14  ;;  %v3912_v58 = vshrl.u32 %v7223_v10, 4  ;;  %v2388_v6 = vpop.f32.mrf.mxu1  ;;  %v7332_v49 = vadd.s32 160, %v6850_v13  ;;  %v7335_v3 = vadd.s32 184, %v6850_v13 }
 0x1c4   : > { %v5441_v32 = vpop.f32.mrf.mxu0  ;;  %v2457_v62 = vadd.f32 %v2388_v6, %v6853_v28  ;;  %vm4151_vm10 = vcmp.ne.s32.totalorder %v7312_v52, 0  ;;  %v7350_v55 = vmul.u32.u64.low 3817748708, %v7292_v61  ;;  %v7351_v29 = vmul.u32.u64.high 3817748708, %v7292_v61, %v7350_v55 }
 0x1c5   : > { %8950 = vst [vmem:[#allocation39_spill] sm:$0xff] %v7318_v26  ;;  %v7338_v53 = vadd.f32 %v5441_v32, %v2458_v57  ;;  %v7341_v20 = vmul.u32.u64.low 3817748708, %v7289_v59  ;;  %v7342_v26 = vmul.u32.u64.high 3817748708, %v7289_v59, %v7341_v20  ;;  %v5407_v10 = vpop.f32.mrf.mxu1  ;;  %v7357_v6 = vsub.s32 %v7140_v40, %v3880_v45 }
 0x1c6   : > { %v2824_v16 = vpop.f32.mrf.mxu0  ;;  %v2462_v28 = vadd.f32 %v5407_v10, %v6856_v42  ;;  %v3913_v32 = vmul.u32 18, %v3912_v58  ;;  %vm4187_vm12 = vcmp.lt.s32.totalorder %v7312_v52, 0  ;;  %v7361_v21 = vadd.s32 18, %v7312_v52 }
 0x1c7   : > { %8954 = vst [vmem:[#allocation41_spill] sm:$0xff] %v7338_v53  ;;  %v7354_v57 = vadd.f32 %v2824_v16, %v2456_v15  ;;  %v2401_v20 = vpop.f32.mrf.mxu1  ;;  %v3891_v47 = vmul.u32 18, %v3890_v63  ;;  %v3946_v4 = vmul.u32 18, %v3945_v17  ;;  %v7375_v10 = vadd.s32 168, %v6850_v13  ;;  %vm7387_vm3 = vmand %vm4187_vm12, %vm4151_vm10 }
 0x1c8   : > { %v5442_v53 = vpop.f32.mrf.mxu0  ;;  %8956 = vst [vmem:[#allocation43_spill] sm:$0xff] %v7361_v21  ;;  %v2460_v14 = vadd.f32 %v2401_v20, %v6860_v12  ;;  %v7367_v42 = vmul.u32.u64.low 3817748708, %v7302_v0  ;;  %v7368_v16 = vmul.u32.u64.high 3817748708, %v7302_v0, %v7367_v42  ;;  %v7378_v63 = vadd.s32 208, %v6850_v13 }
 0x1c9   : > { %8955 = vst [vmem:[#allocation42_spill] sm:$0xff] %v7354_v57  ;;  %v7364_v55 = vadd.f32 %v5442_v53, %v2459_v30  ;;  %v5408_v40 = vpop.f32.mrf.mxu1  ;;  %v7371_v15 = vmul.u32.u64.low 3817748708, %v7315_v39  ;;  %v7372_v58 = vmul.u32.u64.high 3817748708, %v7315_v39, %v7371_v15  ;;  %v8959_v30 = vmov 0 }
 0x1ca   : > { %v2827_v45 = vpop.f32.mrf.mxu0  ;;  %v2463_v12 = vadd.f32 %v5408_v40, %v6863_v27  ;;  %v8960_v30 = vsel %vm7387_vm3, 4294967295, %v8959_v30  ;;  %vm4149_vm9 = vcmp.ne.s32.totalorder %v7357_v6, 0  ;;  %v7393_v53 = vsub.s32 %v7163_v9, %v3913_v32 }
 0x1cb   : > { %8957 = vst [vmem:[#allocation44_spill] sm:$0xff] %v7364_v55  ;;  %v7381_v17 = vadd.f32 %v2827_v45, %v2457_v62  ;;  %8961 = vst [vmem:[#allocation46_spill] sm:$0xff] %v8960_v30  ;;  %v2404_v20 = vpop.f32.mrf.mxu1  ;;  %v7396_v15 = vsub.s32 %v7166_v11, %v3891_v47  ;;  %v7399_v27 = vsub.s32 %v7181_v54, %v3946_v4  ;;  %v3923_v9 = vshrl.u32 %v7342_v26, 4 }
 0x1cc   : > { %v5445_v42 = vpop.f32.mrf.mxu0  ;;  %v7402_v62 = vmul.u32.u64.low 3817748708, %v7332_v49  ;;  %v7403_v40 = vmul.u32.u64.high 3817748708, %v7332_v49, %v7402_v62  ;;  %v2461_v45 = vadd.f32 %v2404_v20, %v6869_v50  ;;  %v7415_v54 = vadd.s32 18, %v7357_v6 }
 0x1cd   : > { %8958 = vst [vmem:[#allocation45_spill] sm:$0xff] %v7381_v17  ;;  %v7406_v17 = vadd.f32 %v5445_v42, %v2462_v28  ;;  %v5411_v32 = vpop.f32.mrf.mxu1  ;;  %v3956_v47 = vshrl.u32 %v7351_v29, 4  ;;  %v7419_v50 = vadd.s32 192, %v6850_v13  ;;  %vm4188_vm10 = vcmp.lt.s32.totalorder %v7393_v53, 0 }
 0x1ce   : > { %v2840_v55 = vpop.f32.mrf.mxu0  ;;  %v2466_v4 = vadd.f32 %v5411_v32, %v6872_v41  ;;  %vm8964_vm3 = vcmp.lt.s32.totalorder %v7357_v6, 0  ;;  %v8965_v42 = vmov 0  ;;  %vm4150_vm7 = vcmp.ne.s32.totalorder %v7396_v15, 0 }
 0x1cf   : > { %8962 = vst [vmem:[#allocation47_spill] sm:$0xff] %v7406_v17  ;;  %v7422_v28 = vadd.f32 %v2840_v55, %v2460_v14  ;;  %v2417_v26 = vpop.f32.mrf.mxu1  ;;  %vm7430_vm1 = vmand %vm8964_vm3, %vm4149_vm9  ;;  %vm4186_vm13 = vcmp.lt.s32.totalorder %v7396_v15, 0  ;;  %vm4155_vm11 = vcmp.ne.s32.totalorder %v7399_v27, 0  ;;  %v3924_v14 = vmul.u32 18, %v3923_v9 }
 0x1d0   : > { %v5446_v20 = vpop.f32.mrf.mxu0  ;;  %v8966_v42 = vsel %vm7430_vm1, 4294967295, %v8965_v42  ;;  %v2464_v41 = vadd.f32 %v2417_v26, %v6885_v19  ;;  %v3934_v55 = vshrl.u32 %v7368_v16, 4  ;;  %v3957_v11 = vmul.u32 18, %v3956_v47  ;;  %vm7469_vm12 = vmand %vm4186_vm13, %vm4150_vm7 }
 0x1d1   : > { %8963 = vst [vmem:[#allocation48_spill] sm:$0xff] %v7422_v28  ;;  %v7439_v29 = vadd.f32 %v5446_v20, %v2463_v12  ;;  %v5412_v62 = vpop.f32.mrf.mxu1  ;;  %v3989_v28 = vshrl.u32 %v7372_v58, 4  ;;  %v7444_v17 = vmul.u32.u64.low 3817748708, %v7335_v3  ;;  %v7445_v57 = vmul.u32.u64.high 3817748708, %v7335_v3, %v7444_v17 }
 0x1d2   : > { %v2843_v32 = vpop.f32.mrf.mxu0  ;;  %v2467_v52 = vadd.f32 %v5412_v62, %v6891_v33  ;;  %vm8969_vm3 = vcmp.ne.s32.totalorder %v7393_v53, 0  ;;  %v8970_v16 = vmov 0  ;;  %v7463_v58 = vadd.s32 18, %v7393_v53 }
 0x1d3   : > { %8967 = vst [vmem:[#allocation49_spill] sm:$0xff] %v7439_v29  ;;  %v7448_v21 = vadd.f32 %v2843_v32, %v2461_v45  ;;  %vm7458_vm9 = vmand %vm4188_vm10, %vm8969_vm3  ;;  %v2420_v12 = vpop.f32.mrf.mxu1  ;;  %v8972_v17 = vmov 0  ;;  %v7474_v45 = vadd.s32 18, %v7396_v15  ;;  %v7477_v9 = vadd.s32 18, %v7399_v27 }
 0x1d4   : > { %v8971_v16 = vsel %vm7458_vm9, 4294967295, %v8970_v16  ;;  %v5449_v33 = vpop.f32.mrf.mxu0  ;;  %v8973_v17 = vsel %vm7469_vm12, 4294967295, %v8972_v17  ;;  %v3967_v47 = vshrl.u32 %v7403_v40, 4  ;;  %v7481_v26 = vadd.s32 216, %v6850_v13 }
 0x1d5   : > { %8968 = vst [vmem:[#allocation50_spill] sm:$0xff] %v7448_v21  ;;  %v2465_v20 = vadd.f32 %v2420_v12, %v6903_v43  ;;  %v7484_v62 = vadd.f32 %v5449_v33, %v2466_v4  ;;  %vm8975_vm7 = vcmp.lt.s32.totalorder %v7399_v27, 0  ;;  %v8976_v32 = vmov 0  ;;  %v5455_v21 = vpop.f32.mrf.mxu1 }
 0x1d6   : > { %vm7490_vm13 = vmand %vm8975_vm7, %vm4155_vm11  ;;  %v7495_v19 = vsub.s32 %v7289_v59, %v3924_v14  ;;  %v3935_v40 = vmul.u32 18, %v3934_v55  ;;  %v2856_v29 = vpop.f32.mrf.mxu0  ;;  %v7498_v30 = vsub.s32 %v7292_v61, %v3957_v11  ;;  %v3990_v43 = vmul.u32 18, %v3989_v28 }
 0x1d7   : > { %8974 = vst [vmem:[#allocation51_spill] sm:$0xff] %v7484_v62  ;;  %v8977_v32 = vsel %vm7490_vm13, 4294967295, %v8976_v32  ;;  %v7501_v4 = vadd.s32 200, %v6850_v13  ;;  %v7504_v12 = vadd.s32 240, %v6850_v13  ;;  %v7506_v33 = vadd.f32 %v2856_v29, %v2464_v41  ;;  %v3175_v11 = vpop.f32.mrf.mxu1 }
 0x1d8   : > { %8978 = vst [vmem:[#allocation52_spill] sm:$0xff] %v7498_v30  ;;  %v7513_v14 = vadd.s32 224, %v6850_v13  ;;  %v7516_v61 = vadd.s32 248, %v6850_v13  ;;  %v5450_v28 = vpop.f32.mrf.mxu0  ;;  %v3968_v55 = vmul.u32 18, %v3967_v47  ;;  %v7528_v59 = vadd.s32 232, %v6850_v13 }
 0x1d9   : > { %8979 = vst [vmem:[#allocation53_spill] sm:$0xff] %v7506_v33  ;;  %v7530_v33 = vadd.f32 %v5450_v28, %v2467_v52  ;;  %vm4153_vm11 = vcmp.ne.s32.totalorder %v7495_v19, 0  ;;  %v7535_v62 = vsub.s32 %v7302_v0, %v3935_v40  ;;  %v8983_v29 = vsel %vm7035_vm2, %v6974_v60, %v6948_v1 }
 0x1da   : > { %8980 = vst [vmem:[#allocation54_spill] sm:$0xff] %v7516_v61  ;;  %8981 = vst [vmem:[#allocation55_spill] sm:$0xff] %v7528_v59  ;;  %v5456_v61 = vpop.f32.mrf.mxu1  ;;  %v2859_v41 = vpop.f32.mrf.mxu0  ;;  %vm7542_vm3 = vcmp.lt.s32.totalorder %v8983_v29, 16  ;;  %v8984_v47 = vmov 0  ;;  %v8987_v52 = vsel %vm7065_vm5, %v7052_v7, %v6986_v48  ;;  %v8988_v28 = vmov 0  ;;  %v9037_v59 = vld [vmem:[#allocation4_spill] sm:$0xff] }
 0x1db   : > { %8982 = vst [vmem:[#allocation56_spill] sm:$0xff] %v7530_v33  ;;  %v8985_v47 = vsel %vm7542_vm3, 4294967295, %v8984_v47  ;;  %vm7551_vm7 = vcmp.lt.s32.totalorder %v8987_v52, 16  ;;  %v7556_v0 = vadd.s32 18, %v7495_v19  ;;  %v7560_v1 = vsub.s32 %v7315_v39, %v3990_v43  ;;  %v8993_v39 = vld [vmem:[#allocation12_spill] sm:$0xff] }
 0x1dc   : > { %8986 = vst [vmem:[#allocation57_spill] sm:$0xff] %v8985_v47  ;;  %v8989_v28 = vsel %vm7551_vm7, 4294967295, %v8988_v28  ;;  %v4000_v60 = vshrl.u32 %v7445_v57, 4  ;;  %v3320_v34 = vadd.f32 %v5455_v21, %v6910_v22  ;;  %v7564_v37 = vadd.f32 %v2859_v41, %v2465_v20  ;;  %v3178_v40 = vpop.f32.mrf.mxu1  ;;  %v5493_v29 = vpop.f32.mrf.mxu0  ;;  %v8998_v41 = vld [vmem:[#allocation2_spill] sm:$0xff] }
 0x1dd   : > { %8990 = vst [vmem:[#allocation58_spill] sm:$0xff] %v8989_v28  ;;  %8991 = vst [vmem:[#allocation59_spill] sm:$0xff] %v7560_v1  ;;  %v7567_v48 = vmul.u32.u64.low 3817748708, %v7375_v10  ;;  %v7568_v7 = vmul.u32.u64.high 3817748708, %v7375_v10, %v7567_v48  ;;  %v8994_v57 = vsel %vm7020_vm14, %v6956_v25, %v8993_v39  ;;  %v8995_v22 = vmov 0 }
 0x1de   : > { %8992 = vst [vmem:[#allocation60_spill] sm:$0xff] %v7564_v37  ;;  %vm7580_vm2 = vcmp.lt.s32.totalorder %v8994_v57, 16  ;;  %v7586_v21 = vsub.s32 %v7332_v49, %v3968_v55  ;;  %v7589_v20 = vmul.u32.u64.low 3817748708, %v7378_v63  ;;  %v7590_v43 = vmul.u32.u64.high 3817748708, %v7378_v63, %v7589_v20  ;;  %v5459_v25 = vpop.f32.mrf.mxu1  ;;  %v3489_v48 = vpop.f32.mrf.mxu0 }
 0x1df   : > { %v8996_v22 = vsel %vm7580_vm2, 4294967295, %v8995_v22  ;;  %v3318_v52 = vadd.f32 %v3175_v11, %v8998_v41  ;;  %v7593_v5 = vadd.f32 %v5493_v29, %v3320_v34  ;;  %v9000_v49 = vsel %vm7044_vm4, %v7049_v51, %v6977_v31  ;;  %v9007_v31 = vld [vmem:[#allocation10_spill] sm:$0xff] }
 0x1e0   : > { %8997 = vst [vmem:[#allocation12_spill] sm:$0xff] %v8996_v22  ;;  %vm7602_vm5 = vcmp.lt.s32.totalorder %v9000_v49, 16  ;;  %v9001_v55 = vmov 0  ;;  %vm9004_vm13 = vcmp.lt.s32.totalorder %v7495_v19, 0  ;;  %v7615_v34 = vadd.s32 18, %v7498_v30  ;;  %v3191_v41 = vpop.f32.mrf.mxu1  ;;  %v5494_v49 = vpop.f32.mrf.mxu0  ;;  %v9065_v22 = vld [vmem:[#allocation29_spill] sm:$0xff] }
 0x1e1   : > { %8999 = vst [vmem:[#allocation2_spill] sm:$0xff] %v7593_v5  ;;  %v9002_v55 = vsel %vm7602_vm5, 4294967295, %v9001_v55  ;;  %vm7610_vm9 = vmand %vm9004_vm13, %vm4153_vm11  ;;  %v7618_v18 = vadd.s32 18, %v7535_v62  ;;  %v3321_v51 = vadd.f32 %v5456_v61, %v9007_v31  ;;  %v7625_v29 = vadd.f32 %v3489_v48, %v3318_v52 }
 0x1e2   : > { %9003 = vst [vmem:[#allocation61_spill] sm:$0xff] %v9002_v55  ;;  %3670 = vst [vmem:[%s7573_s18 + $0x10] sm:$0xff] %v7593_v5  ;;  %vm9009_vm13 = vcmp.ne.s32.totalorder %v7498_v30, 0  ;;  %vm9010_vm11 = vcmp.lt.s32.totalorder %v7498_v30, 0  ;;  %v9011_v39 = vmov 0  ;;  %v7636_v57 = vadd.s32 18, %v7560_v1 }
 0x1e3   : > { %9008 = vst [vmem:[#allocation10_spill] sm:$0xff] %v7625_v29  ;;  %vm7631_vm14 = vmand %vm9010_vm11, %vm9009_vm13  ;;  %v4001_v20 = vmul.u32 18, %v4000_v60  ;;  %v9015_v61 = vsel %vm7190_vm0, %v7121_v35, %v7073_v36  ;;  %v9016_v52 = vmov 0  ;;  %vm9019_vm13 = vcmp.ne.s32.totalorder %v7535_v62, 0  ;;  %v9023_v35 = vld [vmem:[#allocation3_spill] sm:$0xff] }
 0x1e4   : > { %v9012_v39 = vsel %vm7631_vm14, 4294967295, %v9011_v39  ;;  %9014 = vst [vmem:[#allocation63_spill] sm:$0xff] %v7636_v57  ;;  %vm7643_vm10 = vcmp.lt.s32.totalorder %v9015_v61, 16  ;;  %vm9020_vm11 = vcmp.lt.s32.totalorder %v7535_v62, 0  ;;  %vm4157_vm12 = vcmp.ne.s32.totalorder %v7586_v21, 0  ;;  %3668 = vst [vmem:[%s7573_s18] sm:$0xff] %v7625_v29  ;;  %v9071_v55 = vld [vmem:[#allocation31_spill] sm:$0xff] }
 0x1e5   : > { %9013 = vst [vmem:[#allocation62_spill] sm:$0xff] %v9012_v39  ;;  %v9017_v52 = vsel %vm7643_vm10, 4294967295, %v9016_v52  ;;  %vm7651_vm4 = vmand %vm9020_vm11, %vm9019_vm13  ;;  %v7658_v44 = vmul.u32.u64.low 3817748708, %v7419_v50  ;;  %v7659_v36 = vmul.u32.u64.high 3817748708, %v7419_v50, %v7658_v44  ;;  %v3319_v60 = vadd.f32 %v3178_v40, %v9023_v35  ;;  %v3492_v40 = vpop.f32.mrf.mxu0  ;;  %v9163_v35 = vld [vmem:[#allocation30_spill] sm:$0xff] }
 0x1e6   : > { %9018 = vst [vmem:[#allocation64_spill] sm:$0xff] %v9017_v52  ;;  %v7664_v31 = vadd.f32 %v5494_v49, %v3321_v51  ;;  %vm9025_vm0 = vcmp.ne.s32.totalorder %v7560_v1, 0  ;;  %vm9026_vm13 = vcmp.lt.s32.totalorder %v7560_v1, 0  ;;  %v9027_v61 = vmov 0  ;;  %v5460_v44 = vpop.f32.mrf.mxu1  ;;  %v9084_v52 = vld [vmem:[#allocation35_spill] sm:$0xff] }
 0x1e7   : > { %vm7670_vm11 = vmand %vm9026_vm13, %vm9025_vm0  ;;  %v7675_v37 = vadd.s32 272, %v6850_v13  ;;  %v7678_v33 = vadd.s32 256, %v6850_v13  ;;  %v9032_v51 = vsel %vm7217_vm8, %v7154_v38, %v7124_v24  ;;  %v9033_v49 = vmov 0 }
 0x1e8   : > { %9024 = vst [vmem:[#allocation3_spill] sm:$0xff] %v7664_v31  ;;  %v9028_v61 = vsel %vm7670_vm11, 4294967295, %v9027_v61  ;;  %vm7685_vm1 = vcmp.lt.s32.totalorder %v9032_v51, 16  ;;  %v3324_v24 = vadd.f32 %v5459_v25, %v9037_v59  ;;  %3671 = vst [vmem:[%s7573_s18 + $0x18] sm:$0xff] %v7664_v31  ;;  %v7705_v38 = vadd.f32 %v3492_v40, %v3319_v60  ;;  %v3194_v59 = vpop.f32.mrf.mxu1  ;;  %v5497_v25 = vpop.f32.mrf.mxu0  ;;  %v9043_v60 = vld [vmem:[#allocation13_spill] sm:$0xff]  ;;  %v9044_v40 = vld [vmem:[#allocation7_spill] sm:$0xff] }
 0x1e9   : > { %9029 = vst [vmem:[#allocation65_spill] sm:$0xff] %v9028_v61  ;;  %9030 = vst [vmem:[#allocation66_spill] sm:$0xff] %v7675_v37  ;;  %v9034_v49 = vsel %vm7685_vm1, 4294967295, %v9033_v49  ;;  %v7694_v37 = vadd.s32 18, %v7586_v21  ;;  %vm9039_vm8 = vcmp.lt.s32.totalorder %v7586_v21, 0  ;;  %v9045_v46 = vsel %vm7087_vm6, %v9043_v60, %v9044_v40 }
 0x1ea   : > { %9031 = vst [vmem:[#allocation67_spill] sm:$0xff] %v7678_v33  ;;  %v7697_v33 = vadd.s32 280, %v6850_v13  ;;  %9038 = vst [vmem:[#allocation4_spill] sm:$0xff] %v7705_v38  ;;  %v3978_v13 = vshrl.u32 %v7568_v7, 4  ;;  %vm7725_vm13 = vcmp.lt.s32.totalorder %v9045_v46, 16  ;;  %v9046_v39 = vmov 0  ;;  %v5463_v1 = vpop.f32.mrf.mxu1 }
 0x1eb   : > { %vm7715_vm0 = vmand %vm9039_vm8, %vm4157_vm12  ;;  %v9047_v39 = vsel %vm7725_vm13, 4294967295, %v9046_v39  ;;  %v4033_v60 = vshrl.u32 %v7590_v43, 4  ;;  %v9048_v46 = vld [vmem:[#allocation5_spill] sm:$0xff]  ;;  %v4425_v30 = vsel %vm7542_vm3, %v7625_v29, 0.0  ;;  %3669 = vst [vmem:[%s7573_s18 + $0x8] sm:$0xff] %v7705_v38  ;;  %v4426_v51 = vsel %vm7551_vm7, %v7705_v38, 0.0 }
 0x1ec   : > { %9035 = vst [vmem:[#allocation68_spill] sm:$0xff] %v7697_v33  ;;  %v7738_v33 = vsub.s32 %v7335_v3, %v4001_v20  ;;  %v3322_v40 = vadd.f32 %v3191_v41, %v9048_v46  ;;  %v7750_v61 = vadd.f32 %v5497_v25, %v3324_v24  ;;  %v4461_v7 = vadd.f32 %v4426_v51, %v4425_v30  ;;  %v3505_v3 = vpop.f32.mrf.mxu0  ;;  %v9049_v43 = vld [vmem:[#allocation18_spill] sm:$0xff]  ;;  %v3207_v28 = vpop.f32.mrf.mxu1  ;;  %v9056_v46 = vld [vmem:[#allocation24_spill] sm:$0xff] }
 0x1ed   : > { %v9050_v20 = vsel %vm7200_vm15, %v7143_v56, %v9049_v43  ;;  %v9051_v41 = vmov 0  ;;  %v7766_v24 = vmul.u32.u64.low 3817748708, %v7481_v26  ;;  %v7767_v30 = vmul.u32.u64.high 3817748708, %v7481_v26, %v7766_v24  ;;  %v9053_v51 = vld [vmem:[#allocation6_spill] sm:$0xff] }
 0x1ee   : > { %vm7757_vm6 = vcmp.lt.s32.totalorder %v9050_v20, 16  ;;  %v4427_v8 = vsel %vm7580_vm2, %v7593_v5, 0.0  ;;  %v3325_v56 = vadd.f32 %v5460_v44, %v9053_v51  ;;  %3674 = vst [vmem:[%s7573_s18 + $0x30] sm:$0xff] %v7750_v61  ;;  %v7775_v25 = vadd.f32 %v3505_v3, %v3322_v40  ;;  %v5498_v47 = vpop.f32.mrf.mxu0  ;;  %v5464_v3 = vpop.f32.mrf.mxu1  ;;  %v9064_v51 = vld [vmem:[#allocation37_spill] sm:$0xff] }
 0x1ef   : > { %v9052_v41 = vsel %vm7757_vm6, 4294967295, %v9051_v41  ;;  %v3979_v43 = vmul.u32 18, %v3978_v13  ;;  %v4462_v20 = vadd.f32 %v4461_v7, %v4427_v8  ;;  %vm9055_vm15 = vnez %v8940_v2  ;;  %v9061_v7 = vld [vmem:[#allocation14_spill] sm:$0xff]  ;;  %v9062_v8 = vld [vmem:[#allocation40_spill] sm:$0xff] }
 0x1f0   : > { %9054 = vst [vmem:[#allocation16_spill] sm:$0xff] %v7775_v25  ;;  %v9057_v38 = vsel %vm9055_vm15, %v7249_v23, %v9056_v46  ;;  %v9058_v24 = vmov 0  ;;  %v4011_v44 = vshrl.u32 %v7659_v36, 4  ;;  %v4428_v13 = vsel %vm7602_vm5, %v7664_v31, 0.0  ;;  %3672 = vst [vmem:[%s7573_s18 + $0x20] sm:$0xff] %v7775_v25  ;;  %v3508_v46 = vpop.f32.mrf.mxu0  ;;  %v9073_v31 = vld [vmem:[#allocation27_spill] sm:$0xff] }
 0x1f1   : > { %vm7782_vm12 = vcmp.lt.s32.totalorder %v9057_v38, 16  ;;  %v3323_v2 = vadd.f32 %v3194_v59, %v9061_v7  ;;  %v7795_v23 = vadd.f32 %v5498_v47, %v3325_v56  ;;  %v4034_v38 = vmul.u32 18, %v4033_v60  ;;  %v9070_v60 = vld [vmem:[#allocation8_spill] sm:$0xff] }
 0x1f2   : > { %v9059_v24 = vsel %vm7782_vm12, 4294967295, %v9058_v24  ;;  %v4463_v40 = vadd.f32 %v4462_v20, %v4428_v13  ;;  %vm9063_vm15 = vnez %v9062_v8  ;;  %v9067_v36 = vmov 0  ;;  %v3210_v8 = vpop.f32.mrf.mxu1 }
 0x1f3   : > { %9060 = vst [vmem:[#allocation13_spill] sm:$0xff] %v9059_v24  ;;  %v9066_v5 = vsel %vm9063_vm15, %v9064_v51, %v9065_v22  ;;  %v7807_v59 = vadd.s32 18, %v7738_v33  ;;  %v7810_v47 = vmul.u32.u64.low 3817748708, %v7501_v4  ;;  %v7811_v56 = vmul.u32.u64.high 3817748708, %v7501_v4, %v7810_v47  ;;  %3675 = vst [vmem:[%s7573_s18 + $0x38] sm:$0xff] %v7795_v23  ;;  %v5501_v51 = vpop.f32.mrf.mxu0 }
 0x1f4   : > { %vm7802_vm2 = vcmp.lt.s32.totalorder %v9066_v5, 16  ;;  %v3328_v20 = vadd.f32 %v5463_v1, %v9070_v60  ;;  %v4429_v13 = vsel %vm7643_vm10, %v7775_v25, 0.0  ;;  %v7819_v22 = vadd.f32 %v3508_v46, %v3323_v2  ;;  %v9074_v47 = vld [vmem:[#allocation22_spill] sm:$0xff]  ;;  %v9086_v25 = vld [vmem:[#allocation33_spill] sm:$0xff] }
 0x1f5   : > { %v9068_v36 = vsel %vm7802_vm2, 4294967295, %v9067_v36  ;;  %v7822_v5 = vsub.s32 %v7375_v10, %v3979_v43  ;;  %v4464_v7 = vadd.f32 %v4463_v40, %v4429_v13  ;;  %vm9072_vm15 = vnez %v9071_v55  ;;  %v9083_v40 = vld [vmem:[#allocation9_spill] sm:$0xff] }
 0x1f6   : > { %9069 = vst [vmem:[#allocation7_spill] sm:$0xff] %v9068_v36  ;;  %v9075_v29 = vsel %vm9072_vm15, %v9073_v31, %v9074_v47  ;;  %v9076_v1 = vmov 0  ;;  %vm9079_vm10 = vcmp.ne.s32.totalorder %v7738_v33, 0  ;;  %vm9080_vm5 = vcmp.lt.s32.totalorder %v7738_v33, 0  ;;  %3673 = vst [vmem:[%s7573_s18 + $0x28] sm:$0xff] %v7819_v22  ;;  %v5467_v47 = vpop.f32.mrf.mxu1 }
 0x1f7   : > { %vm7829_vm8 = vcmp.lt.s32.totalorder %v9075_v29, 16  ;;  %vm7837_vm7 = vmand %vm9080_vm5, %vm9079_vm10  ;;  %v9081_v2 = vmov 0  ;;  %v4012_v10 = vmul.u32 18, %v4011_v44  ;;  %v3326_v31 = vadd.f32 %v3207_v28, %v9083_v40  ;;  %v3521_v44 = vpop.f32.mrf.mxu0 }
 0x1f8   : > { %v9077_v1 = vsel %vm7829_vm8, 4294967295, %v9076_v1  ;;  %v9082_v2 = vsel %vm7837_vm7, 4294967295, %v9081_v2  ;;  %v7842_v43 = vmul.u32.u64.low 3817748708, %v7504_v12  ;;  %v7843_v55 = vmul.u32.u64.high 3817748708, %v7504_v12, %v7842_v43 }
 0x1f9   : > { %9078 = vst [vmem:[#allocation5_spill] sm:$0xff] %v9077_v1  ;;  %v4430_v29 = vsel %vm7685_vm1, %v7819_v22, 0.0  ;;  %v7851_v46 = vadd.f32 %v5501_v51, %v3328_v20  ;;  %v7854_v60 = vsub.s32 %v7378_v63, %v4034_v38  ;;  %vm9085_vm10 = vnez %v9084_v52  ;;  %v9087_v43 = vld [vmem:[#allocation25_spill] sm:$0xff]  ;;  %v9092_v38 = vld [vmem:[#allocation11_spill] sm:$0xff] }
 0x1fa   : > { %v4465_v13 = vadd.f32 %v4464_v7, %v4430_v29  ;;  %v9088_v57 = vsel %vm9085_vm10, %v9086_v25, %v9087_v43  ;;  %v9089_v28 = vmov 0  ;;  %v4044_v40 = vshrl.u32 %v7767_v30, 4  ;;  %v3223_v7 = vpop.f32.mrf.mxu1  ;;  %v5502_v29 = vpop.f32.mrf.mxu0 }
 0x1fb   : > { %vm7861_vm5 = vcmp.lt.s32.totalorder %v9088_v57, 16  ;;  %v7867_v20 = vmul.u32.u64.low 3817748708, %v7513_v14  ;;  %v7868_v51 = vmul.u32.u64.high 3817748708, %v7513_v14, %v7867_v20  ;;  %v4431_v63 = vsel %vm7725_vm13, %v7750_v61, 0.0  ;;  %3678 = vst [vmem:[%s7573_s18 + $0x50] sm:$0xff] %v7851_v46 }
 0x1fc   : > { %v9090_v28 = vsel %vm7861_vm5, 4294967295, %v9089_v28  ;;  %v3329_v52 = vadd.f32 %v5464_v3, %v9092_v38  ;;  %v7876_v25 = vadd.f32 %v3521_v44, %v3326_v31  ;;  %v4466_v30 = vadd.f32 %v4465_v13, %v4431_v63  ;;  %v5468_v63 = vpop.f32.mrf.mxu1  ;;  %v3524_v38 = vpop.f32.mrf.mxu0 }
 0x1fd   : > { %9091 = vst [vmem:[#allocation18_spill] sm:$0xff] %v9090_v28  ;;  %vm9093_vm15 = vnez %v8966_v42  ;;  %v9095_v20 = vmov 0  ;;  %v7894_v3 = vsub.s32 %v7419_v50, %v4012_v10  ;;  %v4432_v31 = vsel %vm7757_vm6, %v7795_v23, 0.0  ;;  %v9098_v42 = vld [vmem:[#allocation15_spill] sm:$0xff] }
 0x1fe   : > { %v9094_v43 = vsel %vm9093_vm15, %v7415_v54, %v7357_v6  ;;  %v3327_v13 = vadd.f32 %v3210_v8, %v9098_v42  ;;  %3676 = vst [vmem:[%s7573_s18 + $0x40] sm:$0xff] %v7876_v25  ;;  %v7902_v6 = vadd.f32 %v5502_v29, %v3329_v52  ;;  %v7905_v54 = vadd.s32 18, %v7822_v5  ;;  %v9104_v29 = vld [vmem:[#allocation17_spill] sm:$0xff]  ;;  %v9105_v42 = vld [vmem:[#allocation46_spill] sm:$0xff] }
 0x1ff   : > { %vm7887_vm10 = vcmp.lt.s32.totalorder %v9094_v43, 16  ;;  %v4467_v44 = vadd.f32 %v4466_v30, %v4432_v31  ;;  %vm9099_vm15 = vnez %v8973_v17  ;;  %v9101_v10 = vmov 0  ;;  %v5505_v31 = vpop.f32.mrf.mxu0 }
 0x200   : > { %v9096_v20 = vsel %vm7887_vm10, 4294967295, %v9095_v20  ;;  %v9100_v50 = vsel %vm9099_vm15, %v7474_v45, %v7396_v15  ;;  %v4045_v8 = vmul.u32 18, %v4044_v40  ;;  %v4022_v52 = vshrl.u32 %v7811_v56, 4  ;;  %3679 = vst [vmem:[%s7573_s18 + $0x58] sm:$0xff] %v7902_v6  ;;  %v3226_v45 = vpop.f32.mrf.mxu1  ;;  %v9107_v40 = vld [vmem:[#allocation43_spill] sm:$0xff] }
 0x201   : > { %9097 = vst [vmem:[#allocation6_spill] sm:$0xff] %v9096_v20  ;;  %vm7912_vm1 = vcmp.lt.s32.totalorder %v9100_v50, 16  ;;  %v3332_v43 = vadd.f32 %v5467_v47, %v9104_v29  ;;  %v4433_v30 = vsel %vm7782_vm12, %v7876_v25, 0.0  ;;  %v7924_v17 = vadd.f32 %v3524_v38, %v3327_v13  ;;  %v9108_v50 = vld [vmem:[#allocation38_spill] sm:$0xff]  ;;  %v9113_v38 = vld [vmem:[#allocation19_spill] sm:$0xff] }
 0x202   : > { %v9102_v10 = vsel %vm7912_vm1, 4294967295, %v9101_v10  ;;  %v4468_v15 = vadd.f32 %v4467_v44, %v4433_v30  ;;  %vm9106_vm13 = vnez %v9105_v42  ;;  %v9110_v47 = vmov 0 }
 0x203   : > { %9103 = vst [vmem:[#allocation24_spill] sm:$0xff] %v9102_v10  ;;  %v9109_v56 = vsel %vm9106_vm13, %v9107_v40, %v9108_v50  ;;  %v4077_v13 = vshrl.u32 %v7843_v55, 4  ;;  %v3330_v29 = vadd.f32 %v3223_v7, %v9113_v38  ;;  %3677 = vst [vmem:[%s7573_s18 + $0x48] sm:$0xff] %v7924_v17  ;;  %v4434_v44 = vsel %vm7802_vm2, %v7924_v17, 0.0  ;;  %v5471_v40 = vpop.f32.mrf.mxu1  ;;  %v3537_v50 = vpop.f32.mrf.mxu0  ;;  %v9128_v38 = vld [vmem:[#allocation20_spill] sm:$0xff]  ;;  %v9175_v10 = vld [vmem:[#allocation34_spill] sm:$0xff] }
 0x204   : > { %vm7932_vm6 = vcmp.lt.s32.totalorder %v9109_v56, 16  ;;  %v7945_v30 = vadd.f32 %v5505_v31, %v3332_v43  ;;  %vm9115_vm13 = vcmp.ne.s32.totalorder %v7822_v5, 0  ;;  %vm9116_vm15 = vcmp.lt.s32.totalorder %v7822_v5, 0 }
 0x205   : > { %v9111_v47 = vsel %vm7932_vm6, 4294967295, %v9110_v47  ;;  %vm7951_vm12 = vmand %vm9116_vm15, %vm9115_vm13  ;;  %v7956_v55 = vadd.s32 18, %v7854_v60  ;;  %v4469_v7 = vadd.f32 %v4468_v15, %v4434_v44  ;;  %vm9119_vm3 = vnez %v8971_v16  ;;  %v5506_v1 = vpop.f32.mrf.mxu0 }
 0x206   : > { %9112 = vst [vmem:[#allocation14_spill] sm:$0xff] %v9111_v47  ;;  %9114 = vst [vmem:[#allocation40_spill] sm:$0xff] %v7945_v30  ;;  %v9120_v43 = vsel %vm9119_vm3, %v7463_v58, %v7393_v53  ;;  %v9121_v31 = vmov 0  ;;  %vm9124_vm15 = vcmp.ne.s32.totalorder %v7854_v60, 0  ;;  %vm9125_vm13 = vcmp.lt.s32.totalorder %v7854_v60, 0  ;;  %v9170_v47 = vld [vmem:[#allocation59_spill] sm:$0xff] }
 0x207   : > { %vm7963_vm2 = vcmp.lt.s32.totalorder %v9120_v43, 16  ;;  %vm7971_vm7 = vmand %vm9125_vm13, %vm9124_vm15  ;;  %v7976_v15 = vadd.s32 18, %v7894_v3  ;;  %v7979_v16 = vsub.s32 %v7481_v26, %v4045_v8  ;;  %v4023_v53 = vmul.u32 18, %v4022_v52  ;;  %3682 = vst [vmem:[%s7573_s18 + $0x70] sm:$0xff] %v7945_v30  ;;  %v3239_v52 = vpop.f32.mrf.mxu1 }
 0x208   : > { %v9122_v31 = vsel %vm7963_vm2, 4294967295, %v9121_v31  ;;  %v4435_v58 = vsel %vm7829_vm8, %v7851_v46, 0.0  ;;  %v3333_v44 = vadd.f32 %v5468_v63, %v9128_v38  ;;  %v7987_v43 = vadd.f32 %v3537_v50, %v3330_v29  ;;  %v9138_v38 = vld [vmem:[#allocation54_spill] sm:$0xff] }
 0x209   : > { %9123 = vst [vmem:[#allocation37_spill] sm:$0xff] %v9122_v31  ;;  %vm9130_vm3 = vcmp.ne.s32.totalorder %v7894_v3, 0  ;;  %vm9131_vm15 = vcmp.lt.s32.totalorder %v7894_v3, 0  ;;  %v4055_v26 = vshrl.u32 %v7868_v51, 4  ;;  %v4470_v8 = vadd.f32 %v4469_v7, %v4435_v58  ;;  %v9139_v7 = vld [vmem:[#allocation21_spill] sm:$0xff]  ;;  %v9169_v31 = vld [vmem:[#allocation63_spill] sm:$0xff] }
 0x20a   : > { %9129 = vst [vmem:[#allocation29_spill] sm:$0xff] %v7987_v43  ;;  %vm7993_vm13 = vmand %vm9131_vm15, %vm9130_vm3  ;;  %v9134_v63 = vsel %vm7610_vm9, %v7556_v0, %v7495_v19  ;;  %v9135_v29 = vmov 0  ;;  %v4078_v50 = vmul.u32 18, %v4077_v13  ;;  %v4436_v51 = vsel %vm7861_vm5, %v7902_v6, 0.0  ;;  %v5472_v13 = vpop.f32.mrf.mxu1 }
 0x20b   : > { %vm8003_vm8 = vcmp.lt.s32.totalorder %v9134_v63, 16  ;;  %v8008_v36 = vmul.u32.u64.low 3817748708, %v9138_v38  ;;  %v8009_v24 = vmul.u32.u64.high 3817748708, %v9138_v38, %v8008_v36  ;;  %v3331_v58 = vadd.f32 %v3226_v45, %v9139_v7  ;;  %3680 = vst [vmem:[%s7573_s18 + $0x60] sm:$0xff] %v7987_v43  ;;  %v3540_v63 = vpop.f32.mrf.mxu0  ;;  %v9151_v7 = vld [vmem:[#allocation55_spill] sm:$0xff] }
 0x20c   : > { %v9136_v29 = vsel %vm8003_vm8, 4294967295, %v9135_v29  ;;  %v8017_v11 = vadd.f32 %v5506_v1, %v3333_v44  ;;  %v4302_v19 = vsel %vm7951_vm12, %v7905_v54, %v7822_v5  ;;  %v4471_v0 = vadd.f32 %v4470_v8, %v4436_v51  ;;  %v9145_v54 = vld [vmem:[#allocation23_spill] sm:$0xff]  ;;  %v3242_v8 = vpop.f32.mrf.mxu1 }
 0x20d   : > { %9137 = vst [vmem:[#allocation8_spill] sm:$0xff] %v9136_v29  ;;  %v9141_v36 = vsel %vm7651_vm4, %v7618_v18, %v7535_v62  ;;  %v9142_v28 = vmov 0  ;;  %v8041_v48 = vsub.s32 %v7501_v4, %v4023_v53  ;;  %v3336_v62 = vadd.f32 %v5471_v40, %v9145_v54  ;;  %v5509_v51 = vpop.f32.mrf.mxu0  ;;  %v9154_v54 = vld [vmem:[#allocation52_spill] sm:$0xff]  ;;  %v9174_v29 = vld [vmem:[#allocation69_spill] sm:$0xff] }
 0x20e   : > { %9140 = vst [vmem:[#allocation31_spill] sm:$0xff] %v8017_v11  ;;  %vm8028_vm9 = vcmp.lt.s32.totalorder %v9141_v36, 16  ;;  %v4437_v18 = vsel %vm7887_vm10, %v7987_v43, 0.0  ;;  %3683 = vst [vmem:[%s7573_s18 + $0x78] sm:$0xff] %v8017_v11  ;;  %v8049_v45 = vadd.f32 %v3540_v63, %v3331_v58  ;;  %v4056_v42 = vmul.u32 18, %v4055_v26  ;;  %v9152_v26 = vld [vmem:[#allocation26_spill] sm:$0xff] }
 0x20f   : > { %v9143_v28 = vsel %vm8028_vm9, 4294967295, %v9142_v28  ;;  %v4472_v44 = vadd.f32 %v4471_v0, %v4437_v18  ;;  %vm9146_vm12 = vnez %v8977_v32  ;;  %v9148_v40 = vmov 0 }
 0x210   : > { %9144 = vst [vmem:[#allocation27_spill] sm:$0xff] %v9143_v28  ;;  %v9147_v4 = vsel %vm9146_vm12, %v7477_v9, %v7399_v27  ;;  %v8062_v53 = vsub.s32 %v7504_v12, %v4078_v50  ;;  %v8065_v58 = vmul.u32.u64.low 3817748708, %v9151_v7  ;;  %v8066_v63 = vmul.u32.u64.high 3817748708, %v9151_v7, %v8065_v58  ;;  %3681 = vst [vmem:[%s7573_s18 + $0x68] sm:$0xff] %v8049_v45  ;;  %v5475_v12 = vpop.f32.mrf.mxu1  ;;  %v3553_v50 = vpop.f32.mrf.mxu0 }
 0x211   : > { %vm8057_vm3 = vcmp.lt.s32.totalorder %v9147_v4, 16  ;;  %v3334_v0 = vadd.f32 %v3239_v52, %v9152_v26  ;;  %v4438_v27 = vsel %vm7912_vm1, %v8049_v45, 0.0  ;;  %v8074_v9 = vadd.f32 %v5509_v51, %v3336_v62 }
 0x212   : > { %v9149_v40 = vsel %vm8057_vm3, 4294967295, %v9148_v40  ;;  %v4473_v32 = vadd.f32 %v4472_v44, %v4438_v27  ;;  %v9155_v18 = vsel %vm7631_vm14, %v7615_v34, %v9154_v54  ;;  %v9156_v52 = vmov 0  ;;  %v9159_v44 = vld [vmem:[#allocation28_spill] sm:$0xff]  ;;  %v3255_v27 = vpop.f32.mrf.mxu1  ;;  %v5510_v36 = vpop.f32.mrf.mxu0 }
 0x213   : > { %9150 = vst [vmem:[#allocation22_spill] sm:$0xff] %v9149_v40  ;;  %vm8082_vm12 = vcmp.lt.s32.totalorder %v9155_v18, 16  ;;  %v8087_v4 = vadd.s32 18, %v7979_v16  ;;  %v4439_v62 = vsel %vm7932_vm6, %v7945_v30, 0.0  ;;  %v3337_v51 = vadd.f32 %v5472_v13, %v9159_v44  ;;  %3686 = vst [vmem:[%s7573_s18 + $0x90] sm:$0xff] %v8074_v9 }
 0x214   : > { %v9157_v52 = vsel %vm8082_vm12, 4294967295, %v9156_v52  ;;  %v8097_v34 = vadd.f32 %v3553_v50, %v3334_v0  ;;  %v8100_v58 = vsub.s32 %v7513_v14, %v4056_v42  ;;  %v4474_v26 = vadd.f32 %v4473_v32, %v4439_v62  ;;  %v5476_v32 = vpop.f32.mrf.mxu1  ;;  %v3556_v50 = vpop.f32.mrf.mxu0 }
 0x215   : > { %9158 = vst [vmem:[#allocation9_spill] sm:$0xff] %v9157_v52  ;;  %v9160_v54 = vsel %vm7715_vm0, %v7694_v37, %v7586_v21  ;;  %v8112_v13 = vadd.s32 18, %v8041_v48  ;;  %v4440_v14 = vsel %vm7963_vm2, %v8017_v11, 0.0  ;;  %v3335_v42 = vadd.f32 %v3242_v8, %v9163_v35  ;;  %v9167_v35 = vld [vmem:[#allocation32_spill] sm:$0xff] }
 0x216   : > { %vm8107_vm14 = vcmp.lt.s32.totalorder %v9160_v54, 16  ;;  %3684 = vst [vmem:[%s7573_s18 + $0x80] sm:$0xff] %v8097_v34  ;;  %v8122_v37 = vadd.f32 %v5510_v36, %v3337_v51  ;;  %v4088_v21 = vshrl.u32 %v8009_v24, 4  ;;  %v4475_v0 = vadd.f32 %v4474_v26, %v4440_v14  ;;  %v9166_v54 = vld [vmem:[#allocation67_spill] sm:$0xff]  ;;  %v3258_v36 = vpop.f32.mrf.mxu1  ;;  %v5513_v14 = vpop.f32.mrf.mxu0 }
 0x217   : > { %vm8125_vm0 = vcmp.lt.s32.totalorder %v4302_v19, 16  ;;  %v8130_v44 = vadd.s32 18, %v8062_v53  ;;  %v8133_v1 = vmul.u32.u64.low 3817748708, %v9166_v54  ;;  %v8134_v8 = vmul.u32.u64.high 3817748708, %v9166_v54, %v8133_v1 }
 0x218   : > { %v3340_v51 = vadd.f32 %v5475_v12, %v9167_v35  ;;  %v4441_v24 = vsel %vm8003_vm8, %v8097_v34, 0.0  ;;  %3687 = vst [vmem:[%s7573_s18 + $0x98] sm:$0xff] %v8122_v37  ;;  %v8142_v26 = vadd.f32 %v3556_v50, %v3335_v42  ;;  %v9171_v1 = vsel %vm7670_vm11, %v9169_v31, %v9170_v47  ;;  %v3569_v11 = vpop.f32.mrf.mxu0 }
 0x219   : > { %v4476_v19 = vadd.f32 %v4475_v0, %v4441_v24  ;;  %vm8150_vm15 = vcmp.lt.s32.totalorder %v9171_v1, 16  ;;  %v9172_v12 = vmov 0  ;;  %v4066_v35 = vshrl.u32 %v8066_v63, 4  ;;  %v5479_v1 = vpop.f32.mrf.mxu1 }
 0x21a   : > { %v9173_v12 = vsel %vm8150_vm15, 4294967295, %v9172_v12  ;;  %v8156_v42 = vmul.u32.u64.low 3817748708, %v9174_v29  ;;  %v8157_v50 = vmul.u32.u64.high 3817748708, %v9174_v29, %v8156_v42  ;;  %v3338_v0 = vadd.f32 %v3255_v27, %v9175_v10  ;;  %3685 = vst [vmem:[%s7573_s18 + $0x88] sm:$0xff] %v8142_v26  ;;  %v9184_v27 = vld [vmem:[#allocation66_spill] sm:$0xff]  ;;  %v5514_v40 = vpop.f32.mrf.mxu0 }
 0x21b   : > { %v4442_v5 = vsel %vm8028_vm9, %v8142_v26, 0.0  ;;  %v8165_v47 = vadd.f32 %v5513_v14, %v3340_v51  ;;  %v4089_v31 = vmul.u32 18, %v4088_v21  ;;  %vm9176_vm11 = vnez %v9082_v2 }
 0x21c   : > { %v4477_v24 = vadd.f32 %v4476_v19, %v4442_v5  ;;  %v9177_v63 = vsel %vm9176_vm11, %v7807_v59, %v7738_v33  ;;  %vm9180_vm8 = vcmp.ne.s32.totalorder %v7979_v16, 0  ;;  %vm9181_vm2 = vcmp.lt.s32.totalorder %v7979_v16, 0  ;;  %v9185_v59 = vld [vmem:[#allocation36_spill] sm:$0xff]  ;;  %v3572_v30 = vpop.f32.mrf.mxu0 }
 0x21d   : > { %vm8172_vm4 = vcmp.lt.s32.totalorder %v9177_v63, 16  ;;  %vm8180_vm9 = vmand %vm9181_vm2, %vm9180_vm8  ;;  %v8186_v21 = vmul.u32.u64.low 3817748708, %v9184_v27  ;;  %v8187_v2 = vmul.u32.u64.high 3817748708, %v9184_v27, %v8186_v21  ;;  %v4443_v33 = vsel %vm8057_vm3, %v8074_v9, 0.0  ;;  %3690 = vst [vmem:[%s7573_s18 + $0xb0] sm:$0xff] %v8165_v47 }
 0x21e   : > { %v3341_v51 = vadd.f32 %v5476_v32, %v9185_v59  ;;  %v8195_v19 = vadd.f32 %v3569_v11, %v3338_v0  ;;  %vm9186_vm2 = vcmp.ne.s32.totalorder %v8041_v48, 0  ;;  %vm9187_vm8 = vcmp.lt.s32.totalorder %v8041_v48, 0  ;;  %v3271_v21 = vpop.f32.mrf.mxu1 }
 0x21f   : > { %vm8201_vm11 = vmand %vm9187_vm8, %vm9186_vm2  ;;  %v8206_v5 = vadd.s32 18, %v8100_v58  ;;  %v4478_v63 = vadd.f32 %v4477_v24, %v4443_v33  ;;  %v9190_v11 = vsel %vm7993_vm13, %v7976_v15, %v7894_v3  ;;  %vm9193_vm2 = vcmp.ne.s32.totalorder %v8062_v53, 0  ;;  %v9197_v33 = vld [vmem:[#allocation68_spill] sm:$0xff]  ;;  %v9198_v15 = vld [vmem:[#allocation39_spill] sm:$0xff] }
 0x220   : > { %vm8213_vm6 = vcmp.lt.s32.totalorder %v9190_v11, 16  ;;  %vm9194_vm8 = vcmp.lt.s32.totalorder %v8062_v53, 0  ;;  %v4067_v24 = vmul.u32 18, %v4066_v35  ;;  %v4444_v3 = vsel %vm8082_vm12, %v8122_v37, 0.0  ;;  %3688 = vst [vmem:[%s7573_s18 + $0xa0] sm:$0xff] %v8195_v19  ;;  %v5480_v52 = vpop.f32.mrf.mxu1 }
 0x221   : > { %vm8221_vm3 = vmand %vm9194_vm8, %vm9193_vm2  ;;  %v8226_v59 = vmul.u32.u64.low 3817748708, %v9197_v33  ;;  %v8227_v57 = vmul.u32.u64.high 3817748708, %v9197_v33, %v8226_v59  ;;  %v3339_v11 = vadd.f32 %v3258_v36, %v9198_v15  ;;  %v8235_v28 = vadd.f32 %v5514_v40, %v3341_v51  ;;  %v9203_v15 = vld [vmem:[#allocation41_spill] sm:$0xff] }
 0x222   : > { %vm9199_vm13 = vcmp.ne.s32.totalorder %v8100_v58, 0  ;;  %vm9200_vm2 = vcmp.lt.s32.totalorder %v8100_v58, 0  ;;  %v8246_v59 = vsub.s32 %v9138_v38, %v4089_v31  ;;  %v4479_v20 = vadd.f32 %v4478_v63, %v4444_v3  ;;  %v3274_v10 = vpop.f32.mrf.mxu1  ;;  %v9210_v63 = vld [vmem:[#allocation44_spill] sm:$0xff] }
 0x223   : > { %vm8241_vm8 = vmand %vm9200_vm2, %vm9199_vm13  ;;  %v4308_v40 = vsel %vm8180_vm9, %v8087_v4, %v7979_v16  ;;  %v4306_v36 = vsel %vm8201_vm11, %v8112_v13, %v8041_v48  ;;  %v4099_v51 = vshrl.u32 %v8134_v8, 4  ;;  %v3344_v43 = vadd.f32 %v5479_v1, %v9203_v15  ;;  %3691 = vst [vmem:[%s7573_s18 + $0xb8] sm:$0xff] %v8235_v28  ;;  %v5517_v48 = vpop.f32.mrf.mxu0 }
 0x224   : > { %v4445_v38 = vsel %vm8107_vm14, %v8195_v19, 0.0  ;;  %v8263_v31 = vadd.f32 %v3572_v30, %v3339_v11  ;;  %v4311_v16 = vsel %vm8221_vm3, %v8130_v44, %v8062_v53  ;;  %v9204_v13 = vsel %vm7971_vm7, %v7956_v55, %v7854_v60  ;;  %v9207_v53 = vld [vmem:[#allocation42_spill] sm:$0xff] }
 0x225   : > { %v4480_v4 = vadd.f32 %v4479_v20, %v4445_v38  ;;  %vm8274_vm9 = vcmp.lt.s32.totalorder %v9204_v13, 16  ;;  %v4309_v30 = vsel %vm8241_vm8, %v8206_v5, %v8100_v58  ;;  %v8283_v1 = vsub.s32 %v9151_v7, %v4067_v24  ;;  %v5483_v58 = vpop.f32.mrf.mxu1  ;;  %v3585_v14 = vpop.f32.mrf.mxu0 }
 0x226   : > { %v4110_v20 = vshrl.u32 %v8157_v50, 4  ;;  %v3342_v56 = vadd.f32 %v3271_v21, %v9207_v53  ;;  %3689 = vst [vmem:[%s7573_s18 + $0xa8] sm:$0xff] %v8263_v31  ;;  %v4446_v60 = vsel %vm8125_vm0, %v8263_v31, 0.0  ;;  %v8292_v55 = vadd.f32 %v5517_v48, %v3344_v43 }
 0x227   : > { %vm4168_vm7 = vcmp.ne.s32.totalorder %v8246_v59, 0  ;;  %v4481_v44 = vadd.f32 %v4480_v4, %v4446_v60  ;;  %vm8295_vm3 = vcmp.lt.s32.totalorder %v4308_v40, 16  ;;  %vm4204_vm11 = vcmp.lt.s32.totalorder %v8246_v59, 0  ;;  %v3287_v11 = vpop.f32.mrf.mxu1  ;;  %v5518_v35 = vpop.f32.mrf.mxu0 }
 0x228   : > { %v4121_v50 = vshrl.u32 %v8187_v2, 4  ;;  %v4100_v5 = vmul.u32 18, %v4099_v51  ;;  %v4447_v43 = vsel %vm8150_vm15, %v8165_v47, 0.0  ;;  %v3345_v21 = vadd.f32 %v5480_v52, %v9210_v63  ;;  %3694 = vst [vmem:[%s7573_s18 + $0xd0] sm:$0xff] %v8292_v55  ;;  %v9211_v51 = vld [vmem:[#allocation45_spill] sm:$0xff]  ;;  %vm8331_vm13 = vmand %vm4204_vm11, %vm4168_vm7 }
 0x229   : > { %v8307_v0 = vadd.f32 %v3585_v14, %v3342_v56  ;;  %v8310_v24 = vadd.s32 18, %v8246_v59  ;;  %v4482_v3 = vadd.f32 %v4481_v44, %v4447_v43  ;;  %v4132_v2 = vshrl.u32 %v8227_v57, 4  ;;  %v5484_v48 = vpop.f32.mrf.mxu1  ;;  %v3588_v13 = vpop.f32.mrf.mxu0  ;;  %v9216_v56 = vld [vmem:[#allocation47_spill] sm:$0xff] }
 0x22a   : > { %v4111_v40 = vmul.u32 18, %v4110_v20  ;;  %v4448_v52 = vsel %vm8172_vm4, %v8235_v28, 0.0  ;;  %v3343_v15 = vadd.f32 %v3274_v10, %v9211_v51  ;;  %v8320_v38 = vadd.f32 %v5518_v35, %v3345_v21 }
 0x22b   : > { %3692 = vst [vmem:[%s7573_s18 + $0xc0] sm:$0xff] %v8307_v0  ;;  %v4483_v4 = vadd.f32 %v4482_v3, %v4448_v52  ;;  %vm8323_vm8 = vcmp.lt.s32.totalorder %v4306_v36, 16  ;;  %v4122_v10 = vmul.u32 18, %v4121_v50  ;;  %v8336_v20 = vsub.s32 %v9166_v54, %v4100_v5  ;;  %v3290_v63 = vpop.f32.mrf.mxu1  ;;  %v5521_v21 = vpop.f32.mrf.mxu0 }
 0x22c   : > { %v3348_v60 = vadd.f32 %v5483_v58, %v9216_v56  ;;  %v4449_v36 = vsel %vm8213_vm6, %v8307_v0, 0.0  ;;  %3695 = vst [vmem:[%s7573_s18 + $0xd8] sm:$0xff] %v8320_v38  ;;  %v8344_v44 = vadd.f32 %v3588_v13, %v3343_v15  ;;  %v4274_v14 = vadd.s32 18, %v8283_v1 }
 0x22d   : > { %v4484_v43 = vadd.f32 %v4483_v4, %v4449_v36  ;;  %vm8347_vm7 = vcmp.lt.s32.totalorder %v4311_v16, 16  ;;  %v9217_v50 = vmov 0  ;;  %vm8351_vm11 = vcmp.lt.s32.totalorder %v4309_v30, 16  ;;  %v9225_v16 = vld [vmem:[#allocation48_spill] sm:$0xff]  ;;  %v3601_v4 = vpop.f32.mrf.mxu0  ;;  %v9227_v36 = vld [vmem:[#allocation50_spill] sm:$0xff] }
 0x22e   : > { %v9218_v50 = vsel %vm8347_vm7, 4294967295, %v9217_v50  ;;  %vm9221_vm2 = vcmp.ne.s32.totalorder %v8283_v1, 0  ;;  %vm9222_vm15 = vcmp.lt.s32.totalorder %v8283_v1, 0  ;;  %v4133_v5 = vmul.u32 18, %v4132_v2  ;;  %3693 = vst [vmem:[%s7573_s18 + $0xc8] sm:$0xff] %v8344_v44  ;;  %v5487_v2 = vpop.f32.mrf.mxu1 }
 0x22f   : > { %vm8359_vm12 = vmand %vm9222_vm15, %vm9221_vm2  ;;  %v8364_v3 = vsub.s32 %v9174_v29, %v4111_v40  ;;  %v3346_v35 = vadd.f32 %v3287_v11, %v9225_v16  ;;  %v4450_v30 = vsel %vm8323_vm8, %v8344_v44, 0.0  ;;  %v8372_v52 = vadd.f32 %v5521_v21, %v3348_v60  ;;  %v9226_v40 = vld [vmem:[#allocation49_spill] sm:$0xff] }
 0x230   : > { %v4312_v51 = vsel %vm8331_vm13, %v8310_v24, %v8246_v59  ;;  %v4485_v15 = vadd.f32 %v4484_v43, %v4450_v30  ;;  %v8379_v29 = vsub.s32 %v9184_v27, %v4122_v10  ;;  %vm4169_vm15 = vcmp.ne.s32.totalorder %v8336_v20, 0  ;;  %v3303_v57 = vpop.f32.mrf.mxu1  ;;  %v5522_v10 = vpop.f32.mrf.mxu0 }
 0x231   : > { %vm4205_vm2 = vcmp.lt.s32.totalorder %v8336_v20, 0  ;;  %v4451_v11 = vsel %vm8274_vm9, %v8292_v55, 0.0  ;;  %v3349_v13 = vadd.f32 %v5484_v48, %v9226_v40  ;;  %3698 = vst [vmem:[%s7573_s18 + $0xf0] sm:$0xff] %v8372_v52  ;;  %v8389_v59 = vadd.f32 %v3601_v4, %v3346_v35 }
 0x232   : > { %v4310_v27 = vsel %vm8359_vm12, %v4274_v14, %v8283_v1  ;;  %v4486_v24 = vadd.f32 %v4485_v15, %v4451_v11  ;;  %v4277_v56 = vadd.s32 18, %v8336_v20  ;;  %v4134_v60 = vsub.s32 %v9197_v33, %v4133_v5  ;;  %vm8409_vm12 = vmand %vm4205_vm2, %vm4169_vm15  ;;  %v5488_v14 = vpop.f32.mrf.mxu1  ;;  %v3604_v58 = vpop.f32.mrf.mxu0  ;;  %v9232_v5 = vld [vmem:[#allocation51_spill] sm:$0xff] }
 0x233   : > { %v4452_v48 = vsel %vm8295_vm3, %v8320_v38, 0.0  ;;  %v3347_v43 = vadd.f32 %v3290_v63, %v9227_v36  ;;  %3696 = vst [vmem:[%s7573_s18 + $0xe0] sm:$0xff] %v8389_v59  ;;  %v8403_v21 = vadd.f32 %v5522_v10, %v3349_v13  ;;  %vm4206_vm13 = vcmp.lt.s32.totalorder %v8364_v3, 0 }
 0x234   : > { %v4487_v33 = vadd.f32 %v4486_v24, %v4452_v48  ;;  %vm8414_vm1 = vcmp.lt.s32.totalorder %v4310_v27, 16  ;;  %vm4171_vm10 = vcmp.ne.s32.totalorder %v8379_v29, 0  ;;  %v3352_v16 = vadd.f32 %v5487_v2, %v9232_v5  ;;  %v5525_v11 = vpop.f32.mrf.mxu0  ;;  %v9236_v27 = vld [vmem:[#allocation53_spill] sm:$0xff] }
 0x235   : > { %v4453_v35 = vsel %vm8351_vm11, %v8389_v59, 0.0  ;;  %3699 = vst [vmem:[%s7573_s18 + $0xf8] sm:$0xff] %v8403_v21  ;;  %v8426_v30 = vadd.f32 %v3604_v58, %v3347_v43  ;;  %v4278_v15 = vadd.s32 18, %v8364_v3  ;;  %v4279_v40 = vadd.s32 18, %v8379_v29 }
 0x236   : > { %v4488_v4 = vadd.f32 %v4487_v33, %v4453_v35  ;;  %v4313_v13 = vsel %vm8409_vm12, %v4277_v56, %v8336_v20  ;;  %vm9233_vm2 = vcmp.ne.s32.totalorder %v8364_v3, 0  ;;  %v3350_v24 = vadd.f32 %v3303_v57, %v9236_v27  ;;  %v3306_v56 = vpop.f32.mrf.mxu1  ;;  %v3617_v43 = vpop.f32.mrf.mxu0  ;;  %v9242_v33 = vld [vmem:[#allocation56_spill] sm:$0xff]  ;;  %v9258_v20 = vld [vmem:[#allocation2_spill] sm:$0xff] }
 0x237   : > { %vm8437_vm5 = vmand %vm4206_vm13, %vm9233_vm2  ;;  %3697 = vst [vmem:[%s7573_s18 + $0xe8] sm:$0xff] %v8426_v30  ;;  %v4454_v10 = vsel %vm8414_vm1, %v8426_v30, 0.0  ;;  %v8447_v48 = vadd.f32 %v5525_v11, %v3352_v16  ;;  %vm4208_vm12 = vcmp.lt.s32.totalorder %v4134_v60, 0  ;;  %vm8449_vm15 = vcmp.lt.s32.totalorder %v4312_v51, 16 }
 0x238   : > { %v4489_v36 = vadd.f32 %v4488_v4, %v4454_v10  ;;  %vm9239_vm13 = vcmp.lt.s32.totalorder %v8379_v29, 0  ;;  %v4280_v1 = vadd.s32 18, %v4134_v60  ;;  %v4455_v51 = vsel %vm8347_vm7, %v8372_v52, 0.0  ;;  %v5526_v11 = vpop.f32.mrf.mxu0 }
 0x239   : > { %vm8457_vm2 = vmand %vm9239_vm13, %vm4171_vm10  ;;  %v3353_v58 = vadd.f32 %v5488_v14, %v9242_v33  ;;  %3702 = vst [vmem:[%s7573_s18 + $0x110] sm:$0xff] %v8447_v48  ;;  %v8467_v5 = vadd.f32 %v3617_v43, %v3350_v24  ;;  %v4314_v16 = vsel %vm8437_vm5, %v4278_v15, %v8364_v3  ;;  %vm8472_vm10 = vcmp.lt.s32.totalorder %v4313_v13, 16  ;;  %v9248_v24 = vld [vmem:[#allocation60_spill] sm:$0xff] }
 0x23a   : > { %v4490_v35 = vadd.f32 %v4489_v36, %v4455_v51  ;;  %vm9245_vm13 = vcmp.ne.s32.totalorder %v4134_v60, 0  ;;  %v4456_v27 = vsel %vm8449_vm15, %v8403_v21, 0.0  ;;  %v3351_v2 = vadd.f32 %v3306_v56, %v9248_v24  ;;  %v3620_v10 = vpop.f32.mrf.mxu0  ;;  %v9263_v36 = vld [vmem:[#allocation3_spill] sm:$0xff]  ;;  %v9265_v33 = vld [vmem:[#allocation12_spill] sm:$0xff] }
 0x23b   : > { %vm8478_vm7 = vmand %vm4208_vm12, %vm9245_vm13  ;;  %v4315_v3 = vsel %vm8457_vm2, %v4279_v40, %v8379_v29  ;;  %3700 = vst [vmem:[%s7573_s18 + $0x100] sm:$0xff] %v8467_v5  ;;  %v8491_v15 = vadd.f32 %v5526_v11, %v3353_v58  ;;  %vm8493_vm5 = vcmp.lt.s32.totalorder %v4314_v16, 16  ;;  %v4457_v43 = vsel %vm8472_vm10, %v8467_v5, 0.0 }
 0x23c   : > { %v4491_v13 = vadd.f32 %v4490_v35, %v4456_v27  ;;  %v4316_v56 = vsel %vm8478_vm7, %v4280_v1, %v4134_v60  ;;  %v3665_v29 = vadd.f32 %v3620_v10, %v3351_v2  ;;  %vm8504_vm12 = vcmp.lt.s32.totalorder %v4315_v3, 16 }
 0x23d   : > { %3703 = vst [vmem:[%s7573_s18 + $0x118] sm:$0xff] %v8491_v15  ;;  %vm8511_vm2 = vcmp.lt.s32.totalorder %v4316_v56, 16  ;;  %v4459_v60 = vsel %vm8504_vm12, %v8447_v48, 0.0  ;;  %vm9273_vm7 = vnez %v9052_v41  ;;  %v9278_v41 = vld [vmem:[#allocation29_spill] sm:$0xff] }
 0x23e   : > { %v4492_v57 = vadd.f32 %v4491_v13, %v4457_v43  ;;  %3701 = vst [vmem:[%s7573_s18 + $0x108] sm:$0xff] %v3665_v29  ;;  %v4458_v51 = vsel %vm8493_vm5, %v3665_v29, 0.0  ;;  %v4460_v16 = vsel %vm8511_vm2, %v8491_v15, 0.0 }
 0x240   : > { %v4493_v58 = vadd.f32 %v4492_v57, %v4458_v51 }
 0x242   : > { %v4494_v1 = vadd.f32 %v4493_v58, %v4459_v60 }
 0x244   : > { %v4495_v35 = vadd.f32 %v4494_v1, %v4460_v16 }
 0x246   : > { %v4496_v11 = vrot.slane %v4495_v35, 4 }
 0x248   : > { %v4497_v14 = vadd.f32 %v4496_v11, %v4495_v35 }
 0x24a   : > { %v4498_v27 = vrot.slane %v4497_v14, 2 }
 0x24c   : > { %v4499_v24 = vadd.f32 %v4498_v27, %v4497_v14 }
 0x24e   : > { %v4500_v2 = vrot.slane %v4499_v24, 1 }
 0x250   : > { %v4501_v3 = vadd.f32 %v4500_v2, %v4499_v24  ;;  %v9255_v24 = vld [vmem:[#allocation10_spill] sm:$0xff]  ;;  %v9256_v2 = vld [vmem:[#allocation4_spill] sm:$0xff] }
 0x252   : > { %v8527_v13 = vmul.f32 0.00390625, %v4501_v3 }
 0x254   : > { %4652 = vst [vmem:[%s214_s22] sm:$0xff] %v8527_v13  ;;  %v4516_v10 = vsub.f32 %v8049_v45, %v8527_v13  ;;  %v4519_v43 = vsub.f32 %v8097_v34, %v8527_v13  ;;  %v4520_v56 = vsub.f32 %v8142_v26, %v8527_v13  ;;  %v4521_v57 = vsub.f32 %v8074_v9, %v8527_v13 }
 0x255   : > { %v4522_v51 = vsub.f32 %v8122_v37, %v8527_v13  ;;  %v4523_v58 = vsub.f32 %v8195_v19, %v8527_v13  ;;  %v4524_v60 = vsub.f32 %v8263_v31, %v8527_v13  ;;  %v4525_v1 = vsub.f32 %v8165_v47, %v8527_v13 }
 0x256   : > { %v4526_v16 = vsub.f32 %v8235_v28, %v8527_v13  ;;  %v4527_v35 = vsub.f32 %v8307_v0, %v8527_v13  ;;  %v4528_v11 = vsub.f32 %v8344_v44, %v8527_v13  ;;  %v4529_v14 = vsub.f32 %v8292_v55, %v8527_v13 }
 0x257   : > { %v4530_v19 = vsub.f32 %v8320_v38, %v8527_v13  ;;  %v4531_v31 = vsub.f32 %v8389_v59, %v8527_v13  ;;  %v4532_v27 = vsub.f32 %v8426_v30, %v8527_v13  ;;  %v4533_v28 = vsub.f32 %v8372_v52, %v8527_v13 }
 0x258   : > { %v4534_v0 = vsub.f32 %v8403_v21, %v8527_v13  ;;  %v4535_v44 = vsub.f32 %v8467_v5, %v8527_v13  ;;  %v4536_v55 = vsub.f32 %v3665_v29, %v8527_v13  ;;  %v4537_v38 = vsub.f32 %v8447_v48, %v8527_v13 }
 0x259   : > { %v4538_v59 = vsub.f32 %v8491_v15, %v8527_v13  ;;  %v4503_v30 = vsub.f32 %v9255_v24, %v8527_v13  ;;  %v4504_v52 = vsub.f32 %v9256_v2, %v8527_v13  ;;  %v8577_v21 = vsel %vm8107_vm14, %v4523_v58, 0.0  ;;  %v9259_v58 = vld [vmem:[#allocation57_spill] sm:$0xff] }
 0x25a   : > { %v8581_v5 = vsel %vm8125_vm0, %v4524_v60, 0.0  ;;  %v8585_v48 = vsel %vm8172_vm4, %v4526_v16, 0.0  ;;  %v8589_v15 = vsel %vm8213_vm6, %v4527_v35, 0.0  ;;  %v8593_v29 = vsel %vm8323_vm8, %v4528_v11, 0.0  ;;  %v9261_v60 = vld [vmem:[#allocation58_spill] sm:$0xff] }
 0x25b   : > { %v8597_v18 = vsel %vm8274_vm9, %v4529_v14, 0.0  ;;  %v8601_v62 = vsel %vm8295_vm3, %v4530_v19, 0.0  ;;  %v8605_v42 = vsel %vm8351_vm11, %v4531_v31, 0.0  ;;  %v8609_v32 = vsel %vm8414_vm1, %v4532_v27, 0.0  ;;  %v9264_v14 = vld [vmem:[#allocation16_spill] sm:$0xff] }
 0x25c   : > { %vm9257_vm6 = vnez %v9218_v50  ;;  %v8617_v8 = vsel %vm8449_vm15, %v4534_v0, 0.0  ;;  %v8621_v7 = vsel %vm8472_vm10, %v4535_v44, 0.0  ;;  %v8625_v54 = vsel %vm8493_vm5, %v4536_v55, 0.0 }
 0x25d   : > { %v8613_v53 = vsel %vm9257_vm6, %v4533_v28, 0.0  ;;  %v8629_v63 = vsel %vm8504_vm12, %v4537_v38, 0.0  ;;  %v8633_v50 = vsel %vm8511_vm2, %v4538_v59, 0.0  ;;  %v4505_v3 = vsub.f32 %v9258_v20, %v8527_v13  ;;  %v9267_v28 = vld [vmem:[#allocation61_spill] sm:$0xff]  ;;  %v9269_v59 = vld [vmem:[#allocation64_spill] sm:$0xff] }
 0x25e   : > { %vm9260_vm1 = vnez %v9259_v58  ;;  %vm9262_vm4 = vnez %v9261_v60  ;;  %v4506_v35 = vsub.f32 %v9263_v36, %v8527_v13  ;;  %v4507_v19 = vsub.f32 %v9264_v14, %v8527_v13 }
 0x25f   : > { %v4539_v4 = vsel %vm9260_vm1, %v4503_v30, 0.0  ;;  %v4540_v16 = vsel %vm9262_vm4, %v4504_v52, 0.0  ;;  %vm9266_vm14 = vnez %v9265_v33  ;;  %v4508_v27 = vsub.f32 %v7819_v22, %v8527_v13 }
 0x260   : > { %v4575_v11 = vmul.f32 %v4539_v4, %v4539_v4  ;;  %v4576_v40 = vmul.f32 %v4540_v16, %v4540_v16  ;;  %v4541_v31 = vsel %vm9266_vm14, %v4505_v3, 0.0  ;;  %vm9268_vm0 = vnez %v9267_v28  ;;  %v9279_v28 = vld [vmem:[#allocation5_spill] sm:$0xff] }
 0x261   : > { %v4542_v0 = vsel %vm9268_vm0, %v4506_v35, 0.0  ;;  %v4577_v44 = vmul.f32 %v4541_v31, %v4541_v31  ;;  %v4509_v38 = vsub.f32 %v7750_v61, %v8527_v13  ;;  %vm9270_vm9 = vnez %v9269_v59 }
 0x262   : > { %v4611_v55 = vadd.f32 %v4576_v40, %v4575_v11  ;;  %v4543_v24 = vsel %vm9270_vm9, %v4507_v19, 0.0  ;;  %v4578_v30 = vmul.f32 %v4542_v0, %v4542_v0  ;;  %v4510_v52 = vsub.f32 %v7795_v23, %v8527_v13  ;;  %v9274_v11 = vld [vmem:[#allocation13_spill] sm:$0xff]  ;;  %v9276_v19 = vld [vmem:[#allocation7_spill] sm:$0xff] }
 0x263   : > { %vm9271_vm3 = vnez %v9034_v49  ;;  %v4579_v22 = vmul.f32 %v4543_v24, %v4543_v24  ;;  %v4511_v58 = vsub.f32 %v7876_v25, %v8527_v13  ;;  %vm9272_vm8 = vnez %v9047_v39 }
 0x264   : > { %v4612_v2 = vadd.f32 %v4611_v55, %v4577_v44  ;;  %v4544_v20 = vsel %vm9271_vm3, %v4508_v27, 0.0  ;;  %v4545_v4 = vsel %vm9272_vm8, %v4509_v38, 0.0  ;;  %v4512_v16 = vsub.f32 %v7924_v17, %v8527_v13  ;;  %v9281_v55 = vld [vmem:[#allocation18_spill] sm:$0xff] }
 0x265   : > { %v4580_v61 = vmul.f32 %v4544_v20, %v4544_v20  ;;  %v4546_v36 = vsel %vm9273_vm7, %v4510_v52, 0.0  ;;  %v4581_v23 = vmul.f32 %v4545_v4, %v4545_v4  ;;  %v4513_v49 = vsub.f32 %v7851_v46, %v8527_v13  ;;  %v9287_v4 = vld [vmem:[#allocation24_spill] sm:$0xff] }
 0x266   : > { %v4613_v3 = vadd.f32 %v4612_v2, %v4578_v30  ;;  %vm9275_vm11 = vnez %v9274_v11  ;;  %v4582_v25 = vmul.f32 %v4546_v36, %v4546_v36  ;;  %v4514_v39 = vsub.f32 %v7902_v6, %v8527_v13  ;;  %v9283_v6 = vld [vmem:[#allocation40_spill] sm:$0xff]  ;;  %v9284_v2 = vld [vmem:[#allocation6_spill] sm:$0xff]  ;;  %v9291_v11 = vld [vmem:[#allocation37_spill] sm:$0xff] }
 0x267   : > { %v4547_v40 = vsel %vm9275_vm11, %v4511_v58, 0.0  ;;  %vm9277_vm15 = vnez %v9276_v19  ;;  %v4515_v27 = vsub.f32 %v9278_v41, %v8527_v13  ;;  %vm9280_vm10 = vnez %v9279_v28  ;;  %v9289_v36 = vld [vmem:[#allocation14_spill] sm:$0xff] }
 0x268   : > { %v4614_v60 = vadd.f32 %v4613_v3, %v4579_v22  ;;  %v4548_v33 = vsel %vm9277_vm15, %v4512_v16, 0.0  ;;  %v4583_v17 = vmul.f32 %v4547_v40, %v4547_v40  ;;  %v4549_v0 = vsel %vm9280_vm10, %v4513_v49, 0.0  ;;  %v9286_v3 = vld [vmem:[#allocation31_spill] sm:$0xff] }
 0x269   : > { %v4584_v46 = vmul.f32 %v4548_v33, %v4548_v33  ;;  %vm9282_vm13 = vnez %v9281_v55  ;;  %v4585_v59 = vmul.f32 %v4549_v0, %v4549_v0  ;;  %v4517_v30 = vsub.f32 %v9283_v6, %v8527_v13  ;;  %v9295_v33 = vld [vmem:[#allocation27_spill] sm:$0xff] }
 0x26a   : > { %v4615_v35 = vadd.f32 %v4614_v60, %v4580_v61  ;;  %v4550_v38 = vsel %vm9282_vm13, %v4514_v39, 0.0  ;;  %vm9285_vm5 = vnez %v9284_v2  ;;  %v4518_v58 = vsub.f32 %v9286_v3, %v8527_v13  ;;  %v9293_v39 = vld [vmem:[#allocation8_spill] sm:$0xff] }
 0x26b   : > { %v4551_v52 = vsel %vm9285_vm5, %v4515_v27, 0.0  ;;  %v4586_v20 = vmul.f32 %v4550_v38, %v4550_v38  ;;  %vm9288_vm12 = vnez %v9287_v4  ;;  %vm9290_vm2 = vnez %v9289_v36  ;;  %v9297_v27 = vld [vmem:[#allocation22_spill] sm:$0xff] }
 0x26c   : > { %v4616_v14 = vadd.f32 %v4615_v35, %v4581_v23  ;;  %v4552_v61 = vsel %vm9288_vm12, %v4516_v10, 0.0  ;;  %v4587_v60 = vmul.f32 %v4551_v52, %v4551_v52  ;;  %v4553_v23 = vsel %vm9290_vm2, %v4517_v30, 0.0 }
 0x26d   : > { %v4588_v35 = vmul.f32 %v4552_v61, %v4552_v61  ;;  %vm9292_vm6 = vnez %v9291_v11  ;;  %vm9294_vm1 = vnez %v9293_v39  ;;  %vm9296_vm4 = vnez %v9295_v33 }
 0x26e   : > { %v4617_v31 = vadd.f32 %v4616_v14, %v4582_v25  ;;  %v4554_v40 = vsel %vm9292_vm6, %v4518_v58, 0.0  ;;  %v4589_v25 = vmul.f32 %v4553_v23, %v4553_v23  ;;  %v4555_v45 = vsel %vm9294_vm1, %v4519_v43, 0.0  ;;  %v9299_v43 = vld [vmem:[#allocation9_spill] sm:$0xff] }
 0x26f   : > { %v4590_v19 = vmul.f32 %v4554_v40, %v4554_v40  ;;  %vm9298_vm14 = vnez %v9297_v27  ;;  %vm9300_vm0 = vnez %v9299_v43  ;;  %v4595_v38 = vmul.f32 %v8577_v21, %v8577_v21 }
 0x270   : > { %v4618_v44 = vadd.f32 %v4617_v31, %v4583_v17  ;;  %v4556_v17 = vsel %vm9296_vm4, %v4520_v56, 0.0  ;;  %v4591_v31 = vmul.f32 %v4555_v45, %v4555_v45  ;;  %v4557_v28 = vsel %vm9298_vm14, %v4521_v57, 0.0 }
 0x271   : > { %v4592_v34 = vmul.f32 %v4556_v17, %v4556_v17  ;;  %v4593_v26 = vmul.f32 %v4557_v28, %v4557_v28  ;;  %vm9301_vm9 = vnez %v9173_v12  ;;  %v4596_v37 = vmul.f32 %v8581_v5, %v8581_v5 }
 0x272   : > { %v4619_v24 = vadd.f32 %v4618_v44, %v4584_v46  ;;  %v4558_v46 = vsel %vm9300_vm0, %v4522_v51, 0.0  ;;  %v4561_v9 = vsel %vm9301_vm9, %v4525_v1, 0.0  ;;  %v4598_v6 = vmul.f32 %v8585_v48, %v8585_v48 }
 0x273   : > { %v4594_v55 = vmul.f32 %v4558_v46, %v4558_v46  ;;  %v4599_v21 = vmul.f32 %v8589_v15, %v8589_v15  ;;  %v4600_v47 = vmul.f32 %v8593_v29, %v8593_v29  ;;  %v4601_v12 = vmul.f32 %v8597_v18, %v8597_v18 }
 0x274   : > { %v4620_v22 = vadd.f32 %v4619_v24, %v4585_v59  ;;  %v4597_v24 = vmul.f32 %v4561_v9, %v4561_v9  ;;  %v4602_v5 = vmul.f32 %v8601_v62, %v8601_v62  ;;  %v4603_v48 = vmul.f32 %v8605_v42, %v8605_v42 }
 0x275   : > { %v4604_v15 = vmul.f32 %v8609_v32, %v8609_v32  ;;  %v4605_v29 = vmul.f32 %v8613_v53, %v8613_v53  ;;  %v4606_v18 = vmul.f32 %v8617_v8, %v8617_v8  ;;  %v4607_v62 = vmul.f32 %v8621_v7, %v8621_v7 }
 0x276   : > { %v4621_v16 = vadd.f32 %v4620_v22, %v4586_v20  ;;  %v4608_v42 = vmul.f32 %v8625_v54, %v8625_v54  ;;  %v4609_v32 = vmul.f32 %v8629_v63, %v8629_v63  ;;  %v4610_v53 = vmul.f32 %v8633_v50, %v8633_v50 }
 0x278   : > { %v4622_v49 = vadd.f32 %v4621_v16, %v4587_v60 }
 0x27a   : > { %v4623_v14 = vadd.f32 %v4622_v49, %v4588_v35 }
 0x27c   : > { %v4624_v10 = vadd.f32 %v4623_v14, %v4589_v25 }
 0x27e   : > { %v4625_v41 = vadd.f32 %v4624_v10, %v4590_v19 }
 0x280   : > { %v4626_v0 = vadd.f32 %v4625_v41, %v4591_v31 }
 0x282   : > { %v4627_v44 = vadd.f32 %v4626_v0, %v4592_v34 }
 0x284   : > { %v4628_v56 = vadd.f32 %v4627_v44, %v4593_v26 }
 0x286   : > { %v4629_v59 = vadd.f32 %v4628_v56, %v4594_v55 }
 0x288   : > { %v4630_v57 = vadd.f32 %v4629_v59, %v4595_v38 }
 0x28a   : > { %v4631_v51 = vadd.f32 %v4630_v57, %v4596_v37 }
 0x28c   : > { %v4632_v30 = vadd.f32 %v4631_v51, %v4597_v24 }
 0x28e   : > { %v4633_v2 = vadd.f32 %v4632_v30, %v4598_v6 }
 0x290   : > { %v4634_v13 = vadd.f32 %v4633_v2, %v4599_v21 }
 0x292   : > { %v4635_v1 = vadd.f32 %v4634_v13, %v4600_v47 }
 0x294   : > { %v4636_v52 = vadd.f32 %v4635_v1, %v4601_v12 }
 0x296   : > { %v4637_v20 = vadd.f32 %v4636_v52, %v4602_v5 }
 0x298   : > { %v4638_v22 = vadd.f32 %v4637_v20, %v4603_v48 }
 0x29a   : > { %v4639_v3 = vadd.f32 %v4638_v22, %v4604_v15 }
 0x29c   : > { %v4640_v58 = vadd.f32 %v4639_v3, %v4605_v29 }
 0x29e   : > { %v4641_v4 = vadd.f32 %v4640_v58, %v4606_v18 }
 0x2a0   : > { %v4642_v61 = vadd.f32 %v4641_v4, %v4607_v62 }
 0x2a2   : > { %v4643_v60 = vadd.f32 %v4642_v61, %v4608_v42 }
 0x2a4   : > { %v4644_v16 = vadd.f32 %v4643_v60, %v4609_v32 }
 0x2a6   : > { %v4645_v36 = vadd.f32 %v4644_v16, %v4610_v53 }
 0x2a8   : > { %v4646_v8 = vrot.slane %v4645_v36, 4 }
 0x2aa   : > { %v4647_v23 = vadd.f32 %v4646_v8, %v4645_v36 }
 0x2ac   : > { %v4648_v35 = vrot.slane %v4647_v23, 2 }
 0x2ae   : > { %v4649_v49 = vadd.f32 %v4648_v35, %v4647_v23 }
 0x2b0   : > { %v4650_v11 = vrot.slane %v4649_v49, 1 }
 0x2b2   : > { %v4651_v7 = vadd.f32 %v4650_v11, %v4649_v49 }
 0x2b4   : > { %4653 = vst [vmem:[%s218_s25] sm:$0xff] %v4651_v7 }
 0x2b5 PF: > { %s15_s15 = sadd.s32 1, %s5689_s15  }
 0x2b6   : > { %p12_p4 = scmp.ge.s32.totalorder %s15_s15, 4  }
 0x2b8   :  { %14 = sbr.rel (!%p12_p4) target bundleno = 1 (0x1), region = 90 }

</bundles_post_ra>
